<compile_context>
chip_gen: v6e
topology: v6e:2x2x1
jax: 0.10.0
libtpu: 0.0.40
codegen_flags: <defaults>
</compile_context>

<pallas_src>
import functools

import jax
import jax.numpy as jnp
import numpy as np
from jax import lax
from jax.experimental import pallas as pl
from jax.experimental.pallas import tpu as pltpu


def _round_up(x, m):
    return ((x + m - 1) // m) * m


# ---------------------------------------------------------------------------
# Fused kernel: all LSTM layers + heads in one call.
# ---------------------------------------------------------------------------
def _make_fused_kernel(num_layers, T, Bp, Hp):
    n_in = 1 + 3 * num_layers + 2
    H4 = 4 * Hp

    def kernel(*refs):
        x_ref = refs[0]
        layer_refs = [refs[1 + 3 * l: 4 + 3 * l] for l in range(num_layers)]
        whead_ref = refs[1 + 3 * num_layers]
        bhead_ref = refs[2 + 3 * num_layers]
        out_ref, hout_ref, cout_ref = refs[n_in:n_in + 3]
        xp_scr = refs[n_in + 3]                                  # (T, Bp, 4Hp)
        seq_scr = refs[n_in + 4] if num_layers > 1 else None     # (T, Bp, Hp)

        h = None
        for l in range(num_layers):
            wih_ref, whh_ref, b_ref = layer_refs[l]

            # Hoisted input projection for all timesteps at once, off the
            # serial path.  Stored time-major so the recurrence does a free
            # leading-axis index per step.
            xin = x_ref[...] if l == 0 else seq_scr[...].reshape(T * Bp, Hp)
            xp = (jnp.dot(xin, wih_ref[...],
                          preferred_element_type=jnp.float32)
                  + b_ref[...])                                   # (T*Bp, 4Hp)
            xp_scr[...] = xp.reshape(T, Bp, H4)

            write_seq = l < num_layers - 1

            def step(t, carry, whh_ref=whh_ref, write_seq=write_seq):
                h, c = carry
                # Single fused gate matmul: (Bp,Hp) x (Hp,4Hp), lane-dense.
                gates = xp_scr[t] + jnp.dot(
                    h, whh_ref[...], preferred_element_type=jnp.float32)
                # Gate columns are packed [i | f | o | g]: one sigmoid over
                # the contiguous (Bp, 3Hp) slab, one tanh over g.
                sig = jax.nn.sigmoid(gates[:, :3 * Hp])
                i_g = sig[:, 0 * Hp:1 * Hp]
                f_g = sig[:, 1 * Hp:2 * Hp]
                o_g = sig[:, 2 * Hp:3 * Hp]
                g_g = jnp.tanh(gates[:, 3 * Hp:])
                c = f_g * c + i_g * g_g
                h = o_g * jnp.tanh(c)
                if write_seq:
                    seq_scr[t] = h            # full-tile, unmasked store
                return h, c

            h, c = lax.fori_loop(
                0, T, step,
                (jnp.zeros((Bp, Hp), jnp.float32),
                 jnp.zeros((Bp, Hp), jnp.float32)),
                unroll=min(T, 8))
            hout_ref[l] = h                   # single write per layer
            cout_ref[l] = c

        # Heads fused on the last hidden state: one lane-dense (Hp, 128) matmul.
        out_ref[...] = (jnp.dot(h, whead_ref[...],
                                preferred_element_type=jnp.float32)
                        + bhead_ref[...])

    return kernel


# ---------------------------------------------------------------------------
# Parameter construction (deterministic, PyTorch-style uniform init).
# ---------------------------------------------------------------------------
def init_params(key, input_size, hidden_size, num_layers, action_dim):
    H = hidden_size
    bound = 1.0 / np.sqrt(H)

    def u(key, shape):
        return jax.random.uniform(key, shape, jnp.float32, -bound, bound)

    params = {"lstm": [], "heads": {}}
    for layer in range(num_layers):
        in_size = input_size if layer == 0 else H
        key, k1, k2, k3, k4 = jax.random.split(key, 5)
        w_ih = u(k1, (4 * H, in_size))
        w_hh = u(k2, (4 * H, H))
        b_ih = u(k3, (4 * H,))
        b_hh = u(k4, (4 * H,))
        params["lstm"].append({
            "wih_t": w_ih.T,                         # (in, 4H) cols [i,f,g,o]
            "whh_t": w_hh.T,                         # (H, 4H)  cols [i,f,g,o]
            "b": (b_ih + b_hh).reshape(1, 4 * H),    # (1, 4H)
        })
    key, kq1, kq2, kp1, kp2, kv1, kv2 = jax.random.split(key, 7)
    params["heads"] = {
        "wq_t": u(kq1, (action_dim, H)).T, "bq": u(kq2, (action_dim,)).reshape(1, -1),
        "wp_t": u(kp1, (action_dim, H)).T, "bp": u(kp2, (action_dim,)).reshape(1, -1),
        "wv_t": u(kv1, (1, H)).T,          "bv": u(kv2, (1,)).reshape(1, 1),
    }
    return params


# ---------------------------------------------------------------------------
# One-time weight packing (gate reorder + hardware-tile padding), OUTSIDE the
# forward hot path.
# ---------------------------------------------------------------------------
def pack_params(params, input_size, hidden_size, action_dim):
    H, A = hidden_size, action_dim
    Hp = _round_up(H, 128)
    Ip = _round_up(input_size, 128)
    P = _round_up(2 * A + 1, 128)

    def repack(w, rows_pad):
        # w: (rows, 4H), gate cols [i,f,g,o] -> (rows_pad, 4Hp), cols [i,f,o,g]
        rows = w.shape[0]
        gi, gf, gg, go = (w[:, k * H:(k + 1) * H] for k in range(4))
        blocks = [jnp.pad(g, ((0, rows_pad - rows), (0, Hp - H)))
                  for g in (gi, gf, go, gg)]
        return jnp.concatenate(blocks, axis=1)

    packed = {"lstm": [], "heads": {}}
    for li, layer in enumerate(params["lstm"]):
        rows_pad = Ip if li == 0 else Hp
        packed["lstm"].append({
            "wih": repack(layer["wih_t"], rows_pad),     # (rows_pad, 4Hp)
            "whh": repack(layer["whh_t"], Hp),           # (Hp, 4Hp)
            "b":   repack(layer["b"], 1),                # (1, 4Hp)
        })
    hp = params["heads"]
    w_heads = jnp.concatenate([hp["wq_t"], hp["wp_t"], hp["wv_t"]], axis=1)
    b_heads = jnp.concatenate([hp["bq"], hp["bp"], hp["bv"]], axis=1)
    packed["heads"]["w"] = jnp.pad(
        w_heads, ((0, Hp - H), (0, P - w_heads.shape[1])))        # (Hp, P)
    packed["heads"]["b"] = jnp.pad(
        b_heads, ((0, 0), (0, P - b_heads.shape[1])))             # (1, P)
    return packed


# ---------------------------------------------------------------------------
# Forward pass: thin layout prep in XLA, hot path in one fused kernel.
# ---------------------------------------------------------------------------
@functools.partial(jax.jit, static_argnames=("H", "A"))
def rnn_policy_forward(packed, x_bti, *, H, A):
    # x_bti: (B, T, input_size) batch-first, like the PyTorch module.
    B, T, I = x_bti.shape
    L = len(packed["lstm"])
    Hp = packed["lstm"][0]["whh"].shape[0]
    Ip = packed["lstm"][0]["wih"].shape[0]
    P = packed["heads"]["w"].shape[1]
    Bp = _round_up(B, 8)

    # Time-major, pad batch -> Bp sublanes and features -> Ip lanes.
    x = jnp.transpose(x_bti, (1, 0, 2)).astype(jnp.float32)       # (T, B, I)
    x = jnp.pad(x, ((0, 0), (0, Bp - B), (0, Ip - I)))
    x2d = x.reshape(T * Bp, Ip)

    args = [x2d]
    for layer in packed["lstm"]:
        args += [layer["wih"], layer["whh"], layer["b"]]
    args += [packed["heads"]["w"], packed["heads"]["b"]]

    kernel = _make_fused_kernel(L, T, Bp, Hp)
    scratch = [pltpu.VMEM((T, Bp, 4 * Hp), jnp.float32)]
    if L > 1:
        scratch.append(pltpu.VMEM((T, Bp, Hp), jnp.float32))

    # Explicit scoped-VMEM budget (v5e default is only 16 MiB).
    f32 = 4
    vmem_need = (
        sum(int(np.prod(a.shape)) * f32 for a in args)
        + Bp * P * f32 + 2 * L * Bp * Hp * f32
        + T * Bp * 4 * Hp * f32 + (T * Bp * Hp * f32 if L > 1 else 0))
    vmem_limit = int(min(max(2 * vmem_need + (4 << 20), 16 << 20), 100 << 20))

    out, h_n, c_n = pl.pallas_call(
        kernel,
        out_shape=(jax.ShapeDtypeStruct((Bp, P), jnp.float32),
                   jax.ShapeDtypeStruct((L, Bp, Hp), jnp.float32),
                   jax.ShapeDtypeStruct((L, Bp, Hp), jnp.float32)),
        scratch_shapes=scratch,
        compiler_params=pltpu.CompilerParams(vmem_limit_bytes=vmem_limit),
    )(*args)

    q = out[:B, :A]
    pi = out[:B, A:2 * A]
    v = out[:B, 2 * A:2 * A + 1]
    return q, pi, v, (h_n[:, :B, :H], c_n[:, :B, :H])


# ---------------------------------------------------------------------------
# Pure-JAX reference (lax.scan LSTM on the unpacked params).
# ---------------------------------------------------------------------------
def reference_forward(params, x_bti):
    x = jnp.transpose(x_bti, (1, 0, 2)).astype(jnp.float32)  # (T, B, I)
    B = x.shape[1]
    h_list, c_list = [], []
    seq = x
    for layer in params["lstm"]:
        H = layer["whh_t"].shape[0]

        def step(carry, x_t, layer=layer, H=H):
            h, c = carry
            gates = x_t @ layer["wih_t"] + h @ layer["whh_t"] + layer["b"]
            i = jax.nn.sigmoid(gates[:, 0:H])
            f = jax.nn.sigmoid(gates[:, H:2 * H])
            g = jnp.tanh(gates[:, 2 * H:3 * H])
            o = jax.nn.sigmoid(gates[:, 3 * H:4 * H])
            c_new = f * c + i * g
            h_new = o * jnp.tanh(c_new)
            return (h_new, c_new), h_new

        init = (jnp.zeros((B, H), jnp.float32), jnp.zeros((B, H), jnp.float32))
        (h_n, c_n), seq = lax.scan(step, init, seq)
        h_list.append(h_n)
        c_list.append(c_n)
    last = seq[-1]
    hp = params["heads"]
    q = last @ hp["wq_t"] + hp["bq"]
    pi = last @ hp["wp_t"] + hp["bp"]
    v = last @ hp["wv_t"] + hp["bv"]
    return q, pi, v, (jnp.stack(h_list, 0), jnp.stack(c_list, 0))


if __name__ == "__main__":
    B, T = 2, 8
    input_size, hidden_size, num_layers, action_dim = 16, 32, 2, 4

    key = jax.random.PRNGKey(0)
    key, kx = jax.random.split(key)
    params = init_params(key, input_size, hidden_size, num_layers, action_dim)
    packed = pack_params(params, input_size, hidden_size, action_dim)
    x = jax.random.normal(kx, (B, T, input_size), jnp.float32)

    q, pi, v, (h_n, c_n) = rnn_policy_forward(packed, x, H=hidden_size, A=action_dim)
    jax.block_until_ready((q, pi, v, h_n, c_n))

    q_r, pi_r, v_r, (h_r, c_r) = reference_forward(params, x)
    np.testing.assert_allclose(np.asarray(q), np.asarray(q_r), atol=1e-4, rtol=1e-4)
    np.testing.assert_allclose(np.asarray(pi), np.asarray(pi_r), atol=1e-4, rtol=1e-4)
    np.testing.assert_allclose(np.asarray(v), np.asarray(v_r), atol=1e-4, rtol=1e-4)
    np.testing.assert_allclose(np.asarray(h_n), np.asarray(h_r), atol=1e-4, rtol=1e-4)
    np.testing.assert_allclose(np.asarray(c_n), np.asarray(c_r), atol=1e-4, rtol=1e-4)

    assert q.shape == (B, action_dim) and pi.shape == (B, action_dim)
    assert v.shape == (B, 1)
    assert h_n.shape == (num_layers, B, hidden_size)
    assert c_n.shape == (num_layers, B, hidden_size)

    print("KERNEL_OK")
</pallas_src>

<mosaic_0001>
module attributes {stable_mosaic.version = 11 : i64} {
  func.func @kernel(%arg0: memref<64x128xf32, #tpu.memory_space<vmem>>, %arg1: memref<128x512xf32, #tpu.memory_space<vmem>>, %arg2: memref<128x512xf32, #tpu.memory_space<vmem>>, %arg3: memref<1x512xf32, #tpu.memory_space<vmem>>, %arg4: memref<128x512xf32, #tpu.memory_space<vmem>>, %arg5: memref<128x512xf32, #tpu.memory_space<vmem>>, %arg6: memref<1x512xf32, #tpu.memory_space<vmem>>, %arg7: memref<128x128xf32, #tpu.memory_space<vmem>>, %arg8: memref<1x128xf32, #tpu.memory_space<vmem>>, %arg9: memref<8x128xf32, #tpu.memory_space<vmem>>, %arg10: memref<2x8x128xf32, #tpu.memory_space<vmem>>, %arg11: memref<2x8x128xf32, #tpu.memory_space<vmem>>, %arg12: memref<8x8x512xf32, #tpu.memory_space<vmem>>, %arg13: memref<8x8x128xf32, #tpu.memory_space<vmem>>) attributes {dimension_semantics = [], scalar_prefetch = 0 : i64, scratch_operands = 2 : i64, tpu.core_type = #tpu.core_type<tc>} {
    %c0 = arith.constant 0 : index
    %c0_0 = arith.constant 0 : index
    %0 = vector.load %arg0[%c0, %c0_0] : memref<64x128xf32, #tpu.memory_space<vmem>>, vector<64x128xf32>
    %c0_1 = arith.constant 0 : index
    %c0_2 = arith.constant 0 : index
    %1 = vector.load %arg1[%c0_1, %c0_2] : memref<128x512xf32, #tpu.memory_space<vmem>>, vector<128x512xf32>
    %cst = arith.constant dense<0.000000e+00> : vector<64x512xf32>
    %2 = tpu.matmul %0, %1, %cst {dimension_numbers = #tpu.dot_dimension_numbers<[1], [0], [0], [1], [0, 0, 1, 1], [], []>} : vector<64x128xf32>, vector<128x512xf32>, vector<64x512xf32> -> vector<64x512xf32>
    %c0_3 = arith.constant 0 : index
    %c0_4 = arith.constant 0 : index
    %3 = vector.load %arg3[%c0_3, %c0_4] : memref<1x512xf32, #tpu.memory_space<vmem>>, vector<1x512xf32>
    %4 = vector.broadcast %3 : vector<1x512xf32> to vector<64x512xf32>
    %5 = arith.addf %2, %4 : vector<64x512xf32>
    %6 = vector.shape_cast %5 : vector<64x512xf32> to vector<8x8x512xf32>
    %c0_5 = arith.constant 0 : index
    %c0_6 = arith.constant 0 : index
    %c0_7 = arith.constant 0 : index
    %7 = vector.load %arg12[%c0_5, %c0_6, %c0_7] : memref<8x8x512xf32, #tpu.memory_space<vmem>>, vector<8x8x512xf32>
    tpu.vector_store %arg12[%c0_5, %c0_6, %c0_7], %6 {strides = array<i32>} : memref<8x8x512xf32, #tpu.memory_space<vmem>>, vector<8x8x512xf32>,
    %cst_8 = arith.constant 0.000000e+00 : f32
    %8 = vector.broadcast %cst_8 : f32 to vector<8x128xf32>
    %cst_9 = arith.constant 0.000000e+00 : f32
    %9 = vector.broadcast %cst_9 : f32 to vector<8x128xf32>
    %c0_i32 = arith.constant 0 : i32
    %10 = arith.index_cast %c0_i32 : i32 to index
    %c0_10 = arith.constant 0 : index
    %c0_11 = arith.constant 0 : index
    %11 = vector.load %arg12[%10, %c0_10, %c0_11] : memref<8x8x512xf32, #tpu.memory_space<vmem>>, vector<1x8x512xf32>
    %12 = vector.shape_cast %11 : vector<1x8x512xf32> to vector<8x512xf32>
    %c0_12 = arith.constant 0 : index
    %c0_13 = arith.constant 0 : index
    %13 = vector.load %arg2[%c0_12, %c0_13] : memref<128x512xf32, #tpu.memory_space<vmem>>, vector<128x512xf32>
    %cst_14 = arith.constant dense<0.000000e+00> : vector<8x512xf32>
    %14 = tpu.matmul %8, %13, %cst_14 {dimension_numbers = #tpu.dot_dimension_numbers<[1], [0], [0], [1], [0, 0, 1, 1], [], []>} : vector<8x128xf32>, vector<128x512xf32>, vector<8x512xf32> -> vector<8x512xf32>
    %15 = arith.addf %12, %14 : vector<8x512xf32>
    %16 = vector.extract_strided_slice %15 {offsets = [0, 0], sizes = [8, 384], strides = [1, 1]} : vector<8x512xf32> to vector<8x384xf32>
    %17 = arith.negf %16 : vector<8x384xf32>
    %18 = math.exp %17 : vector<8x384xf32>
    %cst_15 = arith.constant 1.000000e+00 : f32
    %19 = vector.broadcast %cst_15 : f32 to vector<8x384xf32>
    %20 = arith.addf %19, %18 : vector<8x384xf32>
    %21 = arith.divf %19, %20 : vector<8x384xf32>
    %22 = vector.extract_strided_slice %21 {offsets = [0, 0], sizes = [8, 128], strides = [1, 1]} : vector<8x384xf32> to vector<8x128xf32>
    %23 = vector.extract_strided_slice %21 {offsets = [0, 128], sizes = [8, 128], strides = [1, 1]} : vector<8x384xf32> to vector<8x128xf32>
    %24 = vector.extract_strided_slice %21 {offsets = [0, 256], sizes = [8, 128], strides = [1, 1]} : vector<8x384xf32> to vector<8x128xf32>
    %25 = vector.extract_strided_slice %15 {offsets = [0, 384], sizes = [8, 128], strides = [1, 1]} : vector<8x512xf32> to vector<8x128xf32>
    %26 = math.tanh %25 : vector<8x128xf32>
    %27 = arith.mulf %23, %9 : vector<8x128xf32>
    %28 = arith.mulf %22, %26 : vector<8x128xf32>
    %29 = arith.addf %27, %28 : vector<8x128xf32>
    %30 = math.tanh %29 : vector<8x128xf32>
    %31 = arith.mulf %24, %30 : vector<8x128xf32>
    %32 = arith.index_cast %c0_i32 : i32 to index
    %c0_16 = arith.constant 0 : index
    %c0_17 = arith.constant 0 : index
    %33 = vector.load %arg13[%32, %c0_16, %c0_17] : memref<8x8x128xf32, #tpu.memory_space<vmem>>, vector<1x8x128xf32>
    %34 = vector.shape_cast %33 : vector<1x8x128xf32> to vector<8x128xf32>
    %35 = vector.shape_cast %31 : vector<8x128xf32> to vector<1x8x128xf32>
    tpu.vector_store %arg13[%32, %c0_16, %c0_17], %35 {strides = array<i32>} : memref<8x8x128xf32, #tpu.memory_space<vmem>>, vector<1x8x128xf32>,
    %c1_i32 = arith.constant 1 : i32
    %36 = arith.index_cast %c1_i32 : i32 to index
    %c0_18 = arith.constant 0 : index
    %c0_19 = arith.constant 0 : index
    %37 = vector.load %arg12[%36, %c0_18, %c0_19] : memref<8x8x512xf32, #tpu.memory_space<vmem>>, vector<1x8x512xf32>
    %38 = vector.shape_cast %37 : vector<1x8x512xf32> to vector<8x512xf32>
    %c0_20 = arith.constant 0 : index
    %c0_21 = arith.constant 0 : index
    %39 = vector.load %arg2[%c0_20, %c0_21] : memref<128x512xf32, #tpu.memory_space<vmem>>, vector<128x512xf32>
    %cst_22 = arith.constant dense<0.000000e+00> : vector<8x512xf32>
    %40 = tpu.matmul %31, %39, %cst_22 {dimension_numbers = #tpu.dot_dimension_numbers<[1], [0], [0], [1], [0, 0, 1, 1], [], []>} : vector<8x128xf32>, vector<128x512xf32>, vector<8x512xf32> -> vector<8x512xf32>
    %41 = arith.addf %38, %40 : vector<8x512xf32>
    %42 = vector.extract_strided_slice %41 {offsets = [0, 0], sizes = [8, 384], strides = [1, 1]} : vector<8x512xf32> to vector<8x384xf32>
    %43 = arith.negf %42 : vector<8x384xf32>
    %44 = math.exp %43 : vector<8x384xf32>
    %cst_23 = arith.constant 1.000000e+00 : f32
    %45 = vector.broadcast %cst_23 : f32 to vector<8x384xf32>
    %46 = arith.addf %45, %44 : vector<8x384xf32>
    %47 = arith.divf %45, %46 : vector<8x384xf32>
    %48 = vector.extract_strided_slice %47 {offsets = [0, 0], sizes = [8, 128], strides = [1, 1]} : vector<8x384xf32> to vector<8x128xf32>
    %49 = vector.extract_strided_slice %47 {offsets = [0, 128], sizes = [8, 128], strides = [1, 1]} : vector<8x384xf32> to vector<8x128xf32>
    %50 = vector.extract_strided_slice %47 {offsets = [0, 256], sizes = [8, 128], strides = [1, 1]} : vector<8x384xf32> to vector<8x128xf32>
    %51 = vector.extract_strided_slice %41 {offsets = [0, 384], sizes = [8, 128], strides = [1, 1]} : vector<8x512xf32> to vector<8x128xf32>
    %52 = math.tanh %51 : vector<8x128xf32>
    %53 = arith.mulf %49, %29 : vector<8x128xf32>
    %54 = arith.mulf %48, %52 : vector<8x128xf32>
    %55 = arith.addf %53, %54 : vector<8x128xf32>
    %56 = math.tanh %55 : vector<8x128xf32>
    %57 = arith.mulf %50, %56 : vector<8x128xf32>
    %58 = arith.index_cast %c1_i32 : i32 to index
    %c0_24 = arith.constant 0 : index
    %c0_25 = arith.constant 0 : index
    %59 = vector.load %arg13[%58, %c0_24, %c0_25] : memref<8x8x128xf32, #tpu.memory_space<vmem>>, vector<1x8x128xf32>
    %60 = vector.shape_cast %59 : vector<1x8x128xf32> to vector<8x128xf32>
    %61 = vector.shape_cast %57 : vector<8x128xf32> to vector<1x8x128xf32>
    tpu.vector_store %arg13[%58, %c0_24, %c0_25], %61 {strides = array<i32>} : memref<8x8x128xf32, #tpu.memory_space<vmem>>, vector<1x8x128xf32>,
    %c2_i32 = arith.constant 2 : i32
    %62 = arith.index_cast %c2_i32 : i32 to index
    %c0_26 = arith.constant 0 : index
    %c0_27 = arith.constant 0 : index
    %63 = vector.load %arg12[%62, %c0_26, %c0_27] : memref<8x8x512xf32, #tpu.memory_space<vmem>>, vector<1x8x512xf32>
    %64 = vector.shape_cast %63 : vector<1x8x512xf32> to vector<8x512xf32>
    %c0_28 = arith.constant 0 : index
    %c0_29 = arith.constant 0 : index
    %65 = vector.load %arg2[%c0_28, %c0_29] : memref<128x512xf32, #tpu.memory_space<vmem>>, vector<128x512xf32>
    %cst_30 = arith.constant dense<0.000000e+00> : vector<8x512xf32>
    %66 = tpu.matmul %57, %65, %cst_30 {dimension_numbers = #tpu.dot_dimension_numbers<[1], [0], [0], [1], [0, 0, 1, 1], [], []>} : vector<8x128xf32>, vector<128x512xf32>, vector<8x512xf32> -> vector<8x512xf32>
    %67 = arith.addf %64, %66 : vector<8x512xf32>
    %68 = vector.extract_strided_slice %67 {offsets = [0, 0], sizes = [8, 384], strides = [1, 1]} : vector<8x512xf32> to vector<8x384xf32>
    %69 = arith.negf %68 : vector<8x384xf32>
    %70 = math.exp %69 : vector<8x384xf32>
    %cst_31 = arith.constant 1.000000e+00 : f32
    %71 = vector.broadcast %cst_31 : f32 to vector<8x384xf32>
    %72 = arith.addf %71, %70 : vector<8x384xf32>
    %73 = arith.divf %71, %72 : vector<8x384xf32>
    %74 = vector.extract_strided_slice %73 {offsets = [0, 0], sizes = [8, 128], strides = [1, 1]} : vector<8x384xf32> to vector<8x128xf32>
    %75 = vector.extract_strided_slice %73 {offsets = [0, 128], sizes = [8, 128], strides = [1, 1]} : vector<8x384xf32> to vector<8x128xf32>
    %76 = vector.extract_strided_slice %73 {offsets = [0, 256], sizes = [8, 128], strides = [1, 1]} : vector<8x384xf32> to vector<8x128xf32>
    %77 = vector.extract_strided_slice %67 {offsets = [0, 384], sizes = [8, 128], strides = [1, 1]} : vector<8x512xf32> to vector<8x128xf32>
    %78 = math.tanh %77 : vector<8x128xf32>
    %79 = arith.mulf %75, %55 : vector<8x128xf32>
    %80 = arith.mulf %74, %78 : vector<8x128xf32>
    %81 = arith.addf %79, %80 : vector<8x128xf32>
    %82 = math.tanh %81 : vector<8x128xf32>
    %83 = arith.mulf %76, %82 : vector<8x128xf32>
    %84 = arith.index_cast %c2_i32 : i32 to index
    %c0_32 = arith.constant 0 : index
    %c0_33 = arith.constant 0 : index
    %85 = vector.load %arg13[%84, %c0_32, %c0_33] : memref<8x8x128xf32, #tpu.memory_space<vmem>>, vector<1x8x128xf32>
    %86 = vector.shape_cast %85 : vector<1x8x128xf32> to vector<8x128xf32>
    %87 = vector.shape_cast %83 : vector<8x128xf32> to vector<1x8x128xf32>
    tpu.vector_store %arg13[%84, %c0_32, %c0_33], %87 {strides = array<i32>} : memref<8x8x128xf32, #tpu.memory_space<vmem>>, vector<1x8x128xf32>,
    %c3_i32 = arith.constant 3 : i32
    %88 = arith.index_cast %c3_i32 : i32 to index
    %c0_34 = arith.constant 0 : index
    %c0_35 = arith.constant 0 : index
    %89 = vector.load %arg12[%88, %c0_34, %c0_35] : memref<8x8x512xf32, #tpu.memory_space<vmem>>, vector<1x8x512xf32>
    %90 = vector.shape_cast %89 : vector<1x8x512xf32> to vector<8x512xf32>
    %c0_36 = arith.constant 0 : index
    %c0_37 = arith.constant 0 : index
    %91 = vector.load %arg2[%c0_36, %c0_37] : memref<128x512xf32, #tpu.memory_space<vmem>>, vector<128x512xf32>
    %cst_38 = arith.constant dense<0.000000e+00> : vector<8x512xf32>
    %92 = tpu.matmul %83, %91, %cst_38 {dimension_numbers = #tpu.dot_dimension_numbers<[1], [0], [0], [1], [0, 0, 1, 1], [], []>} : vector<8x128xf32>, vector<128x512xf32>, vector<8x512xf32> -> vector<8x512xf32>
    %93 = arith.addf %90, %92 : vector<8x512xf32>
    %94 = vector.extract_strided_slice %93 {offsets = [0, 0], sizes = [8, 384], strides = [1, 1]} : vector<8x512xf32> to vector<8x384xf32>
    %95 = arith.negf %94 : vector<8x384xf32>
    %96 = math.exp %95 : vector<8x384xf32>
    %cst_39 = arith.constant 1.000000e+00 : f32
    %97 = vector.broadcast %cst_39 : f32 to vector<8x384xf32>
    %98 = arith.addf %97, %96 : vector<8x384xf32>
    %99 = arith.divf %97, %98 : vector<8x384xf32>
    %100 = vector.extract_strided_slice %99 {offsets = [0, 0], sizes = [8, 128], strides = [1, 1]} : vector<8x384xf32> to vector<8x128xf32>
    %101 = vector.extract_strided_slice %99 {offsets = [0, 128], sizes = [8, 128], strides = [1, 1]} : vector<8x384xf32> to vector<8x128xf32>
    %102 = vector.extract_strided_slice %99 {offsets = [0, 256], sizes = [8, 128], strides = [1, 1]} : vector<8x384xf32> to vector<8x128xf32>
    %103 = vector.extract_strided_slice %93 {offsets = [0, 384], sizes = [8, 128], strides = [1, 1]} : vector<8x512xf32> to vector<8x128xf32>
    %104 = math.tanh %103 : vector<8x128xf32>
    %105 = arith.mulf %101, %81 : vector<8x128xf32>
    %106 = arith.mulf %100, %104 : vector<8x128xf32>
    %107 = arith.addf %105, %106 : vector<8x128xf32>
    %108 = math.tanh %107 : vector<8x128xf32>
    %109 = arith.mulf %102, %108 : vector<8x128xf32>
    %110 = arith.index_cast %c3_i32 : i32 to index
    %c0_40 = arith.constant 0 : index
    %c0_41 = arith.constant 0 : index
    %111 = vector.load %arg13[%110, %c0_40, %c0_41] : memref<8x8x128xf32, #tpu.memory_space<vmem>>, vector<1x8x128xf32>
    %112 = vector.shape_cast %111 : vector<1x8x128xf32> to vector<8x128xf32>
    %113 = vector.shape_cast %109 : vector<8x128xf32> to vector<1x8x128xf32>
    tpu.vector_store %arg13[%110, %c0_40, %c0_41], %113 {strides = array<i32>} : memref<8x8x128xf32, #tpu.memory_space<vmem>>, vector<1x8x128xf32>,
    %c4_i32 = arith.constant 4 : i32
    %114 = arith.index_cast %c4_i32 : i32 to index
    %c0_42 = arith.constant 0 : index
    %c0_43 = arith.constant 0 : index
    %115 = vector.load %arg12[%114, %c0_42, %c0_43] : memref<8x8x512xf32, #tpu.memory_space<vmem>>, vector<1x8x512xf32>
    %116 = vector.shape_cast %115 : vector<1x8x512xf32> to vector<8x512xf32>
    %c0_44 = arith.constant 0 : index
    %c0_45 = arith.constant 0 : index
    %117 = vector.load %arg2[%c0_44, %c0_45] : memref<128x512xf32, #tpu.memory_space<vmem>>, vector<128x512xf32>
    %cst_46 = arith.constant dense<0.000000e+00> : vector<8x512xf32>
    %118 = tpu.matmul %109, %117, %cst_46 {dimension_numbers = #tpu.dot_dimension_numbers<[1], [0], [0], [1], [0, 0, 1, 1], [], []>} : vector<8x128xf32>, vector<128x512xf32>, vector<8x512xf32> -> vector<8x512xf32>
    %119 = arith.addf %116, %118 : vector<8x512xf32>
    %120 = vector.extract_strided_slice %119 {offsets = [0, 0], sizes = [8, 384], strides = [1, 1]} : vector<8x512xf32> to vector<8x384xf32>
    %121 = arith.negf %120 : vector<8x384xf32>
    %122 = math.exp %121 : vector<8x384xf32>
    %cst_47 = arith.constant 1.000000e+00 : f32
    %123 = vector.broadcast %cst_47 : f32 to vector<8x384xf32>
    %124 = arith.addf %123, %122 : vector<8x384xf32>
    %125 = arith.divf %123, %124 : vector<8x384xf32>
    %126 = vector.extract_strided_slice %125 {offsets = [0, 0], sizes = [8, 128], strides = [1, 1]} : vector<8x384xf32> to vector<8x128xf32>
    %127 = vector.extract_strided_slice %125 {offsets = [0, 128], sizes = [8, 128], strides = [1, 1]} : vector<8x384xf32> to vector<8x128xf32>
    %128 = vector.extract_strided_slice %125 {offsets = [0, 256], sizes = [8, 128], strides = [1, 1]} : vector<8x384xf32> to vector<8x128xf32>
    %129 = vector.extract_strided_slice %119 {offsets = [0, 384], sizes = [8, 128], strides = [1, 1]} : vector<8x512xf32> to vector<8x128xf32>
    %130 = math.tanh %129 : vector<8x128xf32>
    %131 = arith.mulf %127, %107 : vector<8x128xf32>
    %132 = arith.mulf %126, %130 : vector<8x128xf32>
    %133 = arith.addf %131, %132 : vector<8x128xf32>
    %134 = math.tanh %133 : vector<8x128xf32>
    %135 = arith.mulf %128, %134 : vector<8x128xf32>
    %136 = arith.index_cast %c4_i32 : i32 to index
    %c0_48 = arith.constant 0 : index
    %c0_49 = arith.constant 0 : index
    %137 = vector.load %arg13[%136, %c0_48, %c0_49] : memref<8x8x128xf32, #tpu.memory_space<vmem>>, vector<1x8x128xf32>
    %138 = vector.shape_cast %137 : vector<1x8x128xf32> to vector<8x128xf32>
    %139 = vector.shape_cast %135 : vector<8x128xf32> to vector<1x8x128xf32>
    tpu.vector_store %arg13[%136, %c0_48, %c0_49], %139 {strides = array<i32>} : memref<8x8x128xf32, #tpu.memory_space<vmem>>, vector<1x8x128xf32>,
    %c5_i32 = arith.constant 5 : i32
    %140 = arith.index_cast %c5_i32 : i32 to index
    %c0_50 = arith.constant 0 : index
    %c0_51 = arith.constant 0 : index
    %141 = vector.load %arg12[%140, %c0_50, %c0_51] : memref<8x8x512xf32, #tpu.memory_space<vmem>>, vector<1x8x512xf32>
    %142 = vector.shape_cast %141 : vector<1x8x512xf32> to vector<8x512xf32>
    %c0_52 = arith.constant 0 : index
    %c0_53 = arith.constant 0 : index
    %143 = vector.load %arg2[%c0_52, %c0_53] : memref<128x512xf32, #tpu.memory_space<vmem>>, vector<128x512xf32>
    %cst_54 = arith.constant dense<0.000000e+00> : vector<8x512xf32>
    %144 = tpu.matmul %135, %143, %cst_54 {dimension_numbers = #tpu.dot_dimension_numbers<[1], [0], [0], [1], [0, 0, 1, 1], [], []>} : vector<8x128xf32>, vector<128x512xf32>, vector<8x512xf32> -> vector<8x512xf32>
    %145 = arith.addf %142, %144 : vector<8x512xf32>
    %146 = vector.extract_strided_slice %145 {offsets = [0, 0], sizes = [8, 384], strides = [1, 1]} : vector<8x512xf32> to vector<8x384xf32>
    %147 = arith.negf %146 : vector<8x384xf32>
    %148 = math.exp %147 : vector<8x384xf32>
    %cst_55 = arith.constant 1.000000e+00 : f32
    %149 = vector.broadcast %cst_55 : f32 to vector<8x384xf32>
    %150 = arith.addf %149, %148 : vector<8x384xf32>
    %151 = arith.divf %149, %150 : vector<8x384xf32>
    %152 = vector.extract_strided_slice %151 {offsets = [0, 0], sizes = [8, 128], strides = [1, 1]} : vector<8x384xf32> to vector<8x128xf32>
    %153 = vector.extract_strided_slice %151 {offsets = [0, 128], sizes = [8, 128], strides = [1, 1]} : vector<8x384xf32> to vector<8x128xf32>
    %154 = vector.extract_strided_slice %151 {offsets = [0, 256], sizes = [8, 128], strides = [1, 1]} : vector<8x384xf32> to vector<8x128xf32>
    %155 = vector.extract_strided_slice %145 {offsets = [0, 384], sizes = [8, 128], strides = [1, 1]} : vector<8x512xf32> to vector<8x128xf32>
    %156 = math.tanh %155 : vector<8x128xf32>
    %157 = arith.mulf %153, %133 : vector<8x128xf32>
    %158 = arith.mulf %152, %156 : vector<8x128xf32>
    %159 = arith.addf %157, %158 : vector<8x128xf32>
    %160 = math.tanh %159 : vector<8x128xf32>
    %161 = arith.mulf %154, %160 : vector<8x128xf32>
    %162 = arith.index_cast %c5_i32 : i32 to index
    %c0_56 = arith.constant 0 : index
    %c0_57 = arith.constant 0 : index
    %163 = vector.load %arg13[%162, %c0_56, %c0_57] : memref<8x8x128xf32, #tpu.memory_space<vmem>>, vector<1x8x128xf32>
    %164 = vector.shape_cast %163 : vector<1x8x128xf32> to vector<8x128xf32>
    %165 = vector.shape_cast %161 : vector<8x128xf32> to vector<1x8x128xf32>
    tpu.vector_store %arg13[%162, %c0_56, %c0_57], %165 {strides = array<i32>} : memref<8x8x128xf32, #tpu.memory_space<vmem>>, vector<1x8x128xf32>,
    %c6_i32 = arith.constant 6 : i32
    %166 = arith.index_cast %c6_i32 : i32 to index
    %c0_58 = arith.constant 0 : index
    %c0_59 = arith.constant 0 : index
    %167 = vector.load %arg12[%166, %c0_58, %c0_59] : memref<8x8x512xf32, #tpu.memory_space<vmem>>, vector<1x8x512xf32>
    %168 = vector.shape_cast %167 : vector<1x8x512xf32> to vector<8x512xf32>
    %c0_60 = arith.constant 0 : index
    %c0_61 = arith.constant 0 : index
    %169 = vector.load %arg2[%c0_60, %c0_61] : memref<128x512xf32, #tpu.memory_space<vmem>>, vector<128x512xf32>
    %cst_62 = arith.constant dense<0.000000e+00> : vector<8x512xf32>
    %170 = tpu.matmul %161, %169, %cst_62 {dimension_numbers = #tpu.dot_dimension_numbers<[1], [0], [0], [1], [0, 0, 1, 1], [], []>} : vector<8x128xf32>, vector<128x512xf32>, vector<8x512xf32> -> vector<8x512xf32>
    %171 = arith.addf %168, %170 : vector<8x512xf32>
    %172 = vector.extract_strided_slice %171 {offsets = [0, 0], sizes = [8, 384], strides = [1, 1]} : vector<8x512xf32> to vector<8x384xf32>
    %173 = arith.negf %172 : vector<8x384xf32>
    %174 = math.exp %173 : vector<8x384xf32>
    %cst_63 = arith.constant 1.000000e+00 : f32
    %175 = vector.broadcast %cst_63 : f32 to vector<8x384xf32>
    %176 = arith.addf %175, %174 : vector<8x384xf32>
    %177 = arith.divf %175, %176 : vector<8x384xf32>
    %178 = vector.extract_strided_slice %177 {offsets = [0, 0], sizes = [8, 128], strides = [1, 1]} : vector<8x384xf32> to vector<8x128xf32>
    %179 = vector.extract_strided_slice %177 {offsets = [0, 128], sizes = [8, 128], strides = [1, 1]} : vector<8x384xf32> to vector<8x128xf32>
    %180 = vector.extract_strided_slice %177 {offsets = [0, 256], sizes = [8, 128], strides = [1, 1]} : vector<8x384xf32> to vector<8x128xf32>
    %181 = vector.extract_strided_slice %171 {offsets = [0, 384], sizes = [8, 128], strides = [1, 1]} : vector<8x512xf32> to vector<8x128xf32>
    %182 = math.tanh %181 : vector<8x128xf32>
    %183 = arith.mulf %179, %159 : vector<8x128xf32>
    %184 = arith.mulf %178, %182 : vector<8x128xf32>
    %185 = arith.addf %183, %184 : vector<8x128xf32>
    %186 = math.tanh %185 : vector<8x128xf32>
    %187 = arith.mulf %180, %186 : vector<8x128xf32>
    %188 = arith.index_cast %c6_i32 : i32 to index
    %c0_64 = arith.constant 0 : index
    %c0_65 = arith.constant 0 : index
    %189 = vector.load %arg13[%188, %c0_64, %c0_65] : memref<8x8x128xf32, #tpu.memory_space<vmem>>, vector<1x8x128xf32>
    %190 = vector.shape_cast %189 : vector<1x8x128xf32> to vector<8x128xf32>
    %191 = vector.shape_cast %187 : vector<8x128xf32> to vector<1x8x128xf32>
    tpu.vector_store %arg13[%188, %c0_64, %c0_65], %191 {strides = array<i32>} : memref<8x8x128xf32, #tpu.memory_space<vmem>>, vector<1x8x128xf32>,
    %c7_i32 = arith.constant 7 : i32
    %192 = arith.index_cast %c7_i32 : i32 to index
    %c0_66 = arith.constant 0 : index
    %c0_67 = arith.constant 0 : index
    %193 = vector.load %arg12[%192, %c0_66, %c0_67] : memref<8x8x512xf32, #tpu.memory_space<vmem>>, vector<1x8x512xf32>
    %194 = vector.shape_cast %193 : vector<1x8x512xf32> to vector<8x512xf32>
    %c0_68 = arith.constant 0 : index
    %c0_69 = arith.constant 0 : index
    %195 = vector.load %arg2[%c0_68, %c0_69] : memref<128x512xf32, #tpu.memory_space<vmem>>, vector<128x512xf32>
    %cst_70 = arith.constant dense<0.000000e+00> : vector<8x512xf32>
    %196 = tpu.matmul %187, %195, %cst_70 {dimension_numbers = #tpu.dot_dimension_numbers<[1], [0], [0], [1], [0, 0, 1, 1], [], []>} : vector<8x128xf32>, vector<128x512xf32>, vector<8x512xf32> -> vector<8x512xf32>
    %197 = arith.addf %194, %196 : vector<8x512xf32>
    %198 = vector.extract_strided_slice %197 {offsets = [0, 0], sizes = [8, 384], strides = [1, 1]} : vector<8x512xf32> to vector<8x384xf32>
    %199 = arith.negf %198 : vector<8x384xf32>
    %200 = math.exp %199 : vector<8x384xf32>
    %cst_71 = arith.constant 1.000000e+00 : f32
    %201 = vector.broadcast %cst_71 : f32 to vector<8x384xf32>
    %202 = arith.addf %201, %200 : vector<8x384xf32>
    %203 = arith.divf %201, %202 : vector<8x384xf32>
    %204 = vector.extract_strided_slice %203 {offsets = [0, 0], sizes = [8, 128], strides = [1, 1]} : vector<8x384xf32> to vector<8x128xf32>
    %205 = vector.extract_strided_slice %203 {offsets = [0, 128], sizes = [8, 128], strides = [1, 1]} : vector<8x384xf32> to vector<8x128xf32>
    %206 = vector.extract_strided_slice %203 {offsets = [0, 256], sizes = [8, 128], strides = [1, 1]} : vector<8x384xf32> to vector<8x128xf32>
    %207 = vector.extract_strided_slice %197 {offsets = [0, 384], sizes = [8, 128], strides = [1, 1]} : vector<8x512xf32> to vector<8x128xf32>
    %208 = math.tanh %207 : vector<8x128xf32>
    %209 = arith.mulf %205, %185 : vector<8x128xf32>
    %210 = arith.mulf %204, %208 : vector<8x128xf32>
    %211 = arith.addf %209, %210 : vector<8x128xf32>
    %212 = math.tanh %211 : vector<8x128xf32>
    %213 = arith.mulf %206, %212 : vector<8x128xf32>
    %214 = arith.index_cast %c7_i32 : i32 to index
    %c0_72 = arith.constant 0 : index
    %c0_73 = arith.constant 0 : index
    %215 = vector.load %arg13[%214, %c0_72, %c0_73] : memref<8x8x128xf32, #tpu.memory_space<vmem>>, vector<1x8x128xf32>
    %216 = vector.shape_cast %215 : vector<1x8x128xf32> to vector<8x128xf32>
    %217 = vector.shape_cast %213 : vector<8x128xf32> to vector<1x8x128xf32>
    tpu.vector_store %arg13[%214, %c0_72, %c0_73], %217 {strides = array<i32>} : memref<8x8x128xf32, #tpu.memory_space<vmem>>, vector<1x8x128xf32>,
    %c8_i32 = arith.constant 8 : i32
    %c0_74 = arith.constant 0 : index
    %c0_75 = arith.constant 0 : index
    %c0_76 = arith.constant 0 : index
    %218 = vector.load %arg10[%c0_74, %c0_75, %c0_76] : memref<2x8x128xf32, #tpu.memory_space<vmem>>, vector<1x8x128xf32>
    %219 = vector.shape_cast %218 : vector<1x8x128xf32> to vector<8x128xf32>
    %220 = vector.shape_cast %213 : vector<8x128xf32> to vector<1x8x128xf32>
    tpu.vector_store %arg10[%c0_74, %c0_75, %c0_76], %220 {strides = array<i32>} : memref<2x8x128xf32, #tpu.memory_space<vmem>>, vector<1x8x128xf32>,
    %c0_77 = arith.constant 0 : index
    %c0_78 = arith.constant 0 : index
    %c0_79 = arith.constant 0 : index
    %221 = vector.load %arg11[%c0_77, %c0_78, %c0_79] : memref<2x8x128xf32, #tpu.memory_space<vmem>>, vector<1x8x128xf32>
    %222 = vector.shape_cast %221 : vector<1x8x128xf32> to vector<8x128xf32>
    %223 = vector.shape_cast %211 : vector<8x128xf32> to vector<1x8x128xf32>
    tpu.vector_store %arg11[%c0_77, %c0_78, %c0_79], %223 {strides = array<i32>} : memref<2x8x128xf32, #tpu.memory_space<vmem>>, vector<1x8x128xf32>,
    %c0_80 = arith.constant 0 : index
    %c0_81 = arith.constant 0 : index
    %c0_82 = arith.constant 0 : index
    %224 = vector.load %arg13[%c0_80, %c0_81, %c0_82] : memref<8x8x128xf32, #tpu.memory_space<vmem>>, vector<8x8x128xf32>
    %225 = vector.shape_cast %224 : vector<8x8x128xf32> to vector<64x128xf32>
    %c0_83 = arith.constant 0 : index
    %c0_84 = arith.constant 0 : index
    %226 = vector.load %arg4[%c0_83, %c0_84] : memref<128x512xf32, #tpu.memory_space<vmem>>, vector<128x512xf32>
    %cst_85 = arith.constant dense<0.000000e+00> : vector<64x512xf32>
    %227 = tpu.matmul %225, %226, %cst_85 {dimension_numbers = #tpu.dot_dimension_numbers<[1], [0], [0], [1], [0, 0, 1, 1], [], []>} : vector<64x128xf32>, vector<128x512xf32>, vector<64x512xf32> -> vector<64x512xf32>
    %c0_86 = arith.constant 0 : index
    %c0_87 = arith.constant 0 : index
    %228 = vector.load %arg6[%c0_86, %c0_87] : memref<1x512xf32, #tpu.memory_space<vmem>>, vector<1x512xf32>
    %229 = vector.broadcast %228 : vector<1x512xf32> to vector<64x512xf32>
    %230 = arith.addf %227, %229 : vector<64x512xf32>
    %231 = vector.shape_cast %230 : vector<64x512xf32> to vector<8x8x512xf32>
    %c0_88 = arith.constant 0 : index
    %c0_89 = arith.constant 0 : index
    %c0_90 = arith.constant 0 : index
    %232 = vector.load %arg12[%c0_88, %c0_89, %c0_90] : memref<8x8x512xf32, #tpu.memory_space<vmem>>, vector<8x8x512xf32>
    tpu.vector_store %arg12[%c0_88, %c0_89, %c0_90], %231 {strides = array<i32>} : memref<8x8x512xf32, #tpu.memory_space<vmem>>, vector<8x8x512xf32>,
    %cst_91 = arith.constant 0.000000e+00 : f32
    %233 = vector.broadcast %cst_91 : f32 to vector<8x128xf32>
    %cst_92 = arith.constant 0.000000e+00 : f32
    %234 = vector.broadcast %cst_92 : f32 to vector<8x128xf32>
    %c0_i32_93 = arith.constant 0 : i32
    %235 = arith.index_cast %c0_i32_93 : i32 to index
    %c0_94 = arith.constant 0 : index
    %c0_95 = arith.constant 0 : index
    %236 = vector.load %arg12[%235, %c0_94, %c0_95] : memref<8x8x512xf32, #tpu.memory_space<vmem>>, vector<1x8x512xf32>
    %237 = vector.shape_cast %236 : vector<1x8x512xf32> to vector<8x512xf32>
    %c0_96 = arith.constant 0 : index
    %c0_97 = arith.constant 0 : index
    %238 = vector.load %arg5[%c0_96, %c0_97] : memref<128x512xf32, #tpu.memory_space<vmem>>, vector<128x512xf32>
    %cst_98 = arith.constant dense<0.000000e+00> : vector<8x512xf32>
    %239 = tpu.matmul %233, %238, %cst_98 {dimension_numbers = #tpu.dot_dimension_numbers<[1], [0], [0], [1], [0, 0, 1, 1], [], []>} : vector<8x128xf32>, vector<128x512xf32>, vector<8x512xf32> -> vector<8x512xf32>
    %240 = arith.addf %237, %239 : vector<8x512xf32>
    %241 = vector.extract_strided_slice %240 {offsets = [0, 0], sizes = [8, 384], strides = [1, 1]} : vector<8x512xf32> to vector<8x384xf32>
    %242 = arith.negf %241 : vector<8x384xf32>
    %243 = math.exp %242 : vector<8x384xf32>
    %cst_99 = arith.constant 1.000000e+00 : f32
    %244 = vector.broadcast %cst_99 : f32 to vector<8x384xf32>
    %245 = arith.addf %244, %243 : vector<8x384xf32>
    %246 = arith.divf %244, %245 : vector<8x384xf32>
    %247 = vector.extract_strided_slice %246 {offsets = [0, 0], sizes = [8, 128], strides = [1, 1]} : vector<8x384xf32> to vector<8x128xf32>
    %248 = vector.extract_strided_slice %246 {offsets = [0, 128], sizes = [8, 128], strides = [1, 1]} : vector<8x384xf32> to vector<8x128xf32>
    %249 = vector.extract_strided_slice %246 {offsets = [0, 256], sizes = [8, 128], strides = [1, 1]} : vector<8x384xf32> to vector<8x128xf32>
    %250 = vector.extract_strided_slice %240 {offsets = [0, 384], sizes = [8, 128], strides = [1, 1]} : vector<8x512xf32> to vector<8x128xf32>
    %251 = math.tanh %250 : vector<8x128xf32>
    %252 = arith.mulf %248, %234 : vector<8x128xf32>
    %253 = arith.mulf %247, %251 : vector<8x128xf32>
    %254 = arith.addf %252, %253 : vector<8x128xf32>
    %255 = math.tanh %254 : vector<8x128xf32>
    %256 = arith.mulf %249, %255 : vector<8x128xf32>
    %c1_i32_100 = arith.constant 1 : i32
    %257 = arith.index_cast %c1_i32_100 : i32 to index
    %c0_101 = arith.constant 0 : index
    %c0_102 = arith.constant 0 : index
    %258 = vector.load %arg12[%257, %c0_101, %c0_102] : memref<8x8x512xf32, #tpu.memory_space<vmem>>, vector<1x8x512xf32>
    %259 = vector.shape_cast %258 : vector<1x8x512xf32> to vector<8x512xf32>
    %c0_103 = arith.constant 0 : index
    %c0_104 = arith.constant 0 : index
    %260 = vector.load %arg5[%c0_103, %c0_104] : memref<128x512xf32, #tpu.memory_space<vmem>>, vector<128x512xf32>
    %cst_105 = arith.constant dense<0.000000e+00> : vector<8x512xf32>
    %261 = tpu.matmul %256, %260, %cst_105 {dimension_numbers = #tpu.dot_dimension_numbers<[1], [0], [0], [1], [0, 0, 1, 1], [], []>} : vector<8x128xf32>, vector<128x512xf32>, vector<8x512xf32> -> vector<8x512xf32>
    %262 = arith.addf %259, %261 : vector<8x512xf32>
    %263 = vector.extract_strided_slice %262 {offsets = [0, 0], sizes = [8, 384], strides = [1, 1]} : vector<8x512xf32> to vector<8x384xf32>
    %264 = arith.negf %263 : vector<8x384xf32>
    %265 = math.exp %264 : vector<8x384xf32>
    %cst_106 = arith.constant 1.000000e+00 : f32
    %266 = vector.broadcast %cst_106 : f32 to vector<8x384xf32>
    %267 = arith.addf %266, %265 : vector<8x384xf32>
    %268 = arith.divf %266, %267 : vector<8x384xf32>
    %269 = vector.extract_strided_slice %268 {offsets = [0, 0], sizes = [8, 128], strides = [1, 1]} : vector<8x384xf32> to vector<8x128xf32>
    %270 = vector.extract_strided_slice %268 {offsets = [0, 128], sizes = [8, 128], strides = [1, 1]} : vector<8x384xf32> to vector<8x128xf32>
    %271 = vector.extract_strided_slice %268 {offsets = [0, 256], sizes = [8, 128], strides = [1, 1]} : vector<8x384xf32> to vector<8x128xf32>
    %272 = vector.extract_strided_slice %262 {offsets = [0, 384], sizes = [8, 128], strides = [1, 1]} : vector<8x512xf32> to vector<8x128xf32>
    %273 = math.tanh %272 : vector<8x128xf32>
    %274 = arith.mulf %270, %254 : vector<8x128xf32>
    %275 = arith.mulf %269, %273 : vector<8x128xf32>
    %276 = arith.addf %274, %275 : vector<8x128xf32>
    %277 = math.tanh %276 : vector<8x128xf32>
    %278 = arith.mulf %271, %277 : vector<8x128xf32>
    %c2_i32_107 = arith.constant 2 : i32
    %279 = arith.index_cast %c2_i32_107 : i32 to index
    %c0_108 = arith.constant 0 : index
    %c0_109 = arith.constant 0 : index
    %280 = vector.load %arg12[%279, %c0_108, %c0_109] : memref<8x8x512xf32, #tpu.memory_space<vmem>>, vector<1x8x512xf32>
    %281 = vector.shape_cast %280 : vector<1x8x512xf32> to vector<8x512xf32>
    %c0_110 = arith.constant 0 : index
    %c0_111 = arith.constant 0 : index
    %282 = vector.load %arg5[%c0_110, %c0_111] : memref<128x512xf32, #tpu.memory_space<vmem>>, vector<128x512xf32>
    %cst_112 = arith.constant dense<0.000000e+00> : vector<8x512xf32>
    %283 = tpu.matmul %278, %282, %cst_112 {dimension_numbers = #tpu.dot_dimension_numbers<[1], [0], [0], [1], [0, 0, 1, 1], [], []>} : vector<8x128xf32>, vector<128x512xf32>, vector<8x512xf32> -> vector<8x512xf32>
    %284 = arith.addf %281, %283 : vector<8x512xf32>
    %285 = vector.extract_strided_slice %284 {offsets = [0, 0], sizes = [8, 384], strides = [1, 1]} : vector<8x512xf32> to vector<8x384xf32>
    %286 = arith.negf %285 : vector<8x384xf32>
    %287 = math.exp %286 : vector<8x384xf32>
    %cst_113 = arith.constant 1.000000e+00 : f32
    %288 = vector.broadcast %cst_113 : f32 to vector<8x384xf32>
    %289 = arith.addf %288, %287 : vector<8x384xf32>
    %290 = arith.divf %288, %289 : vector<8x384xf32>
    %291 = vector.extract_strided_slice %290 {offsets = [0, 0], sizes = [8, 128], strides = [1, 1]} : vector<8x384xf32> to vector<8x128xf32>
    %292 = vector.extract_strided_slice %290 {offsets = [0, 128], sizes = [8, 128], strides = [1, 1]} : vector<8x384xf32> to vector<8x128xf32>
    %293 = vector.extract_strided_slice %290 {offsets = [0, 256], sizes = [8, 128], strides = [1, 1]} : vector<8x384xf32> to vector<8x128xf32>
    %294 = vector.extract_strided_slice %284 {offsets = [0, 384], sizes = [8, 128], strides = [1, 1]} : vector<8x512xf32> to vector<8x128xf32>
    %295 = math.tanh %294 : vector<8x128xf32>
    %296 = arith.mulf %292, %276 : vector<8x128xf32>
    %297 = arith.mulf %291, %295 : vector<8x128xf32>
    %298 = arith.addf %296, %297 : vector<8x128xf32>
    %299 = math.tanh %298 : vector<8x128xf32>
    %300 = arith.mulf %293, %299 : vector<8x128xf32>
    %c3_i32_114 = arith.constant 3 : i32
    %301 = arith.index_cast %c3_i32_114 : i32 to index
    %c0_115 = arith.constant 0 : index
    %c0_116 = arith.constant 0 : index
    %302 = vector.load %arg12[%301, %c0_115, %c0_116] : memref<8x8x512xf32, #tpu.memory_space<vmem>>, vector<1x8x512xf32>
    %303 = vector.shape_cast %302 : vector<1x8x512xf32> to vector<8x512xf32>
    %c0_117 = arith.constant 0 : index
    %c0_118 = arith.constant 0 : index
    %304 = vector.load %arg5[%c0_117, %c0_118] : memref<128x512xf32, #tpu.memory_space<vmem>>, vector<128x512xf32>
    %cst_119 = arith.constant dense<0.000000e+00> : vector<8x512xf32>
    %305 = tpu.matmul %300, %304, %cst_119 {dimension_numbers = #tpu.dot_dimension_numbers<[1], [0], [0], [1], [0, 0, 1, 1], [], []>} : vector<8x128xf32>, vector<128x512xf32>, vector<8x512xf32> -> vector<8x512xf32>
    %306 = arith.addf %303, %305 : vector<8x512xf32>
    %307 = vector.extract_strided_slice %306 {offsets = [0, 0], sizes = [8, 384], strides = [1, 1]} : vector<8x512xf32> to vector<8x384xf32>
    %308 = arith.negf %307 : vector<8x384xf32>
    %309 = math.exp %308 : vector<8x384xf32>
    %cst_120 = arith.constant 1.000000e+00 : f32
    %310 = vector.broadcast %cst_120 : f32 to vector<8x384xf32>
    %311 = arith.addf %310, %309 : vector<8x384xf32>
    %312 = arith.divf %310, %311 : vector<8x384xf32>
    %313 = vector.extract_strided_slice %312 {offsets = [0, 0], sizes = [8, 128], strides = [1, 1]} : vector<8x384xf32> to vector<8x128xf32>
    %314 = vector.extract_strided_slice %312 {offsets = [0, 128], sizes = [8, 128], strides = [1, 1]} : vector<8x384xf32> to vector<8x128xf32>
    %315 = vector.extract_strided_slice %312 {offsets = [0, 256], sizes = [8, 128], strides = [1, 1]} : vector<8x384xf32> to vector<8x128xf32>
    %316 = vector.extract_strided_slice %306 {offsets = [0, 384], sizes = [8, 128], strides = [1, 1]} : vector<8x512xf32> to vector<8x128xf32>
    %317 = math.tanh %316 : vector<8x128xf32>
    %318 = arith.mulf %314, %298 : vector<8x128xf32>
    %319 = arith.mulf %313, %317 : vector<8x128xf32>
    %320 = arith.addf %318, %319 : vector<8x128xf32>
    %321 = math.tanh %320 : vector<8x128xf32>
    %322 = arith.mulf %315, %321 : vector<8x128xf32>
    %c4_i32_121 = arith.constant 4 : i32
    %323 = arith.index_cast %c4_i32_121 : i32 to index
    %c0_122 = arith.constant 0 : index
    %c0_123 = arith.constant 0 : index
    %324 = vector.load %arg12[%323, %c0_122, %c0_123] : memref<8x8x512xf32, #tpu.memory_space<vmem>>, vector<1x8x512xf32>
    %325 = vector.shape_cast %324 : vector<1x8x512xf32> to vector<8x512xf32>
    %c0_124 = arith.constant 0 : index
    %c0_125 = arith.constant 0 : index
    %326 = vector.load %arg5[%c0_124, %c0_125] : memref<128x512xf32, #tpu.memory_space<vmem>>, vector<128x512xf32>
    %cst_126 = arith.constant dense<0.000000e+00> : vector<8x512xf32>
    %327 = tpu.matmul %322, %326, %cst_126 {dimension_numbers = #tpu.dot_dimension_numbers<[1], [0], [0], [1], [0, 0, 1, 1], [], []>} : vector<8x128xf32>, vector<128x512xf32>, vector<8x512xf32> -> vector<8x512xf32>
    %328 = arith.addf %325, %327 : vector<8x512xf32>
    %329 = vector.extract_strided_slice %328 {offsets = [0, 0], sizes = [8, 384], strides = [1, 1]} : vector<8x512xf32> to vector<8x384xf32>
    %330 = arith.negf %329 : vector<8x384xf32>
    %331 = math.exp %330 : vector<8x384xf32>
    %cst_127 = arith.constant 1.000000e+00 : f32
    %332 = vector.broadcast %cst_127 : f32 to vector<8x384xf32>
    %333 = arith.addf %332, %331 : vector<8x384xf32>
    %334 = arith.divf %332, %333 : vector<8x384xf32>
    %335 = vector.extract_strided_slice %334 {offsets = [0, 0], sizes = [8, 128], strides = [1, 1]} : vector<8x384xf32> to vector<8x128xf32>
    %336 = vector.extract_strided_slice %334 {offsets = [0, 128], sizes = [8, 128], strides = [1, 1]} : vector<8x384xf32> to vector<8x128xf32>
    %337 = vector.extract_strided_slice %334 {offsets = [0, 256], sizes = [8, 128], strides = [1, 1]} : vector<8x384xf32> to vector<8x128xf32>
    %338 = vector.extract_strided_slice %328 {offsets = [0, 384], sizes = [8, 128], strides = [1, 1]} : vector<8x512xf32> to vector<8x128xf32>
    %339 = math.tanh %338 : vector<8x128xf32>
    %340 = arith.mulf %336, %320 : vector<8x128xf32>
    %341 = arith.mulf %335, %339 : vector<8x128xf32>
    %342 = arith.addf %340, %341 : vector<8x128xf32>
    %343 = math.tanh %342 : vector<8x128xf32>
    %344 = arith.mulf %337, %343 : vector<8x128xf32>
    %c5_i32_128 = arith.constant 5 : i32
    %345 = arith.index_cast %c5_i32_128 : i32 to index
    %c0_129 = arith.constant 0 : index
    %c0_130 = arith.constant 0 : index
    %346 = vector.load %arg12[%345, %c0_129, %c0_130] : memref<8x8x512xf32, #tpu.memory_space<vmem>>, vector<1x8x512xf32>
    %347 = vector.shape_cast %346 : vector<1x8x512xf32> to vector<8x512xf32>
    %c0_131 = arith.constant 0 : index
    %c0_132 = arith.constant 0 : index
    %348 = vector.load %arg5[%c0_131, %c0_132] : memref<128x512xf32, #tpu.memory_space<vmem>>, vector<128x512xf32>
    %cst_133 = arith.constant dense<0.000000e+00> : vector<8x512xf32>
    %349 = tpu.matmul %344, %348, %cst_133 {dimension_numbers = #tpu.dot_dimension_numbers<[1], [0], [0], [1], [0, 0, 1, 1], [], []>} : vector<8x128xf32>, vector<128x512xf32>, vector<8x512xf32> -> vector<8x512xf32>
    %350 = arith.addf %347, %349 : vector<8x512xf32>
    %351 = vector.extract_strided_slice %350 {offsets = [0, 0], sizes = [8, 384], strides = [1, 1]} : vector<8x512xf32> to vector<8x384xf32>
    %352 = arith.negf %351 : vector<8x384xf32>
    %353 = math.exp %352 : vector<8x384xf32>
    %cst_134 = arith.constant 1.000000e+00 : f32
    %354 = vector.broadcast %cst_134 : f32 to vector<8x384xf32>
    %355 = arith.addf %354, %353 : vector<8x384xf32>
    %356 = arith.divf %354, %355 : vector<8x384xf32>
    %357 = vector.extract_strided_slice %356 {offsets = [0, 0], sizes = [8, 128], strides = [1, 1]} : vector<8x384xf32> to vector<8x128xf32>
    %358 = vector.extract_strided_slice %356 {offsets = [0, 128], sizes = [8, 128], strides = [1, 1]} : vector<8x384xf32> to vector<8x128xf32>
    %359 = vector.extract_strided_slice %356 {offsets = [0, 256], sizes = [8, 128], strides = [1, 1]} : vector<8x384xf32> to vector<8x128xf32>
    %360 = vector.extract_strided_slice %350 {offsets = [0, 384], sizes = [8, 128], strides = [1, 1]} : vector<8x512xf32> to vector<8x128xf32>
    %361 = math.tanh %360 : vector<8x128xf32>
    %362 = arith.mulf %358, %342 : vector<8x128xf32>
    %363 = arith.mulf %357, %361 : vector<8x128xf32>
    %364 = arith.addf %362, %363 : vector<8x128xf32>
    %365 = math.tanh %364 : vector<8x128xf32>
    %366 = arith.mulf %359, %365 : vector<8x128xf32>
    %c6_i32_135 = arith.constant 6 : i32
    %367 = arith.index_cast %c6_i32_135 : i32 to index
    %c0_136 = arith.constant 0 : index
    %c0_137 = arith.constant 0 : index
    %368 = vector.load %arg12[%367, %c0_136, %c0_137] : memref<8x8x512xf32, #tpu.memory_space<vmem>>, vector<1x8x512xf32>
    %369 = vector.shape_cast %368 : vector<1x8x512xf32> to vector<8x512xf32>
    %c0_138 = arith.constant 0 : index
    %c0_139 = arith.constant 0 : index
    %370 = vector.load %arg5[%c0_138, %c0_139] : memref<128x512xf32, #tpu.memory_space<vmem>>, vector<128x512xf32>
    %cst_140 = arith.constant dense<0.000000e+00> : vector<8x512xf32>
    %371 = tpu.matmul %366, %370, %cst_140 {dimension_numbers = #tpu.dot_dimension_numbers<[1], [0], [0], [1], [0, 0, 1, 1], [], []>} : vector<8x128xf32>, vector<128x512xf32>, vector<8x512xf32> -> vector<8x512xf32>
    %372 = arith.addf %369, %371 : vector<8x512xf32>
    %373 = vector.extract_strided_slice %372 {offsets = [0, 0], sizes = [8, 384], strides = [1, 1]} : vector<8x512xf32> to vector<8x384xf32>
    %374 = arith.negf %373 : vector<8x384xf32>
    %375 = math.exp %374 : vector<8x384xf32>
    %cst_141 = arith.constant 1.000000e+00 : f32
    %376 = vector.broadcast %cst_141 : f32 to vector<8x384xf32>
    %377 = arith.addf %376, %375 : vector<8x384xf32>
    %378 = arith.divf %376, %377 : vector<8x384xf32>
    %379 = vector.extract_strided_slice %378 {offsets = [0, 0], sizes = [8, 128], strides = [1, 1]} : vector<8x384xf32> to vector<8x128xf32>
    %380 = vector.extract_strided_slice %378 {offsets = [0, 128], sizes = [8, 128], strides = [1, 1]} : vector<8x384xf32> to vector<8x128xf32>
    %381 = vector.extract_strided_slice %378 {offsets = [0, 256], sizes = [8, 128], strides = [1, 1]} : vector<8x384xf32> to vector<8x128xf32>
    %382 = vector.extract_strided_slice %372 {offsets = [0, 384], sizes = [8, 128], strides = [1, 1]} : vector<8x512xf32> to vector<8x128xf32>
    %383 = math.tanh %382 : vector<8x128xf32>
    %384 = arith.mulf %380, %364 : vector<8x128xf32>
    %385 = arith.mulf %379, %383 : vector<8x128xf32>
    %386 = arith.addf %384, %385 : vector<8x128xf32>
    %387 = math.tanh %386 : vector<8x128xf32>
    %388 = arith.mulf %381, %387 : vector<8x128xf32>
    %c7_i32_142 = arith.constant 7 : i32
    %389 = arith.index_cast %c7_i32_142 : i32 to index
    %c0_143 = arith.constant 0 : index
    %c0_144 = arith.constant 0 : index
    %390 = vector.load %arg12[%389, %c0_143, %c0_144] : memref<8x8x512xf32, #tpu.memory_space<vmem>>, vector<1x8x512xf32>
    %391 = vector.shape_cast %390 : vector<1x8x512xf32> to vector<8x512xf32>
    %c0_145 = arith.constant 0 : index
    %c0_146 = arith.constant 0 : index
    %392 = vector.load %arg5[%c0_145, %c0_146] : memref<128x512xf32, #tpu.memory_space<vmem>>, vector<128x512xf32>
    %cst_147 = arith.constant dense<0.000000e+00> : vector<8x512xf32>
    %393 = tpu.matmul %388, %392, %cst_147 {dimension_numbers = #tpu.dot_dimension_numbers<[1], [0], [0], [1], [0, 0, 1, 1], [], []>} : vector<8x128xf32>, vector<128x512xf32>, vector<8x512xf32> -> vector<8x512xf32>
    %394 = arith.addf %391, %393 : vector<8x512xf32>
    %395 = vector.extract_strided_slice %394 {offsets = [0, 0], sizes = [8, 384], strides = [1, 1]} : vector<8x512xf32> to vector<8x384xf32>
    %396 = arith.negf %395 : vector<8x384xf32>
    %397 = math.exp %396 : vector<8x384xf32>
    %cst_148 = arith.constant 1.000000e+00 : f32
    %398 = vector.broadcast %cst_148 : f32 to vector<8x384xf32>
    %399 = arith.addf %398, %397 : vector<8x384xf32>
    %400 = arith.divf %398, %399 : vector<8x384xf32>
    %401 = vector.extract_strided_slice %400 {offsets = [0, 0], sizes = [8, 128], strides = [1, 1]} : vector<8x384xf32> to vector<8x128xf32>
    %402 = vector.extract_strided_slice %400 {offsets = [0, 128], sizes = [8, 128], strides = [1, 1]} : vector<8x384xf32> to vector<8x128xf32>
    %403 = vector.extract_strided_slice %400 {offsets = [0, 256], sizes = [8, 128], strides = [1, 1]} : vector<8x384xf32> to vector<8x128xf32>
    %404 = vector.extract_strided_slice %394 {offsets = [0, 384], sizes = [8, 128], strides = [1, 1]} : vector<8x512xf32> to vector<8x128xf32>
    %405 = math.tanh %404 : vector<8x128xf32>
    %406 = arith.mulf %402, %386 : vector<8x128xf32>
    %407 = arith.mulf %401, %405 : vector<8x128xf32>
    %408 = arith.addf %406, %407 : vector<8x128xf32>
    %409 = math.tanh %408 : vector<8x128xf32>
    %410 = arith.mulf %403, %409 : vector<8x128xf32>
    %c8_i32_149 = arith.constant 8 : i32
    %c1 = arith.constant 1 : index
    %c0_150 = arith.constant 0 : index
    %c0_151 = arith.constant 0 : index
    %411 = vector.load %arg10[%c1, %c0_150, %c0_151] : memref<2x8x128xf32, #tpu.memory_space<vmem>>, vector<1x8x128xf32>
    %412 = vector.shape_cast %411 : vector<1x8x128xf32> to vector<8x128xf32>
    %413 = vector.shape_cast %410 : vector<8x128xf32> to vector<1x8x128xf32>
    tpu.vector_store %arg10[%c1, %c0_150, %c0_151], %413 {strides = array<i32>} : memref<2x8x128xf32, #tpu.memory_space<vmem>>, vector<1x8x128xf32>,
    %c1_152 = arith.constant 1 : index
    %c0_153 = arith.constant 0 : index
    %c0_154 = arith.constant 0 : index
    %414 = vector.load %arg11[%c1_152, %c0_153, %c0_154] : memref<2x8x128xf32, #tpu.memory_space<vmem>>, vector<1x8x128xf32>
    %415 = vector.shape_cast %414 : vector<1x8x128xf32> to vector<8x128xf32>
    %416 = vector.shape_cast %408 : vector<8x128xf32> to vector<1x8x128xf32>
    tpu.vector_store %arg11[%c1_152, %c0_153, %c0_154], %416 {strides = array<i32>} : memref<2x8x128xf32, #tpu.memory_space<vmem>>, vector<1x8x128xf32>,
    %c0_155 = arith.constant 0 : index
    %c0_156 = arith.constant 0 : index
    %417 = vector.load %arg7[%c0_155, %c0_156] : memref<128x128xf32, #tpu.memory_space<vmem>>, vector<128x128xf32>
    %cst_157 = arith.constant dense<0.000000e+00> : vector<8x128xf32>
    %418 = tpu.matmul %410, %417, %cst_157 {dimension_numbers = #tpu.dot_dimension_numbers<[1], [0], [0], [1], [0, 0, 1, 1], [], []>} : vector<8x128xf32>, vector<128x128xf32>, vector<8x128xf32> -> vector<8x128xf32>
    %c0_158 = arith.constant 0 : index
    %c0_159 = arith.constant 0 : index
    %419 = vector.load %arg8[%c0_158, %c0_159] : memref<1x128xf32, #tpu.memory_space<vmem>>, vector<1x128xf32>
    %420 = vector.broadcast %419 : vector<1x128xf32> to vector<8x128xf32>
    %421 = arith.addf %418, %420 : vector<8x128xf32>
    %c0_160 = arith.constant 0 : index
    %c0_161 = arith.constant 0 : index
    %422 = vector.load %arg9[%c0_160, %c0_161] : memref<8x128xf32, #tpu.memory_space<vmem>>, vector<8x128xf32>
    tpu.vector_store %arg9[%c0_160, %c0_161], %421 {strides = array<i32>} : memref<8x128xf32, #tpu.memory_space<vmem>>, vector<8x128xf32>,
    return
  }
}

</mosaic_0001>

<bundles_post_ra>
// kernel: rnn_policy_forward.1
= control target key start
LH: loop header
LB: loop body
LE: loop exit
PB: predicated region body
PF: predicated region fallthrough
CT: control target
= control target key end

     0   :  { %17 = vsyncpa [#allocation5], 0  ;;  %s6907_s0 = inlined_call_operand.vmem [shape: f32[64,128], index: 0, kind: input, shape index: {}]   ;;  %s6908_s1 = inlined_call_operand.hbm [shape: f32[128,512], index: 1, kind: input, shape index: {}]   ;;  %s6909_s2 = inlined_call_operand.hbm [shape: f32[128,512], index: 2, kind: input, shape index: {}]   ;;  %s6910_s3 = inlined_call_operand.vmem [shape: f32[1,512], index: 3, kind: input, shape index: {}]   ;;  %s6911_s4 = inlined_call_operand.hbm [shape: f32[128,512], index: 4, kind: input, shape index: {}]   ;;  %s6912_s5 = inlined_call_operand.hbm [shape: f32[128,512], index: 5, kind: input, shape index: {}]   ;;  %s6913_s6 = inlined_call_operand.vmem [shape: f32[1,512], index: 6, kind: input, shape index: {}]   ;;  %s6914_s7 = inlined_call_operand.hbm [shape: f32[128,128], index: 7, kind: input, shape index: {}]   ;;  %s6915_s8 = inlined_call_operand.vmem [shape: f32[1,128], index: 8, kind: input, shape index: {}]   ;;  %s6916_s9 = inlined_call_operand.vmem [shape: f32[8,128], index: 9, kind: output, shape index: {0}]   ;;  %s6917_s10 = inlined_call_operand.vmem [shape: f32[2,8,128], index: 10, kind: output, shape index: {1}]   ;;  %s6918_s11 = inlined_call_operand.vmem [shape: f32[2,8,128], index: 11, kind: output, shape index: {2}]  }
   0x1   :  { %18 = vsyncpa [#allocation7], 0 }
   0x2   :  { %19 = vsyncpa [#allocation10], 0  ;;  %s4844_s17 = smov [#allocation6]   ;;  %s4845_s19 = smov [#allocation9]  }
   0x3   :  { %s39_s18 = sshll.u32 %s4844_s17, 4  ;;  %s65_s20 = sshll.u32 %s4845_s19, 4  ;;  %s40_s18 = int_to_ptr.vmem [resolvable:$true] %s39_s18  ;;  %s66_s20 = int_to_ptr.vmem [resolvable:$true] %s65_s20 }
   0x4   :  { %s4746_s21 = scalar_lea.vmem %s40_s18, 8192  ;;  %p4751_p1 = scmp.lt.s32.totalorder %s40_s18, %s40_s18 }
   0x5   :  { %p4747_p0 = scmp.ne.s32.totalorder %s40_s18, %s4746_s21  ;;  %p4752_p2 = scmp.lt.s32.totalorder %s4746_s21, %s4746_s21 }
   0x7   :  { %p4753_p3 = por %p4752_p2, %p4751_p1 }
   0x9   :  { %p4754_p4 = pnand %p4753_p3, %p4747_p0 }
   0xb   :  { %4757 = shalt.err (!%p4754_p4)
}
   0xc   :  { %s4846_s22 = smov 512   ;;  %s4847_s23 = smov 32  }
   0xd   :  { %45 = dma.hbm_to_vmem [thread:$0]  %s6909_s2, 8192, %s40_s18, [#allocation7], %s4846_s22, %s4846_s22, %s4847_s23  }
   0xe   :  { %s4766_s26 = scalar_lea.vmem %s66_s20, 8192  ;;  %p4771_p6 = scmp.lt.s32.totalorder %s66_s20, %s66_s20 }
   0xf   :  { %p4767_p5 = scmp.ne.s32.totalorder %s66_s20, %s4766_s26  ;;  %p4772_p7 = scmp.lt.s32.totalorder %s4766_s26, %s4766_s26 }
  0x11   :  { %p4773_p8 = por %p4772_p7, %p4771_p6 }
  0x13   :  { %p4774_p9 = pnand %p4773_p8, %p4767_p5 }
  0x15   :  { %4777 = shalt.err (!%p4774_p9)
}
  0x16   :  { %71 = dma.hbm_to_vmem [thread:$0]  %s6912_s5, 8192, %s66_s20, [#allocation10], %s4846_s22, %s4846_s22, %s4847_s23  }
  0x17   :  { %s4848_s29 = smov [#allocation4]   ;;  %s4849_s12 = smov [#allocation8]  }
  0x18   :  { %s27_s30 = sshll.u32 %s4848_s29, 4  ;;  %s53_s13 = sshll.u32 %s4849_s12, 4  ;;  %s28_s30 = int_to_ptr.vmem [resolvable:$true] %s27_s30  ;;  %s54_s13 = int_to_ptr.vmem [resolvable:$true] %s53_s13 }
  0x19   :  { %s4786_s2 = scalar_lea.vmem %s28_s30, 8192  ;;  %p4791_p11 = scmp.lt.s32.totalorder %s28_s30, %s28_s30 }
  0x1a   :  { %p4787_p10 = scmp.ne.s32.totalorder %s28_s30, %s4786_s2  ;;  %p4792_p12 = scmp.lt.s32.totalorder %s4786_s2, %s4786_s2 }
  0x1c   :  { %p4793_p13 = por %p4792_p12, %p4791_p11 }
  0x1e   :  { %p4794_p0 = pnand %p4793_p13, %p4787_p10 }
  0x20   :  { %4797 = shalt.err (!%p4794_p0)
}
  0x21   :  { %33 = dma.hbm_to_vmem [thread:$0]  %s6908_s1, 8192, %s28_s30, [#allocation5], %s4846_s22, %s4846_s22, %s4847_s23  }
  0x22   :  { %s4806_s5 = scalar_lea.vmem %s54_s13, 8192  ;;  %p4811_p2 = scmp.lt.s32.totalorder %s54_s13, %s54_s13 }
  0x23   :  { %p4807_p1 = scmp.ne.s32.totalorder %s54_s13, %s4806_s5  ;;  %p4812_p3 = scmp.lt.s32.totalorder %s4806_s5, %s4806_s5 }
  0x25   :  { %p4813_p4 = por %p4812_p3, %p4811_p2 }
  0x27   :  { %p4814_p5 = pnand %p4813_p4, %p4807_p1 }
  0x29   :  { %4817 = shalt.err (!%p4814_p5)
}
  0x2a   :  { %59 = dma.hbm_to_vmem [thread:$0]  %s6911_s4, 8192, %s54_s13, [#allocation7], %s4846_s22, %s4846_s22, %s4847_s23  }
  0x2b   :  { %s4850_s18 = smov [#allocation11]  }
  0x2c   :  { %s79_s19 = sshll.u32 %s4850_s18, 4  ;;  %s80_s19 = int_to_ptr.vmem [resolvable:$true] %s79_s19 }
  0x2d   :  { %s4826_s20 = scalar_lea.vmem %s80_s19, 2048  ;;  %p4831_p7 = scmp.lt.s32.totalorder %s80_s19, %s80_s19 }
  0x2e   :  { %p4827_p6 = scmp.ne.s32.totalorder %s80_s19, %s4826_s20  ;;  %p4832_p8 = scmp.lt.s32.totalorder %s4826_s20, %s4826_s20 }
  0x30   :  { %p4833_p9 = por %p4832_p8, %p4831_p7 }
  0x32   :  { %p4834_p10 = pnand %p4833_p9, %p4827_p6 }
  0x34   :  { %4837 = shalt.err (!%p4834_p10)
}
  0x35   :  { %s4851_s1 = smov 128   ;;  %s4852_s21 = smov 8  }
  0x36   :  { %85 = dma.hbm_to_vmem [thread:$0]  %s6914_s7, 2048, %s80_s19, [#allocation10], %s4851_s1, %s4851_s1, %s4852_s21  }
  0x37   :  { %4838 = dma.done.wait [#allocation5], 8192  }
  0x38   :  { %4839 = vsyncadd [#allocation5], 4294959104 }
  0x39   :  { %4840 = dma.done.wait [#allocation7], 16384  }
  0x3a   :  { %4841 = vsyncadd [#allocation7], 4294950912 }
  0x3b   :  { %4842 = dma.done.wait [#allocation10], 10240  }
  0x3c   :  { %4843 = vsyncadd [#allocation10], 4294957056  ;;  %v6919_v0 = vmov 0.0   ;;  %v172_v1 = vld [vmem:[#allocation4 + $0x1e8] sm:$0xff]  ;;  %v174_v2 = vld [vmem:[#allocation4 + $0x1f8] sm:$0xff]  ;;  %vm4854_vm0 = vmmov 0  }
  0x3d   :  { %261 = vmatprep.mubr.f32.mxu0 %v6919_v0  ;;  %374 = vmatprep.mubr.f32.mxu1 %v6919_v0  ;;  %v171_v3 = vld [vmem:[#allocation4 + $0x1e0] sm:$0xff]  ;;  %v173_v4 = vld [vmem:[#allocation4 + $0x1f0] sm:$0xff]  ;;  %v168_v5 = vld [vmem:[#allocation4 + $0x1c8] sm:$0xff] }
  0x3e   :  { %197 = vmatprep.subr.mxu0 %v172_v1  ;;  %310 = vmatprep.subr.mxu1 %v174_v2  ;;  %v170_v6 = vld [vmem:[#allocation4 + $0x1d8] sm:$0xff]  ;;  %v167_v7 = vld [vmem:[#allocation4 + $0x1c0] sm:$0xff]  ;;  %v169_v8 = vld [vmem:[#allocation4 + $0x1d0] sm:$0xff] }
  0x3f   :  { %198 = vmatpush1.msra.mxu0 %v171_v3  ;;  %311 = vmatpush1.msra.mxu1 %v173_v4  ;;  %v164_v9 = vld [vmem:[#allocation4 + $0x1a8] sm:$0xff]  ;;  %v166_v10 = vld [vmem:[#allocation4 + $0x1b8] sm:$0xff]  ;;  %v163_v11 = vld [vmem:[#allocation4 + $0x1a0] sm:$0xff] }
  0x40   :  { %199 = vmatprep.subr.mxu0 %v168_v5  ;;  %312 = vmatprep.subr.mxu1 %v170_v6  ;;  %v165_v12 = vld [vmem:[#allocation4 + $0x1b0] sm:$0xff]  ;;  %v160_v13 = vld [vmem:[#allocation4 + $0x188] sm:$0xff]  ;;  %v162_v14 = vld [vmem:[#allocation4 + $0x198] sm:$0xff] }
  0x41   :  { %200 = vmatpush1.msra.mxu0 %v167_v7  ;;  %313 = vmatpush1.msra.mxu1 %v169_v8  ;;  %v159_v15 = vld [vmem:[#allocation4 + $0x180] sm:$0xff]  ;;  %v161_v16 = vld [vmem:[#allocation4 + $0x190] sm:$0xff]  ;;  %v156_v17 = vld [vmem:[#allocation4 + $0x168] sm:$0xff] }
  0x42   :  { %201 = vmatprep.subr.mxu0 %v164_v9  ;;  %314 = vmatprep.subr.mxu1 %v166_v10  ;;  %v158_v18 = vld [vmem:[#allocation4 + $0x178] sm:$0xff]  ;;  %v155_v19 = vld [vmem:[#allocation4 + $0x160] sm:$0xff]  ;;  %v157_v20 = vld [vmem:[#allocation4 + $0x170] sm:$0xff] }
  0x43   :  { %202 = vmatpush1.msra.mxu0 %v163_v11  ;;  %315 = vmatpush1.msra.mxu1 %v165_v12  ;;  %v152_v21 = vld [vmem:[#allocation4 + $0x148] sm:$0xff]  ;;  %v154_v22 = vld [vmem:[#allocation4 + $0x158] sm:$0xff]  ;;  %v151_v23 = vld [vmem:[#allocation4 + $0x140] sm:$0xff] }
  0x44   :  { %203 = vmatprep.subr.mxu0 %v160_v13  ;;  %316 = vmatprep.subr.mxu1 %v162_v14  ;;  %v153_v24 = vld [vmem:[#allocation4 + $0x150] sm:$0xff]  ;;  %v148_v25 = vld [vmem:[#allocation4 + $0x128] sm:$0xff]  ;;  %v150_v26 = vld [vmem:[#allocation4 + $0x138] sm:$0xff] }
  0x45   :  { %204 = vmatpush1.msra.mxu0 %v159_v15  ;;  %317 = vmatpush1.msra.mxu1 %v161_v16  ;;  %v147_v27 = vld [vmem:[#allocation4 + $0x120] sm:$0xff]  ;;  %v149_v28 = vld [vmem:[#allocation4 + $0x130] sm:$0xff]  ;;  %v144_v29 = vld [vmem:[#allocation4 + $0x108] sm:$0xff] }
  0x46   :  { %205 = vmatprep.subr.mxu0 %v156_v17  ;;  %318 = vmatprep.subr.mxu1 %v158_v18  ;;  %v146_v30 = vld [vmem:[#allocation4 + $0x118] sm:$0xff]  ;;  %v143_v31 = vld [vmem:[#allocation4 + $0x100] sm:$0xff]  ;;  %v145_v32 = vld [vmem:[#allocation4 + $0x110] sm:$0xff] }
  0x47   :  { %206 = vmatpush1.msra.mxu0 %v155_v19  ;;  %319 = vmatpush1.msra.mxu1 %v157_v20  ;;  %v140_v33 = vld [vmem:[#allocation4 + $0xe8] sm:$0xff]  ;;  %v142_v34 = vld [vmem:[#allocation4 + $0xf8] sm:$0xff]  ;;  %v139_v35 = vld [vmem:[#allocation4 + $0xe0] sm:$0xff] }
  0x48   :  { %207 = vmatprep.subr.mxu0 %v152_v21  ;;  %320 = vmatprep.subr.mxu1 %v154_v22  ;;  %v141_v36 = vld [vmem:[#allocation4 + $0xf0] sm:$0xff]  ;;  %v136_v37 = vld [vmem:[#allocation4 + $0xc8] sm:$0xff]  ;;  %v138_v38 = vld [vmem:[#allocation4 + $0xd8] sm:$0xff] }
  0x49   :  { %208 = vmatpush1.msra.mxu0 %v151_v23  ;;  %321 = vmatpush1.msra.mxu1 %v153_v24  ;;  %v135_v39 = vld [vmem:[#allocation4 + $0xc0] sm:$0xff]  ;;  %v137_v40 = vld [vmem:[#allocation4 + $0xd0] sm:$0xff]  ;;  %v132_v41 = vld [vmem:[#allocation4 + $0xa8] sm:$0xff] }
  0x4a   :  { %209 = vmatprep.subr.mxu0 %v148_v25  ;;  %322 = vmatprep.subr.mxu1 %v150_v26  ;;  %v134_v42 = vld [vmem:[#allocation4 + $0xb8] sm:$0xff]  ;;  %v131_v43 = vld [vmem:[#allocation4 + $0xa0] sm:$0xff]  ;;  %v133_v44 = vld [vmem:[#allocation4 + $0xb0] sm:$0xff] }
  0x4b   :  { %210 = vmatpush1.msra.mxu0 %v147_v27  ;;  %323 = vmatpush1.msra.mxu1 %v149_v28  ;;  %v128_v45 = vld [vmem:[#allocation4 + $0x88] sm:$0xff]  ;;  %v130_v46 = vld [vmem:[#allocation4 + $0x98] sm:$0xff]  ;;  %v127_v47 = vld [vmem:[#allocation4 + $0x80] sm:$0xff] }
  0x4c   :  { %211 = vmatprep.subr.mxu0 %v144_v29  ;;  %324 = vmatprep.subr.mxu1 %v146_v30  ;;  %v129_v48 = vld [vmem:[#allocation4 + $0x90] sm:$0xff]  ;;  %v124_v49 = vld [vmem:[#allocation4 + $0x68] sm:$0xff]  ;;  %v126_v50 = vld [vmem:[#allocation4 + $0x78] sm:$0xff] }
  0x4d   :  { %212 = vmatpush1.msra.mxu0 %v143_v31  ;;  %325 = vmatpush1.msra.mxu1 %v145_v32  ;;  %v123_v51 = vld [vmem:[#allocation4 + $0x60] sm:$0xff]  ;;  %v125_v52 = vld [vmem:[#allocation4 + $0x70] sm:$0xff]  ;;  %v120_v53 = vld [vmem:[#allocation4 + $0x48] sm:$0xff] }
  0x4e   :  { %213 = vmatprep.subr.mxu0 %v140_v33  ;;  %326 = vmatprep.subr.mxu1 %v142_v34  ;;  %v122_v54 = vld [vmem:[#allocation4 + $0x58] sm:$0xff]  ;;  %v119_v55 = vld [vmem:[#allocation4 + $0x40] sm:$0xff]  ;;  %v121_v56 = vld [vmem:[#allocation4 + $0x50] sm:$0xff] }
  0x4f   :  { %214 = vmatpush1.msra.mxu0 %v139_v35  ;;  %327 = vmatpush1.msra.mxu1 %v141_v36  ;;  %v116_v57 = vld [vmem:[#allocation4 + $0x28] sm:$0xff]  ;;  %v118_v58 = vld [vmem:[#allocation4 + $0x38] sm:$0xff]  ;;  %v115_v59 = vld [vmem:[#allocation4 + $0x20] sm:$0xff] }
  0x50   :  { %215 = vmatprep.subr.mxu0 %v136_v37  ;;  %328 = vmatprep.subr.mxu1 %v138_v38  ;;  %v117_v60 = vld [vmem:[#allocation4 + $0x30] sm:$0xff]  ;;  %v112_v61 = vld [vmem:[#allocation4 + $0x8] sm:$0xff]  ;;  %v114_v62 = vld [vmem:[#allocation4 + $0x18] sm:$0xff] }
  0x51   :  { %216 = vmatpush1.msra.mxu0 %v135_v39  ;;  %329 = vmatpush1.msra.mxu1 %v137_v40  ;;  %v111_v63 = vld [vmem:[#allocation4] sm:$0xff]  ;;  %v113_v1 = vld [vmem:[#allocation4 + $0x10] sm:$0xff]  ;;  %v4947_v3 = vld [vmem:[#allocation6 + $0x1e8] sm:$0xff] }
  0x52   :  { %217 = vmatprep.subr.mxu0 %v132_v41  ;;  %330 = vmatprep.subr.mxu1 %v134_v42  ;;  %v103_v2 = vld [vmem:[%s6907_s0] sm:$0xff]  ;;  %v4949_v4 = vld [vmem:[#allocation6 + $0x1f8] sm:$0xff]  ;;  %v4953_v6 = vld [vmem:[#allocation6 + $0x1f0] sm:$0xff] }
  0x53   :  { %218 = vmatpush1.msra.mxu0 %v131_v43  ;;  %331 = vmatpush1.msra.mxu1 %v133_v44  ;;  %v4951_v5 = vld [vmem:[#allocation6 + $0x1e0] sm:$0xff]  ;;  %v4955_v7 = vld [vmem:[#allocation6 + $0x1c8] sm:$0xff]  ;;  %v4957_v8 = vld [vmem:[#allocation6 + $0x1d8] sm:$0xff] }
  0x54   :  { %219 = vmatprep.subr.mxu0 %v128_v45  ;;  %332 = vmatprep.subr.mxu1 %v130_v46  ;;  %v4963_v9 = vld [vmem:[#allocation6 + $0x1c0] sm:$0xff]  ;;  %v4965_v10 = vld [vmem:[#allocation6 + $0x1d0] sm:$0xff]  ;;  %v104_v11 = vld [vmem:[%s6907_s0 + $0x8] sm:$0xff] }
  0x55   :  { %220 = vmatpush1.msra.mxu0 %v127_v47  ;;  %333 = vmatpush1.msra.mxu1 %v129_v48  ;;  %v4974_v12 = vld [vmem:[#allocation6 + $0x1a8] sm:$0xff]  ;;  %v4976_v13 = vld [vmem:[#allocation6 + $0x1b8] sm:$0xff]  ;;  %v4980_v14 = vld [vmem:[#allocation6 + $0x1a0] sm:$0xff] }
  0x56   :  { %221 = vmatprep.subr.mxu0 %v124_v49  ;;  %334 = vmatprep.subr.mxu1 %v126_v50  ;;  %v4982_v15 = vld [vmem:[#allocation6 + $0x1b0] sm:$0xff]  ;;  %v4984_v16 = vld [vmem:[#allocation6 + $0x188] sm:$0xff]  ;;  %v4986_v17 = vld [vmem:[#allocation6 + $0x198] sm:$0xff] }
  0x57   :  { %222 = vmatpush1.msra.mxu0 %v123_v51  ;;  %335 = vmatpush1.msra.mxu1 %v125_v52  ;;  %v4992_v18 = vld [vmem:[#allocation6 + $0x180] sm:$0xff]  ;;  %v4994_v19 = vld [vmem:[#allocation6 + $0x190] sm:$0xff]  ;;  %v5003_v21 = vld [vmem:[#allocation6 + $0x168] sm:$0xff] }
  0x58   :  { %223 = vmatprep.subr.mxu0 %v120_v53  ;;  %336 = vmatprep.subr.mxu1 %v122_v54  ;;  %v105_v20 = vld [vmem:[%s6907_s0 + $0x10] sm:$0xff]  ;;  %v5005_v22 = vld [vmem:[#allocation6 + $0x178] sm:$0xff]  ;;  %v5009_v23 = vld [vmem:[#allocation6 + $0x160] sm:$0xff] }
  0x59   :  { %224 = vmatpush1.msra.mxu0 %v119_v55  ;;  %337 = vmatpush1.msra.mxu1 %v121_v56  ;;  %v5011_v24 = vld [vmem:[#allocation6 + $0x170] sm:$0xff]  ;;  %v5013_v25 = vld [vmem:[#allocation6 + $0x148] sm:$0xff]  ;;  %v5015_v26 = vld [vmem:[#allocation6 + $0x158] sm:$0xff] }
  0x5a   :  { %225 = vmatprep.subr.mxu0 %v116_v57  ;;  %338 = vmatprep.subr.mxu1 %v118_v58  ;;  %v5021_v27 = vld [vmem:[#allocation6 + $0x140] sm:$0xff]  ;;  %v5023_v28 = vld [vmem:[#allocation6 + $0x150] sm:$0xff]  ;;  %v106_v29 = vld [vmem:[%s6907_s0 + $0x18] sm:$0xff] }
  0x5b   :  { %226 = vmatpush1.msra.mxu0 %v115_v59  ;;  %339 = vmatpush1.msra.mxu1 %v117_v60  ;;  %v5032_v30 = vld [vmem:[#allocation6 + $0x128] sm:$0xff]  ;;  %v5034_v31 = vld [vmem:[#allocation6 + $0x138] sm:$0xff]  ;;  %v5038_v32 = vld [vmem:[#allocation6 + $0x120] sm:$0xff] }
  0x5c   :  { %227 = vmatprep.subr.mxu0 %v112_v61  ;;  %340 = vmatprep.subr.mxu1 %v114_v62  ;;  %v5040_v33 = vld [vmem:[#allocation6 + $0x130] sm:$0xff]  ;;  %v5042_v34 = vld [vmem:[#allocation6 + $0x108] sm:$0xff]  ;;  %v5044_v35 = vld [vmem:[#allocation6 + $0x118] sm:$0xff] }
  0x5d   :  { %228 = vmatpush1.msra.mxu0 %v111_v63  ;;  %341 = vmatpush1.msra.mxu1 %v113_v1  ;;  %v5050_v36 = vld [vmem:[#allocation6 + $0x100] sm:$0xff]  ;;  %v5052_v37 = vld [vmem:[#allocation6 + $0x110] sm:$0xff]  ;;  %v5061_v39 = vld [vmem:[#allocation6 + $0xe8] sm:$0xff] }
  0x5e   :  { %262 = vmatmul.mubr.f32.vlgmr.msra.gmra.mxu0 %v103_v2  ;;  %375 = vmatmul.mubr.f32.vlgmr.msra.gmra.mxu1 %v103_v2  ;;  %v107_v38 = vld [vmem:[%s6907_s0 + $0x20] sm:$0xff]  ;;  %v5063_v40 = vld [vmem:[#allocation6 + $0xf8] sm:$0xff]  ;;  %v5069_v42 = vld [vmem:[#allocation6 + $0xf0] sm:$0xff] }
  0x5f   :  { %523 = vmatprep.subr.mxu0 %v4947_v3  ;;  %594 = vmatprep.subr.mxu1 %v4949_v4  ;;  %v5067_v41 = vld [vmem:[#allocation6 + $0xe0] sm:$0xff]  ;;  %v5071_v43 = vld [vmem:[#allocation6 + $0xc8] sm:$0xff]  ;;  %v5073_v44 = vld [vmem:[#allocation6 + $0xd8] sm:$0xff] }
  0x60   :  { %524 = vmatpush1.msra.mxu0 %v4951_v5  ;;  %595 = vmatpush1.msra.mxu1 %v4953_v6  ;;  %v5079_v45 = vld [vmem:[#allocation6 + $0xc0] sm:$0xff]  ;;  %v5081_v46 = vld [vmem:[#allocation6 + $0xd0] sm:$0xff]  ;;  %v108_v47 = vld [vmem:[%s6907_s0 + $0x28] sm:$0xff] }
  0x61   :  { %525 = vmatprep.subr.mxu0 %v4955_v7  ;;  %596 = vmatprep.subr.mxu1 %v4957_v8  ;;  %v5090_v48 = vld [vmem:[#allocation6 + $0xa8] sm:$0xff]  ;;  %v5092_v49 = vld [vmem:[#allocation6 + $0xb8] sm:$0xff]  ;;  %v5096_v50 = vld [vmem:[#allocation6 + $0xa0] sm:$0xff] }
  0x62   :  { %267 = vmatprep.mubr.f32.mxu0 %v6919_v0  ;;  %380 = vmatprep.mubr.f32.mxu1 %v6919_v0  ;;  %v5098_v51 = vld [vmem:[#allocation6 + $0xb0] sm:$0xff]  ;;  %v5100_v52 = vld [vmem:[#allocation6 + $0x88] sm:$0xff]  ;;  %v5102_v53 = vld [vmem:[#allocation6 + $0x98] sm:$0xff] }
  0x63   :  { %526 = vmatpush1.msra.mxu0 %v4963_v9  ;;  %597 = vmatpush1.msra.mxu1 %v4965_v10  ;;  %7099 = vst [vmem:[#allocation15_spill] sm:$0xff] %v5098_v51  ;;  %7100 = vst [vmem:[#allocation16_spill] sm:$0xff] %v5100_v52  ;;  %v5108_v54 = vld [vmem:[#allocation6 + $0x80] sm:$0xff]  ;;  %v5110_v55 = vld [vmem:[#allocation6 + $0x90] sm:$0xff] }
  0x64   :  { %268 = vmatmul.mubr.f32.gmra.mxu0 %v104_v11  ;;  %381 = vmatmul.mubr.f32.gmra.mxu1 %v104_v11  ;;  %7101 = vst [vmem:[#allocation17_spill] sm:$0xff] %v5102_v53  ;;  %7102 = vst [vmem:[#allocation18_spill] sm:$0xff] %v5108_v54  ;;  %v109_v56 = vld [vmem:[%s6907_s0 + $0x30] sm:$0xff]  ;;  %v5119_v57 = vld [vmem:[#allocation6 + $0x68] sm:$0xff] }
  0x65   :  { %527 = vmatprep.subr.mxu0 %v4974_v12  ;;  %598 = vmatprep.subr.mxu1 %v4976_v13  ;;  %7103 = vst [vmem:[#allocation19_spill] sm:$0xff] %v5110_v55  ;;  %7104 = vst [vmem:[#allocation20_spill] sm:$0xff] %v5119_v57  ;;  %v5121_v58 = vld [vmem:[#allocation6 + $0x78] sm:$0xff]  ;;  %v5125_v59 = vld [vmem:[#allocation6 + $0x60] sm:$0xff] }
  0x66   :  { %528 = vmatpush1.msra.mxu0 %v4980_v14  ;;  %599 = vmatpush1.msra.mxu1 %v4982_v15  ;;  %7105 = vst [vmem:[#allocation21_spill] sm:$0xff] %v5121_v58  ;;  %7106 = vst [vmem:[#allocation22_spill] sm:$0xff] %v5125_v59  ;;  %v5127_v60 = vld [vmem:[#allocation6 + $0x70] sm:$0xff]  ;;  %v5129_v61 = vld [vmem:[#allocation6 + $0x48] sm:$0xff] }
  0x67   :  { %529 = vmatprep.subr.mxu0 %v4984_v16  ;;  %600 = vmatprep.subr.mxu1 %v4986_v17  ;;  %7107 = vst [vmem:[#allocation23_spill] sm:$0xff] %v5127_v60  ;;  %7108 = vst [vmem:[#allocation24_spill] sm:$0xff] %v5129_v61  ;;  %v5131_v62 = vld [vmem:[#allocation6 + $0x58] sm:$0xff]  ;;  %v5137_v63 = vld [vmem:[#allocation6 + $0x40] sm:$0xff] }
  0x68   :  { %273 = vmatprep.mubr.f32.mxu0 %v6919_v0  ;;  %386 = vmatprep.mubr.f32.mxu1 %v6919_v0  ;;  %7109 = vst [vmem:[#allocation25_spill] sm:$0xff] %v5131_v62  ;;  %7110 = vst [vmem:[#allocation26_spill] sm:$0xff] %v5137_v63  ;;  %v5139_v1 = vld [vmem:[#allocation6 + $0x50] sm:$0xff]  ;;  %v110_v2 = vld [vmem:[%s6907_s0 + $0x38] sm:$0xff] }
  0x69   :  { %530 = vmatpush1.msra.mxu0 %v4992_v18  ;;  %601 = vmatpush1.msra.mxu1 %v4994_v19  ;;  %7111 = vst [vmem:[#allocation27_spill] sm:$0xff] %v5139_v1  ;;  %v5148_v11 = vld [vmem:[#allocation6 + $0x28] sm:$0xff] }
  0x6a   :  { %274 = vmatmul.mubr.f32.gmra.mxu0 %v105_v20  ;;  %387 = vmatmul.mubr.f32.gmra.mxu1 %v105_v20  ;;  %7112 = vst [vmem:[#allocation28_spill] sm:$0xff] %v5148_v11  ;;  %v5150_v20 = vld [vmem:[#allocation6 + $0x38] sm:$0xff] }
  0x6b   :  { %531 = vmatprep.subr.mxu0 %v5003_v21  ;;  %602 = vmatprep.subr.mxu1 %v5005_v22  ;;  %7113 = vst [vmem:[#allocation29_spill] sm:$0xff] %v5150_v20 }
  0x6c   :  { %532 = vmatpush1.msra.mxu0 %v5009_v23  ;;  %603 = vmatpush1.msra.mxu1 %v5011_v24 }
  0x6d   :  { %533 = vmatprep.subr.mxu0 %v5013_v25  ;;  %604 = vmatprep.subr.mxu1 %v5015_v26 }
  0x6e   :  { %279 = vmatprep.mubr.f32.mxu0 %v6919_v0  ;;  %392 = vmatprep.mubr.f32.mxu1 %v6919_v0 }
  0x6f   :  { %534 = vmatpush1.msra.mxu0 %v5021_v27  ;;  %605 = vmatpush1.msra.mxu1 %v5023_v28 }
  0x70   :  { %280 = vmatmul.mubr.f32.gmra.mxu0 %v106_v29  ;;  %393 = vmatmul.mubr.f32.gmra.mxu1 %v106_v29  ;;  %v5154_v29 = vld [vmem:[#allocation6 + $0x20] sm:$0xff] }
  0x71   :  { %535 = vmatprep.subr.mxu0 %v5032_v30  ;;  %606 = vmatprep.subr.mxu1 %v5034_v31  ;;  %7114 = vst [vmem:[#allocation30_spill] sm:$0xff] %v5154_v29 }
  0x72   :  { %536 = vmatpush1.msra.mxu0 %v5038_v32  ;;  %607 = vmatpush1.msra.mxu1 %v5040_v33 }
  0x73   :  { %537 = vmatprep.subr.mxu0 %v5042_v34  ;;  %608 = vmatprep.subr.mxu1 %v5044_v35 }
  0x74   :  { %285 = vmatprep.mubr.f32.mxu0 %v6919_v0  ;;  %398 = vmatprep.mubr.f32.mxu1 %v6919_v0 }
  0x75   :  { %538 = vmatpush1.msra.mxu0 %v5050_v36  ;;  %609 = vmatpush1.msra.mxu1 %v5052_v37 }
  0x76   :  { %286 = vmatmul.mubr.f32.gmra.mxu0 %v107_v38  ;;  %399 = vmatmul.mubr.f32.gmra.mxu1 %v107_v38  ;;  %v5156_v38 = vld [vmem:[#allocation6 + $0x30] sm:$0xff] }
  0x77   :  { %539 = vmatprep.subr.mxu0 %v5061_v39  ;;  %610 = vmatprep.subr.mxu1 %v5063_v40  ;;  %7115 = vst [vmem:[#allocation31_spill] sm:$0xff] %v5156_v38 }
  0x78   :  { %540 = vmatpush1.msra.mxu0 %v5067_v41  ;;  %611 = vmatpush1.msra.mxu1 %v5069_v42 }
  0x79   :  { %541 = vmatprep.subr.mxu0 %v5071_v43  ;;  %612 = vmatprep.subr.mxu1 %v5073_v44 }
  0x7a   :  { %291 = vmatprep.mubr.f32.mxu0 %v6919_v0  ;;  %404 = vmatprep.mubr.f32.mxu1 %v6919_v0 }
  0x7b   :  { %542 = vmatpush1.msra.mxu0 %v5079_v45  ;;  %613 = vmatpush1.msra.mxu1 %v5081_v46 }
  0x7c   :  { %292 = vmatmul.mubr.f32.gmra.mxu0 %v108_v47  ;;  %405 = vmatmul.mubr.f32.gmra.mxu1 %v108_v47  ;;  %v5158_v47 = vld [vmem:[#allocation6 + $0x8] sm:$0xff] }
  0x7d   :  { %543 = vmatprep.subr.mxu0 %v5090_v48  ;;  %614 = vmatprep.subr.mxu1 %v5092_v49  ;;  %7116 = vst [vmem:[#allocation32_spill] sm:$0xff] %v5158_v47 }
  0x7e   :  { %544 = vmatpush1.msra.mxu0 %v5096_v50  ;;  %615 = vmatpush1.msra.mxu1 %v5098_v51 }
  0x7f   :  { %545 = vmatprep.subr.mxu0 %v5100_v52  ;;  %616 = vmatprep.subr.mxu1 %v5102_v53 }
  0x80   :  { %297 = vmatprep.mubr.f32.mxu0 %v6919_v0  ;;  %410 = vmatprep.mubr.f32.mxu1 %v6919_v0 }
  0x81   :  { %546 = vmatpush1.msra.mxu0 %v5108_v54  ;;  %617 = vmatpush1.msra.mxu1 %v5110_v55 }
  0x82   :  { %298 = vmatmul.mubr.f32.gmra.mxu0 %v109_v56  ;;  %411 = vmatmul.mubr.f32.gmra.mxu1 %v109_v56  ;;  %v5160_v56 = vld [vmem:[#allocation6 + $0x18] sm:$0xff] }
  0x83   :  { %547 = vmatprep.subr.mxu0 %v5119_v57  ;;  %618 = vmatprep.subr.mxu1 %v5121_v58  ;;  %7117 = vst [vmem:[#allocation33_spill] sm:$0xff] %v5160_v56 }
  0x84   :  { %548 = vmatpush1.msra.mxu0 %v5125_v59  ;;  %619 = vmatpush1.msra.mxu1 %v5127_v60 }
  0x85   :  { %549 = vmatprep.subr.mxu0 %v5129_v61  ;;  %620 = vmatprep.subr.mxu1 %v5131_v62 }
  0x86   :  { %303 = vmatprep.mubr.f32.mxu0 %v6919_v0  ;;  %416 = vmatprep.mubr.f32.mxu1 %v6919_v0  ;;  %v5164_v0 = vld [vmem:[#allocation6] sm:$0xff] }
  0x87   :  { %550 = vmatpush1.msra.mxu0 %v5137_v63  ;;  %621 = vmatpush1.msra.mxu1 %v5139_v1  ;;  %7118 = vst [vmem:[#allocation34_spill] sm:$0xff] %v5164_v0  ;;  %v5168_v1 = vld [vmem:[#allocation6 + $0x10] sm:$0xff] }
  0x88   :  { %304 = vmatmul.mubr.f32.gmra.mxu0 %v110_v2  ;;  %417 = vmatmul.mubr.f32.gmra.mxu1 %v110_v2  ;;  %7119 = vst [vmem:[#allocation35_spill] sm:$0xff] %v5168_v1  ;;  %v7120_v2 = vmov 0.0  }
  0x89   :  { %551 = vmatprep.subr.mxu0 %v5148_v11  ;;  %622 = vmatprep.subr.mxu1 %v5150_v20 }
  0x8a   :  { %552 = vmatpush1.msra.mxu0 %v5154_v29  ;;  %623 = vmatpush1.msra.mxu1 %v5156_v38 }
  0x8b   :  { %553 = vmatprep.subr.mxu0 %v5158_v47  ;;  %624 = vmatprep.subr.mxu1 %v5160_v56 }
  0x8c   :  { %554 = vmatpush1.msra.mxu0 %v5164_v0  ;;  %587 = vmatprep.mubr.f32.mxu0 %v7120_v2 }
  0x8d   :  { %625 = vmatpush1.msra.mxu1 %v5168_v1  ;;  %658 = vmatprep.mubr.f32.mxu1 %v7120_v2 }
  0x8e   :  { %588 = vmatmul.mubr.f32.vlgmr.msra.gmra.mxu0 %v7120_v2  ;;  %659 = vmatmul.mubr.f32.vlgmr.msra.gmra.mxu1 %v7120_v2 }
  0x8f   :  { %763 = vmatprep.subr.mxu0 %v4947_v3  ;;  %834 = vmatprep.subr.mxu1 %v4949_v4 }
  0x90   :  { %764 = vmatpush1.msra.mxu0 %v4951_v5  ;;  %835 = vmatpush1.msra.mxu1 %v4953_v6 }
  0x91   :  { %765 = vmatprep.subr.mxu0 %v4955_v7  ;;  %836 = vmatprep.subr.mxu1 %v4957_v8 }
  0x92   :  { %766 = vmatpush1.msra.mxu0 %v4963_v9  ;;  %837 = vmatpush1.msra.mxu1 %v4965_v10 }
  0x93   :  { %767 = vmatprep.subr.mxu0 %v4974_v12  ;;  %838 = vmatprep.subr.mxu1 %v4976_v13 }
  0x94   :  { %768 = vmatpush1.msra.mxu0 %v4980_v14  ;;  %839 = vmatpush1.msra.mxu1 %v4982_v15 }
  0x95   :  { %769 = vmatprep.subr.mxu0 %v4984_v16  ;;  %840 = vmatprep.subr.mxu1 %v4986_v17 }
  0x96   :  { %770 = vmatpush1.msra.mxu0 %v4992_v18  ;;  %841 = vmatpush1.msra.mxu1 %v4994_v19 }
  0x97   :  { %771 = vmatprep.subr.mxu0 %v5003_v21  ;;  %842 = vmatprep.subr.mxu1 %v5005_v22 }
  0x98   :  { %772 = vmatpush1.msra.mxu0 %v5009_v23  ;;  %843 = vmatpush1.msra.mxu1 %v5011_v24 }
  0x99   :  { %773 = vmatprep.subr.mxu0 %v5013_v25  ;;  %844 = vmatprep.subr.mxu1 %v5015_v26 }
  0x9a   :  { %774 = vmatpush1.msra.mxu0 %v5021_v27  ;;  %845 = vmatpush1.msra.mxu1 %v5023_v28 }
  0x9b   :  { %775 = vmatprep.subr.mxu0 %v5032_v30  ;;  %846 = vmatprep.subr.mxu1 %v5034_v31 }
  0x9c   :  { %776 = vmatpush1.msra.mxu0 %v5038_v32  ;;  %847 = vmatpush1.msra.mxu1 %v5040_v33 }
  0x9d   :  { %777 = vmatprep.subr.mxu0 %v5042_v34  ;;  %848 = vmatprep.subr.mxu1 %v5044_v35 }
  0x9e   :  { %778 = vmatpush1.msra.mxu0 %v5050_v36  ;;  %849 = vmatpush1.msra.mxu1 %v5052_v37 }
  0x9f   :  { %779 = vmatprep.subr.mxu0 %v5061_v39  ;;  %850 = vmatprep.subr.mxu1 %v5063_v40 }
  0xa0   :  { %780 = vmatpush1.msra.mxu0 %v5067_v41  ;;  %851 = vmatpush1.msra.mxu1 %v5069_v42 }
  0xa1   :  { %781 = vmatprep.subr.mxu0 %v5071_v43  ;;  %852 = vmatprep.subr.mxu1 %v5073_v44 }
  0xa2   :  { %782 = vmatpush1.msra.mxu0 %v5079_v45  ;;  %853 = vmatpush1.msra.mxu1 %v5081_v46 }
  0xa3   :  { %783 = vmatprep.subr.mxu0 %v5090_v48  ;;  %854 = vmatprep.subr.mxu1 %v5092_v49 }
  0xa4   :  { %784 = vmatpush1.msra.mxu0 %v5096_v50  ;;  %855 = vmatpush1.msra.mxu1 %v5098_v51 }
  0xa5   :  { %785 = vmatprep.subr.mxu0 %v5100_v52  ;;  %856 = vmatprep.subr.mxu1 %v5102_v53  ;;  %v7121_v52 = vld [vmem:[#allocation27_spill] sm:$0xff] }
  0xa6   :  { %786 = vmatpush1.msra.mxu0 %v5108_v54  ;;  %857 = vmatpush1.msra.mxu1 %v5110_v55 }
  0xa7   :  { %787 = vmatprep.subr.mxu0 %v5119_v57  ;;  %858 = vmatprep.subr.mxu1 %v5121_v58 }
  0xa8   :  { %788 = vmatpush1.msra.mxu0 %v5125_v59  ;;  %859 = vmatpush1.msra.mxu1 %v5127_v60 }
  0xa9   :  { %789 = vmatprep.subr.mxu0 %v5129_v61  ;;  %860 = vmatprep.subr.mxu1 %v5131_v62 }
  0xaa   :  { %790 = vmatpush1.msra.mxu0 %v5137_v63  ;;  %861 = vmatpush1.msra.mxu1 %v7121_v52 }
  0xab   :  { %791 = vmatprep.subr.mxu0 %v5148_v11  ;;  %862 = vmatprep.subr.mxu1 %v5150_v20  ;;  %v177_v20 = vlaneseq }
  0xac   :  { %792 = vmatpush1.msra.mxu0 %v5154_v29  ;;  %863 = vmatpush1.msra.mxu1 %v5156_v38 }
  0xad   :  { %793 = vmatprep.subr.mxu0 %v5158_v47  ;;  %864 = vmatprep.subr.mxu1 %v5160_v56  ;;  %v5246_v29 = vshrl.u32 %v177_v20, 7 }
  0xae   :  { %794 = vmatpush1.msra.mxu0 %v5164_v0  ;;  %827 = vmatprep.mubr.f32.mxu0 %v7120_v2 }
  0xaf   :  { %865 = vmatpush1.msra.mxu1 %v5168_v1  ;;  %898 = vmatprep.mubr.f32.mxu1 %v7120_v2  ;;  %7122 = vst [vmem:[#allocation36_spill] sm:$0xff] %v5246_v29  ;;  %v6940_v56 = vsub.s32 0, %v5246_v29  ;;  %v6942_v0 = vsub.s32 2, %v5246_v29  ;;  %v175_v1 = vld [vmem:[%s6910_s3] sm:$0xf]  ;;  %v6947_v20 = vsub.s32 3, %v5246_v29 }
  0xb0   :  { %1004 = vmatprep.subr.mxu0 %v4947_v3  ;;  %1075 = vmatprep.subr.mxu1 %v4949_v4  ;;  %v6946_v4 = vsub.s32 1, %v5246_v29 }
  0xb1   :  { %v180_v11 = vrot.slane %v175_v1, %v6940_v56  ;;  %v5267_v52 = vrot.slane %v175_v1, %v6942_v0  ;;  %v5273_v60 = vrot.slane %v175_v1, %v6947_v20 }
  0xb2   :  { %v184_v61 = vrot.slane %v175_v1, %v6946_v4 }
 0x11e   :  { %v5248_v38 = vpop.f32.mrf.mxu0  ;;  %v5250_v47 = vpop.f32.mrf.mxu1 }
 0x120   :  { %v5257_v2 = vpop.f32.mrf.mxu0  ;;  %v5259_v3 = vpop.f32.mrf.mxu1 }
 0x124   :  { %v269_v63 = vpop.f32.mrf.mxu0  ;;  %v382_v62 = vpop.f32.mrf.mxu1 }
 0x125   :  { %v5275_v59 = vadd.f32 %v269_v63, %v180_v11  ;;  %v5278_v58 = vadd.f32 %v382_v62, %v5267_v52 }
 0x126   :  { %v271_v57 = vpop.f32.mrf.mxu0  ;;  %v384_v56 = vpop.f32.mrf.mxu1 }
 0x127   :  { %7123 = vst [vmem:[#allocation37_spill] sm:$0xff] %v5278_v58  ;;  %v5280_v55 = vadd.f32 %v271_v57, %v184_v61  ;;  %v5283_v0 = vadd.f32 %v384_v56, %v5273_v60 }
 0x129   :  { %7124 = vst [vmem:[#allocation38_spill] sm:$0xff] %v5280_v55  ;;  %7125 = vst [vmem:[#allocation39_spill] sm:$0xff] %v5283_v0 }
 0x12a   :  { %v275_v54 = vpop.f32.mrf.mxu0  ;;  %v388_v53 = vpop.f32.mrf.mxu1 }
 0x12b   :  { %v5285_v51 = vadd.f32 %v275_v54, %v180_v11  ;;  %v5288_v4 = vadd.f32 %v388_v53, %v5267_v52 }
 0x12c   :  { %v277_v1 = vpop.f32.mrf.mxu0  ;;  %v390_v63 = vpop.f32.mrf.mxu1 }
 0x12d   :  { %7126 = vst [vmem:[#allocation40_spill] sm:$0xff] %v5285_v51  ;;  %7127 = vst [vmem:[#allocation41_spill] sm:$0xff] %v5288_v4  ;;  %v5290_v20 = vadd.f32 %v277_v1, %v184_v61  ;;  %v5293_v62 = vadd.f32 %v390_v63, %v5273_v60 }
 0x12f   :  { %7128 = vst [vmem:[#allocation42_spill] sm:$0xff] %v5290_v20  ;;  %7129 = vst [vmem:[#allocation43_spill] sm:$0xff] %v5293_v62 }
 0x130   :  { %v281_v29 = vpop.f32.mrf.mxu0  ;;  %v394_v57 = vpop.f32.mrf.mxu1 }
 0x131   :  { %v5295_v58 = vadd.f32 %v281_v29, %v180_v11  ;;  %v5298_v56 = vadd.f32 %v394_v57, %v5267_v52 }
 0x132   :  { %v283_v0 = vpop.f32.mrf.mxu0  ;;  %v396_v54 = vpop.f32.mrf.mxu1 }
 0x133   :  { %7130 = vst [vmem:[#allocation44_spill] sm:$0xff] %v5295_v58  ;;  %7131 = vst [vmem:[#allocation45_spill] sm:$0xff] %v5298_v56  ;;  %v5300_v51 = vadd.f32 %v283_v0, %v184_v61  ;;  %v5303_v53 = vadd.f32 %v396_v54, %v5273_v60 }
 0x135   :  { %7132 = vst [vmem:[#allocation46_spill] sm:$0xff] %v5300_v51  ;;  %7133 = vst [vmem:[#allocation47_spill] sm:$0xff] %v5303_v53 }
 0x136   :  { %v287_v4 = vpop.f32.mrf.mxu0  ;;  %v400_v1 = vpop.f32.mrf.mxu1 }
 0x137   :  { %v5305_v20 = vadd.f32 %v287_v4, %v180_v11  ;;  %v5308_v63 = vadd.f32 %v400_v1, %v5267_v52 }
 0x138   :  { %v289_v62 = vpop.f32.mrf.mxu0  ;;  %v402_v29 = vpop.f32.mrf.mxu1 }
 0x139   :  { %7134 = vst [vmem:[#allocation48_spill] sm:$0xff] %v5305_v20  ;;  %7135 = vst [vmem:[#allocation49_spill] sm:$0xff] %v5308_v63  ;;  %v5310_v58 = vadd.f32 %v289_v62, %v184_v61  ;;  %v5313_v57 = vadd.f32 %v402_v29, %v5273_v60 }
 0x13b   :  { %7136 = vst [vmem:[#allocation50_spill] sm:$0xff] %v5310_v58  ;;  %7137 = vst [vmem:[#allocation51_spill] sm:$0xff] %v5313_v57 }
 0x13c   :  { %v293_v56 = vpop.f32.mrf.mxu0  ;;  %v406_v0 = vpop.f32.mrf.mxu1 }
 0x13d   :  { %v5315_v51 = vadd.f32 %v293_v56, %v180_v11  ;;  %v5318_v54 = vadd.f32 %v406_v0, %v5267_v52 }
 0x13e   :  { %v295_v53 = vpop.f32.mrf.mxu0  ;;  %v408_v4 = vpop.f32.mrf.mxu1 }
 0x13f   :  { %7138 = vst [vmem:[#allocation52_spill] sm:$0xff] %v5315_v51  ;;  %7139 = vst [vmem:[#allocation53_spill] sm:$0xff] %v5318_v54  ;;  %v5320_v20 = vadd.f32 %v295_v53, %v184_v61  ;;  %v5323_v1 = vadd.f32 %v408_v4, %v5273_v60 }
 0x141   :  { %7140 = vst [vmem:[#allocation54_spill] sm:$0xff] %v5320_v20  ;;  %7141 = vst [vmem:[#allocation55_spill] sm:$0xff] %v5323_v1 }
 0x142   :  { %v299_v63 = vpop.f32.mrf.mxu0  ;;  %v412_v62 = vpop.f32.mrf.mxu1 }
 0x143   :  { %v5325_v58 = vadd.f32 %v299_v63, %v180_v11  ;;  %v5328_v29 = vadd.f32 %v412_v62, %v5267_v52 }
 0x144   :  { %v301_v57 = vpop.f32.mrf.mxu0  ;;  %v414_v56 = vpop.f32.mrf.mxu1 }
 0x145   :  { %7142 = vst [vmem:[#allocation56_spill] sm:$0xff] %v5325_v58  ;;  %7143 = vst [vmem:[#allocation57_spill] sm:$0xff] %v5328_v29  ;;  %v5330_v51 = vadd.f32 %v301_v57, %v184_v61  ;;  %v5333_v0 = vadd.f32 %v414_v56, %v5273_v60  ;;  %v264_v57 = vadd.f32 %v5248_v38, %v180_v11 }
 0x146   :  { %v266_v56 = vadd.f32 %v5257_v2, %v184_v61 }
 0x147   :  { %7144 = vst [vmem:[#allocation58_spill] sm:$0xff] %v5330_v51  ;;  %7145 = vst [vmem:[#allocation59_spill] sm:$0xff] %v5333_v0 }
 0x148   :  { %v305_v54 = vpop.f32.mrf.mxu0  ;;  %v418_v53 = vpop.f32.mrf.mxu1 }
 0x149   :  { %v5335_v20 = vadd.f32 %v305_v54, %v180_v11  ;;  %v5338_v4 = vadd.f32 %v418_v53, %v5267_v52 }
 0x14a   :  { %v307_v1 = vpop.f32.mrf.mxu0  ;;  %v420_v63 = vpop.f32.mrf.mxu1 }
 0x14b   :  { %7146 = vst [vmem:[#allocation60_spill] sm:$0xff] %v5335_v20  ;;  %7147 = vst [vmem:[#allocation61_spill] sm:$0xff] %v5338_v4  ;;  %v5340_v58 = vadd.f32 %v307_v1, %v184_v61  ;;  %v5343_v62 = vadd.f32 %v420_v63, %v5273_v60  ;;  %v377_v1 = vadd.f32 %v5250_v47, %v5267_v52 }
 0x14c   :  { %v379_v63 = vadd.f32 %v5259_v3, %v5273_v60 }
 0x14d   :  { %7148 = vst [vmem:[#allocation62_spill] sm:$0xff] %v5340_v58  ;;  %7149 = vst [vmem:[#allocation63_spill] sm:$0xff] %v5343_v62 }
 0x14e   :  { %v589_v29 = vpop.f32.mrf.mxu0  ;;  %v660_v53 = vpop.f32.mrf.mxu1 }
 0x14f   :  { %v665_v0 = vadd.f32 %v589_v29, %v264_v57  ;;  %v667_v4 = vadd.f32 %v660_v53, %v377_v1 }
 0x150   :  { %v591_v51 = vpop.f32.mrf.mxu0  ;;  %v662_v58 = vpop.f32.mrf.mxu1 }
 0x151   :  { %v4304_v55 = vmul.f32 -1.442695, %v665_v0  ;;  %v666_v54 = vadd.f32 %v591_v51, %v266_v56  ;;  %v4306_v11 = vmul.f32 -1.442695, %v667_v4  ;;  %v668_v62 = vadd.f32 %v662_v58, %v379_v63 }
 0x153   :  { %4418 = vpow2.f32 %v4304_v55  ;;  %v4305_v20 = vmul.f32 -1.442695, %v666_v54 }
 0x155   :  { %4420 = vpow2.f32 %v4305_v20 }
 0x156   :  { %4422 = vpow2.f32 %v4306_v11 }
 0x160   :  { %v4419_v38 = vpop.eup %4418 }
 0x161   :  { %v678_v61 = vadd.f32 1.0, %v4419_v38 }
 0x162   :  { %v4421_v2 = vpop.eup %4420 }
 0x163   :  { %4424 = vrcp.f32 %v678_v61  ;;  %v679_v51 = vadd.f32 1.0, %v4421_v2  ;;  %v4423_v55 = vpop.eup %4422  ;;  %v5436_v2 = vld [vmem:[#allocation6 + $0x1e8] sm:$0xff] }
 0x164   :  { %4426 = vtanh.f32 %v668_v62  ;;  %v680_v52 = vadd.f32 1.0, %v4423_v55  ;;  %v5442_v55 = vld [vmem:[#allocation6 + $0x1e0] sm:$0xff] }
 0x165   :  { %4428 = vrcp.f32 %v679_v51  ;;  %v5438_v51 = vld [vmem:[#allocation6 + $0x1f8] sm:$0xff] }
 0x166   :  { %4430 = vrcp.f32 %v680_v52  ;;  %v5454_v52 = vld [vmem:[#allocation6 + $0x1c0] sm:$0xff] }
 0x170   :  { %v4425_v20 = vpop.eup %4424 }
 0x171   :  { %v4427_v29 = vpop.eup %4426 }
 0x172   :  { %v4429_v0 = vpop.eup %4428  ;;  %v689_v57 = vmul.f32 %v4427_v29, %v4425_v20  ;;  %v5444_v20 = vld [vmem:[#allocation6 + $0x1f0] sm:$0xff]  ;;  %v5448_v29 = vld [vmem:[#allocation6 + $0x1c8] sm:$0xff] }
 0x173   :  { %v688_v47 = vmul.f32 0.0, %v4429_v0  ;;  %v4431_v58 = vpop.eup %4430  ;;  %v5450_v0 = vld [vmem:[#allocation6 + $0x1d8] sm:$0xff] }
 0x175   :  { %v5351_v56 = vadd.f32 %v689_v57, %v688_v47  ;;  %v5456_v47 = vld [vmem:[#allocation6 + $0x1d0] sm:$0xff]  ;;  %v5460_v57 = vld [vmem:[#allocation6 + $0x1a8] sm:$0xff] }
 0x177   :  { %4432 = vtanh.f32 %v5351_v56 }
 0x184   :  { %v4433_v60 = vpop.eup %4432 }
 0x185   :  { %v5354_v3 = vmul.f32 %v4433_v60, %v4431_v58  ;;  %v5466_v58 = vld [vmem:[#allocation6 + $0x1a0] sm:$0xff]  ;;  %v5468_v60 = vld [vmem:[#allocation6 + $0x1b0] sm:$0xff] }
 0x187   :  { %7150 = vst [vmem:[#allocation64_spill] sm:$0xff] %v5354_v3  ;;  %828 = vmatmul.mubr.f32.vlgmr.msra.gmra.mxu0 %v5354_v3  ;;  %899 = vmatmul.mubr.f32.vlgmr.msra.gmra.mxu1 %v5354_v3  ;;  %v5614_v3 = vld [vmem:[#allocation6 + $0x18] sm:$0xff] }
 0x188   :  { %1005 = vmatpush1.msra.mxu0 %v4951_v5  ;;  %1076 = vmatpush1.msra.mxu1 %v4953_v6  ;;  %v7151_v5 = vld [vmem:[#allocation15_spill] sm:$0xff]  ;;  %v7152_v6 = vld [vmem:[#allocation16_spill] sm:$0xff] }
 0x189   :  { %1006 = vmatprep.subr.mxu0 %v4955_v7  ;;  %1077 = vmatprep.subr.mxu1 %v4957_v8  ;;  %v7153_v7 = vld [vmem:[#allocation17_spill] sm:$0xff]  ;;  %v7154_v8 = vld [vmem:[#allocation18_spill] sm:$0xff]  ;;  %7177 = vst [vmem:[#allocation16_spill] sm:$0xff] %v5436_v2 }
 0x18a   :  { %1007 = vmatpush1.msra.mxu0 %v4963_v9  ;;  %1078 = vmatpush1.msra.mxu1 %v4965_v10  ;;  %v7155_v9 = vld [vmem:[#allocation19_spill] sm:$0xff]  ;;  %v7156_v10 = vld [vmem:[#allocation20_spill] sm:$0xff]  ;;  %7178 = vst [vmem:[#allocation17_spill] sm:$0xff] %v5438_v51 }
 0x18b   :  { %1008 = vmatprep.subr.mxu0 %v4974_v12  ;;  %1079 = vmatprep.subr.mxu1 %v4976_v13  ;;  %v7157_v12 = vld [vmem:[#allocation21_spill] sm:$0xff]  ;;  %v7158_v13 = vld [vmem:[#allocation22_spill] sm:$0xff] }
 0x18c   :  { %1009 = vmatpush1.msra.mxu0 %v4980_v14  ;;  %1080 = vmatpush1.msra.mxu1 %v4982_v15  ;;  %v7159_v14 = vld [vmem:[#allocation23_spill] sm:$0xff]  ;;  %v7160_v15 = vld [vmem:[#allocation24_spill] sm:$0xff] }
 0x18d   :  { %1010 = vmatprep.subr.mxu0 %v4984_v16  ;;  %1081 = vmatprep.subr.mxu1 %v4986_v17  ;;  %v7161_v16 = vld [vmem:[#allocation25_spill] sm:$0xff]  ;;  %v7162_v17 = vld [vmem:[#allocation26_spill] sm:$0xff] }
 0x18e   :  { %1011 = vmatpush1.msra.mxu0 %v4992_v18  ;;  %1082 = vmatpush1.msra.mxu1 %v4994_v19  ;;  %v7163_v18 = vld [vmem:[#allocation27_spill] sm:$0xff]  ;;  %v7164_v19 = vld [vmem:[#allocation28_spill] sm:$0xff] }
 0x18f   :  { %1012 = vmatprep.subr.mxu0 %v5003_v21  ;;  %1083 = vmatprep.subr.mxu1 %v5005_v22  ;;  %v7165_v21 = vld [vmem:[#allocation29_spill] sm:$0xff]  ;;  %v7166_v22 = vld [vmem:[#allocation30_spill] sm:$0xff] }
 0x190   :  { %1013 = vmatpush1.msra.mxu0 %v5009_v23  ;;  %1084 = vmatpush1.msra.mxu1 %v5011_v24  ;;  %v7167_v23 = vld [vmem:[#allocation31_spill] sm:$0xff]  ;;  %v7168_v24 = vld [vmem:[#allocation32_spill] sm:$0xff] }
 0x191   :  { %1014 = vmatprep.subr.mxu0 %v5013_v25  ;;  %1085 = vmatprep.subr.mxu1 %v5015_v26  ;;  %v7169_v25 = vld [vmem:[#allocation33_spill] sm:$0xff]  ;;  %v7170_v26 = vld [vmem:[#allocation34_spill] sm:$0xff]  ;;  %7193 = vst [vmem:[#allocation32_spill] sm:$0xff] %v5614_v3 }
 0x192   :  { %1015 = vmatpush1.msra.mxu0 %v5021_v27  ;;  %1086 = vmatpush1.msra.mxu1 %v5023_v28  ;;  %v7171_v27 = vmov 0.0   ;;  %v7172_v28 = vld [vmem:[#allocation35_spill] sm:$0xff] }
 0x193   :  { %1016 = vmatprep.subr.mxu0 %v5032_v30  ;;  %1087 = vmatprep.subr.mxu1 %v5034_v31 }
 0x194   :  { %1017 = vmatpush1.msra.mxu0 %v5038_v32  ;;  %1088 = vmatpush1.msra.mxu1 %v5040_v33 }
 0x195   :  { %1018 = vmatprep.subr.mxu0 %v5042_v34  ;;  %1089 = vmatprep.subr.mxu1 %v5044_v35  ;;  %v7173_v34 = vld [vmem:[#allocation38_spill] sm:$0xff] }
 0x196   :  { %1019 = vmatpush1.msra.mxu0 %v5050_v36  ;;  %1090 = vmatpush1.msra.mxu1 %v5052_v37 }
 0x197   :  { %1020 = vmatprep.subr.mxu0 %v5061_v39  ;;  %1091 = vmatprep.subr.mxu1 %v5063_v40  ;;  %v7174_v39 = vld [vmem:[#allocation37_spill] sm:$0xff] }
 0x198   :  { %1021 = vmatpush1.msra.mxu0 %v5067_v41  ;;  %1092 = vmatpush1.msra.mxu1 %v5069_v42 }
 0x199   :  { %1022 = vmatprep.subr.mxu0 %v5071_v43  ;;  %1093 = vmatprep.subr.mxu1 %v5073_v44  ;;  %v7175_v43 = vld [vmem:[#allocation39_spill] sm:$0xff] }
 0x19a   :  { %1023 = vmatpush1.msra.mxu0 %v5079_v45  ;;  %1094 = vmatpush1.msra.mxu1 %v5081_v46 }
 0x19b   :  { %1024 = vmatprep.subr.mxu0 %v5090_v48  ;;  %1095 = vmatprep.subr.mxu1 %v5092_v49 }
 0x19c   :  { %1025 = vmatpush1.msra.mxu0 %v5096_v50  ;;  %1096 = vmatpush1.msra.mxu1 %v7151_v5  ;;  %v5472_v5 = vld [vmem:[#allocation6 + $0x188] sm:$0xff] }
 0x19d   :  { %1026 = vmatprep.subr.mxu0 %v7152_v6  ;;  %1097 = vmatprep.subr.mxu1 %v7153_v7  ;;  %v5474_v6 = vld [vmem:[#allocation6 + $0x198] sm:$0xff]  ;;  %v5478_v7 = vld [vmem:[#allocation6 + $0x180] sm:$0xff] }
 0x19e   :  { %1027 = vmatpush1.msra.mxu0 %v7154_v8  ;;  %1098 = vmatpush1.msra.mxu1 %v7155_v9  ;;  %v5480_v8 = vld [vmem:[#allocation6 + $0x190] sm:$0xff]  ;;  %v5484_v9 = vld [vmem:[#allocation6 + $0x168] sm:$0xff] }
 0x19f   :  { %1028 = vmatprep.subr.mxu0 %v7156_v10  ;;  %1099 = vmatprep.subr.mxu1 %v7157_v12  ;;  %v5486_v10 = vld [vmem:[#allocation6 + $0x178] sm:$0xff]  ;;  %v5490_v12 = vld [vmem:[#allocation6 + $0x160] sm:$0xff] }
 0x1a0   :  { %1029 = vmatpush1.msra.mxu0 %v7158_v13  ;;  %1100 = vmatpush1.msra.mxu1 %v7159_v14  ;;  %v5492_v13 = vld [vmem:[#allocation6 + $0x170] sm:$0xff]  ;;  %v5496_v14 = vld [vmem:[#allocation6 + $0x148] sm:$0xff] }
 0x1a1   :  { %1030 = vmatprep.subr.mxu0 %v7160_v15  ;;  %1101 = vmatprep.subr.mxu1 %v7161_v16  ;;  %v5498_v15 = vld [vmem:[#allocation6 + $0x158] sm:$0xff]  ;;  %v5502_v16 = vld [vmem:[#allocation6 + $0x140] sm:$0xff] }
 0x1a2   :  { %1031 = vmatpush1.msra.mxu0 %v7162_v17  ;;  %1102 = vmatpush1.msra.mxu1 %v7163_v18  ;;  %v5504_v17 = vld [vmem:[#allocation6 + $0x150] sm:$0xff]  ;;  %v5508_v18 = vld [vmem:[#allocation6 + $0x128] sm:$0xff] }
 0x1a3   :  { %1032 = vmatprep.subr.mxu0 %v7164_v19  ;;  %1103 = vmatprep.subr.mxu1 %v7165_v21  ;;  %v5510_v19 = vld [vmem:[#allocation6 + $0x138] sm:$0xff]  ;;  %v5514_v21 = vld [vmem:[#allocation6 + $0x120] sm:$0xff] }
 0x1a4   :  { %1033 = vmatpush1.msra.mxu0 %v7166_v22  ;;  %1104 = vmatpush1.msra.mxu1 %v7167_v23  ;;  %v5516_v22 = vld [vmem:[#allocation6 + $0x130] sm:$0xff]  ;;  %v5520_v23 = vld [vmem:[#allocation6 + $0x108] sm:$0xff] }
 0x1a5   :  { %1034 = vmatprep.subr.mxu0 %v7168_v24  ;;  %1105 = vmatprep.subr.mxu1 %v7169_v25  ;;  %v5522_v24 = vld [vmem:[#allocation6 + $0x118] sm:$0xff]  ;;  %v5524_v25 = vld [vmem:[#allocation6 + $0x100] sm:$0xff] }
 0x1a6   :  { %1035 = vmatpush1.msra.mxu0 %v7170_v26  ;;  %1068 = vmatprep.mubr.f32.mxu0 %v7171_v27  ;;  %v5528_v26 = vld [vmem:[#allocation6 + $0x110] sm:$0xff] }
 0x1a7   :  { %1106 = vmatpush1.msra.mxu1 %v7172_v28  ;;  %1139 = vmatprep.mubr.f32.mxu1 %v7171_v27  ;;  %v5530_v28 = vld [vmem:[#allocation6 + $0xe8] sm:$0xff] }
 0x1a8   :  { %1245 = vmatprep.subr.mxu0 %v5436_v2  ;;  %1316 = vmatprep.subr.mxu1 %v5438_v51 }
 0x247   :  { %v829_v30 = vpop.f32.mrf.mxu0  ;;  %v900_v37 = vpop.f32.mrf.mxu1 }
 0x248   :  { %v905_v31 = vadd.f32 %v829_v30, %v5275_v59  ;;  %v907_v40 = vadd.f32 %v900_v37, %v7174_v39  ;;  %v5532_v30 = vld [vmem:[#allocation6 + $0xf8] sm:$0xff]  ;;  %v5552_v37 = vld [vmem:[#allocation6 + $0xa8] sm:$0xff] }
 0x249   :  { %v831_v32 = vpop.f32.mrf.mxu0  ;;  %v902_v41 = vpop.f32.mrf.mxu1  ;;  %v5554_v39 = vld [vmem:[#allocation6 + $0xb8] sm:$0xff] }
 0x24a   :  { %v4307_v33 = vmul.f32 -1.442695, %v905_v31  ;;  %v906_v35 = vadd.f32 %v831_v32, %v7173_v34  ;;  %v4309_v42 = vmul.f32 -1.442695, %v907_v40  ;;  %v908_v44 = vadd.f32 %v902_v41, %v7175_v43  ;;  %v5536_v31 = vld [vmem:[#allocation6 + $0xe0] sm:$0xff]  ;;  %v5538_v32 = vld [vmem:[#allocation6 + $0xf0] sm:$0xff] }
 0x24b   :  { %v5544_v34 = vld [vmem:[#allocation6 + $0xd8] sm:$0xff]  ;;  %v5558_v40 = vld [vmem:[#allocation6 + $0xa0] sm:$0xff]  ;;  %v5560_v41 = vld [vmem:[#allocation6 + $0xb0] sm:$0xff] }
 0x24c   :  { %4434 = vpow2.f32 %v4307_v33  ;;  %v4308_v36 = vmul.f32 -1.442695, %v906_v35  ;;  %v5540_v33 = vld [vmem:[#allocation6 + $0xc8] sm:$0xff]  ;;  %v5546_v35 = vld [vmem:[#allocation6 + $0xc0] sm:$0xff]  ;;  %v5566_v43 = vld [vmem:[#allocation6 + $0x98] sm:$0xff] }
 0x24e   :  { %4436 = vpow2.f32 %v4308_v36  ;;  %v5548_v36 = vld [vmem:[#allocation6 + $0xd0] sm:$0xff] }
 0x24f   :  { %4438 = vpow2.f32 %v4309_v42  ;;  %v5564_v42 = vld [vmem:[#allocation6 + $0x88] sm:$0xff] }
 0x250   :  { %4440 = vtanh.f32 %v908_v44  ;;  %v5570_v44 = vld [vmem:[#allocation6 + $0x80] sm:$0xff] }
 0x259   :  { %v4435_v45 = vpop.eup %4434 }
 0x25a   :  { %v918_v46 = vadd.f32 1.0, %v4435_v45  ;;  %v5572_v45 = vld [vmem:[#allocation6 + $0x90] sm:$0xff] }
 0x25b   :  { %v4437_v48 = vpop.eup %4436  ;;  %7179 = vst [vmem:[#allocation18_spill] sm:$0xff] %v5572_v45 }
 0x25c   :  { %4442 = vrcp.f32 %v918_v46  ;;  %v919_v49 = vadd.f32 1.0, %v4437_v48  ;;  %v4439_v50 = vpop.eup %4438  ;;  %v5576_v46 = vld [vmem:[#allocation6 + $0x68] sm:$0xff]  ;;  %v5578_v48 = vld [vmem:[#allocation6 + $0x78] sm:$0xff] }
 0x25d   :  { %v4441_v59 = vpop.eup %4440  ;;  %v920_v53 = vadd.f32 1.0, %v4439_v50  ;;  %7180 = vst [vmem:[#allocation19_spill] sm:$0xff] %v5576_v46  ;;  %7181 = vst [vmem:[#allocation20_spill] sm:$0xff] %v5578_v48  ;;  %v5584_v50 = vld [vmem:[#allocation6 + $0x70] sm:$0xff] }
 0x25e   :  { %4444 = vrcp.f32 %v919_v49  ;;  %v5582_v49 = vld [vmem:[#allocation6 + $0x60] sm:$0xff]  ;;  %7183 = vst [vmem:[#allocation22_spill] sm:$0xff] %v5584_v50 }
 0x25f   :  { %4446 = vrcp.f32 %v920_v53  ;;  %7182 = vst [vmem:[#allocation21_spill] sm:$0xff] %v5582_v49  ;;  %v5600_v53 = vld [vmem:[#allocation6 + $0x28] sm:$0xff] }
 0x260   :  { %7188 = vst [vmem:[#allocation27_spill] sm:$0xff] %v5600_v53 }
 0x269   :  { %v4443_v4 = vpop.eup %4442 }
 0x26a   :  { %v929_v62 = vmul.f32 %v4443_v4, %v4441_v59  ;;  %v5588_v59 = vld [vmem:[#allocation6 + $0x48] sm:$0xff]  ;;  %v5590_v4 = vld [vmem:[#allocation6 + $0x58] sm:$0xff] }
 0x26b   :  { %v4445_v54 = vpop.eup %4444  ;;  %7184 = vst [vmem:[#allocation23_spill] sm:$0xff] %v5588_v59  ;;  %7185 = vst [vmem:[#allocation24_spill] sm:$0xff] %v5590_v4 }
 0x26c   :  { %v928_v1 = vmul.f32 %v4445_v54, %v5351_v56  ;;  %v4447_v11 = vpop.eup %4446  ;;  %v5462_v56 = vld [vmem:[#allocation6 + $0x1b8] sm:$0xff]  ;;  %v5596_v54 = vld [vmem:[#allocation6 + $0x50] sm:$0xff] }
 0x26d   :  { %7187 = vst [vmem:[#allocation26_spill] sm:$0xff] %v5596_v54 }
 0x26e   :  { %v5427_v63 = vadd.f32 %v929_v62, %v928_v1  ;;  %v5594_v62 = vld [vmem:[#allocation6 + $0x40] sm:$0xff]  ;;  %v5602_v1 = vld [vmem:[#allocation6 + $0x38] sm:$0xff] }
 0x26f   :  { %7186 = vst [vmem:[#allocation25_spill] sm:$0xff] %v5594_v62  ;;  %7189 = vst [vmem:[#allocation28_spill] sm:$0xff] %v5602_v1 }
 0x270   :  { %4448 = vtanh.f32 %v5427_v63 }
 0x27d   :  { %v4449_v38 = vpop.eup %4448 }
 0x27e   :  { %v5430_v61 = vmul.f32 %v4449_v38, %v4447_v11  ;;  %v5606_v11 = vld [vmem:[#allocation6 + $0x20] sm:$0xff]  ;;  %v5608_v38 = vld [vmem:[#allocation6 + $0x30] sm:$0xff] }
 0x27f   :  { %7190 = vst [vmem:[#allocation29_spill] sm:$0xff] %v5606_v11  ;;  %7191 = vst [vmem:[#allocation30_spill] sm:$0xff] %v5608_v38 }
 0x280   :  { %7176 = vst [vmem:[#allocation15_spill] sm:$0xff] %v5430_v61  ;;  %1069 = vmatmul.mubr.f32.vlgmr.msra.gmra.mxu0 %v5430_v61  ;;  %1140 = vmatmul.mubr.f32.vlgmr.msra.gmra.mxu1 %v5430_v61  ;;  %v5612_v61 = vld [vmem:[#allocation6 + $0x8] sm:$0xff] }
 0x281   :  { %1309 = vmatprep.mubr.f32.mxu0 %v7171_v27  ;;  %1380 = vmatprep.mubr.f32.mxu1 %v7171_v27  ;;  %7192 = vst [vmem:[#allocation31_spill] sm:$0xff] %v5612_v61  ;;  %v5618_v27 = vld [vmem:[#allocation6] sm:$0xff] }
 0x282   :  { %1246 = vmatpush1.msra.mxu0 %v5442_v55  ;;  %1317 = vmatpush1.msra.mxu1 %v5444_v20  ;;  %7194 = vst [vmem:[#allocation33_spill] sm:$0xff] %v5618_v27 }
 0x283   :  { %1247 = vmatprep.subr.mxu0 %v5448_v29  ;;  %1318 = vmatprep.subr.mxu1 %v5450_v0 }
 0x284   :  { %1248 = vmatpush1.msra.mxu0 %v5454_v52  ;;  %1319 = vmatpush1.msra.mxu1 %v5456_v47 }
 0x285   :  { %1249 = vmatprep.subr.mxu0 %v5460_v57  ;;  %1320 = vmatprep.subr.mxu1 %v5462_v56 }
 0x286   :  { %1250 = vmatpush1.msra.mxu0 %v5466_v58  ;;  %1321 = vmatpush1.msra.mxu1 %v5468_v60 }
 0x287   :  { %1251 = vmatprep.subr.mxu0 %v5472_v5  ;;  %1322 = vmatprep.subr.mxu1 %v5474_v6 }
 0x288   :  { %1252 = vmatpush1.msra.mxu0 %v5478_v7  ;;  %1323 = vmatpush1.msra.mxu1 %v5480_v8 }
 0x289   :  { %1253 = vmatprep.subr.mxu0 %v5484_v9  ;;  %1324 = vmatprep.subr.mxu1 %v5486_v10 }
 0x28a   :  { %1254 = vmatpush1.msra.mxu0 %v5490_v12  ;;  %1325 = vmatpush1.msra.mxu1 %v5492_v13 }
 0x28b   :  { %1255 = vmatprep.subr.mxu0 %v5496_v14  ;;  %1326 = vmatprep.subr.mxu1 %v5498_v15 }
 0x28c   :  { %1256 = vmatpush1.msra.mxu0 %v5502_v16  ;;  %1327 = vmatpush1.msra.mxu1 %v5504_v17 }
 0x28d   :  { %1257 = vmatprep.subr.mxu0 %v5508_v18  ;;  %1328 = vmatprep.subr.mxu1 %v5510_v19 }
 0x28e   :  { %1258 = vmatpush1.msra.mxu0 %v5514_v21  ;;  %1329 = vmatpush1.msra.mxu1 %v5516_v22 }
 0x28f   :  { %1259 = vmatprep.subr.mxu0 %v5520_v23  ;;  %1330 = vmatprep.subr.mxu1 %v5522_v24 }
 0x290   :  { %1260 = vmatpush1.msra.mxu0 %v5524_v25  ;;  %1331 = vmatpush1.msra.mxu1 %v5528_v26 }
 0x291   :  { %1261 = vmatprep.subr.mxu0 %v5530_v28  ;;  %1332 = vmatprep.subr.mxu1 %v5532_v30 }
 0x292   :  { %1262 = vmatpush1.msra.mxu0 %v5536_v31  ;;  %1333 = vmatpush1.msra.mxu1 %v5538_v32 }
 0x293   :  { %1263 = vmatprep.subr.mxu0 %v5540_v33  ;;  %1334 = vmatprep.subr.mxu1 %v5544_v34 }
 0x294   :  { %1264 = vmatpush1.msra.mxu0 %v5546_v35  ;;  %1335 = vmatpush1.msra.mxu1 %v5548_v36 }
 0x295   :  { %1265 = vmatprep.subr.mxu0 %v5552_v37  ;;  %1336 = vmatprep.subr.mxu1 %v5554_v39 }
 0x296   :  { %1266 = vmatpush1.msra.mxu0 %v5558_v40  ;;  %1337 = vmatpush1.msra.mxu1 %v5560_v41 }
 0x297   :  { %1267 = vmatprep.subr.mxu0 %v5564_v42  ;;  %1338 = vmatprep.subr.mxu1 %v5566_v43 }
 0x298   :  { %1268 = vmatpush1.msra.mxu0 %v5570_v44  ;;  %1339 = vmatpush1.msra.mxu1 %v5572_v45 }
 0x299   :  { %1269 = vmatprep.subr.mxu0 %v5576_v46  ;;  %1340 = vmatprep.subr.mxu1 %v5578_v48 }
 0x29a   :  { %1270 = vmatpush1.msra.mxu0 %v5582_v49  ;;  %1341 = vmatpush1.msra.mxu1 %v5584_v50 }
 0x29b   :  { %1271 = vmatprep.subr.mxu0 %v5588_v59  ;;  %1342 = vmatprep.subr.mxu1 %v5590_v4  ;;  %v5620_v59 = vld [vmem:[#allocation6 + $0x10] sm:$0xff] }
 0x29c   :  { %1272 = vmatpush1.msra.mxu0 %v5594_v62  ;;  %1343 = vmatpush1.msra.mxu1 %v5596_v54  ;;  %7195 = vst [vmem:[#allocation34_spill] sm:$0xff] %v5620_v59 }
 0x29d   :  { %1273 = vmatprep.subr.mxu0 %v5600_v53  ;;  %1344 = vmatprep.subr.mxu1 %v5602_v1  ;;  %v7196_v53 = vld [vmem:[#allocation40_spill] sm:$0xff] }
 0x29e   :  { %1274 = vmatpush1.msra.mxu0 %v5606_v11  ;;  %1345 = vmatpush1.msra.mxu1 %v5608_v38  ;;  %v7197_v11 = vld [vmem:[#allocation42_spill] sm:$0xff] }
 0x29f   :  { %1275 = vmatprep.subr.mxu0 %v5612_v61  ;;  %1346 = vmatprep.subr.mxu1 %v5614_v3  ;;  %v7198_v3 = vld [vmem:[#allocation41_spill] sm:$0xff] }
 0x2a0   :  { %1276 = vmatpush1.msra.mxu0 %v5618_v27  ;;  %1347 = vmatpush1.msra.mxu1 %v5620_v59  ;;  %v7199_v59 = vld [vmem:[#allocation43_spill] sm:$0xff] }
 0x2a1   :  { %1486 = vmatprep.subr.mxu0 %v5436_v2  ;;  %1557 = vmatprep.subr.mxu1 %v5438_v51 }
 0x340   :  { %v1070_v1 = vpop.f32.mrf.mxu0  ;;  %v1141_v61 = vpop.f32.mrf.mxu1 }
 0x341   :  { %v1146_v54 = vadd.f32 %v1070_v1, %v7196_v53  ;;  %v1148_v49 = vadd.f32 %v1141_v61, %v7198_v3 }
 0x342   :  { %v1072_v62 = vpop.f32.mrf.mxu0  ;;  %v1143_v27 = vpop.f32.mrf.mxu1 }
 0x343   :  { %v4310_v4 = vmul.f32 -1.442695, %v1146_v54  ;;  %v1147_v50 = vadd.f32 %v1072_v62, %v7197_v11  ;;  %v4312_v48 = vmul.f32 -1.442695, %v1148_v49  ;;  %v1149_v46 = vadd.f32 %v1143_v27, %v7199_v59  ;;  %v7205_v49 = vld [vmem:[#allocation22_spill] sm:$0xff]  ;;  %v7206_v59 = vld [vmem:[#allocation23_spill] sm:$0xff] }
 0x345   :  { %4450 = vpow2.f32 %v4310_v4  ;;  %v4311_v38 = vmul.f32 -1.442695, %v1147_v50 }
 0x347   :  { %4452 = vpow2.f32 %v4311_v38  ;;  %v7207_v38 = vld [vmem:[#allocation24_spill] sm:$0xff] }
 0x348   :  { %4454 = vpow2.f32 %v4312_v48 }
 0x349   :  { %4456 = vtanh.f32 %v1149_v46  ;;  %v7204_v46 = vld [vmem:[#allocation21_spill] sm:$0xff] }
 0x352   :  { %v4451_v2 = vpop.eup %4450 }
 0x353   :  { %v1159_v45 = vadd.f32 1.0, %v4451_v2 }
 0x354   :  { %v4453_v51 = vpop.eup %4452 }
 0x355   :  { %4458 = vrcp.f32 %v1159_v45  ;;  %v1160_v53 = vadd.f32 1.0, %v4453_v51  ;;  %v4455_v54 = vpop.eup %4454  ;;  %v7202_v51 = vld [vmem:[#allocation19_spill] sm:$0xff]  ;;  %v7203_v45 = vld [vmem:[#allocation20_spill] sm:$0xff] }
 0x356   :  { %v4457_v62 = vpop.eup %4456  ;;  %v1161_v11 = vadd.f32 1.0, %v4455_v54  ;;  %v7209_v54 = vld [vmem:[#allocation26_spill] sm:$0xff] }
 0x357   :  { %4460 = vrcp.f32 %v1160_v53  ;;  %v7208_v53 = vld [vmem:[#allocation25_spill] sm:$0xff] }
 0x358   :  { %4462 = vrcp.f32 %v1161_v11  ;;  %v7214_v11 = vld [vmem:[#allocation31_spill] sm:$0xff] }
 0x362   :  { %v4459_v4 = vpop.eup %4458 }
 0x363   :  { %v1170_v50 = vmul.f32 %v4459_v4, %v4457_v62  ;;  %v7210_v62 = vld [vmem:[#allocation27_spill] sm:$0xff]  ;;  %v7211_v4 = vld [vmem:[#allocation28_spill] sm:$0xff] }
 0x364   :  { %v4461_v1 = vpop.eup %4460 }
 0x365   :  { %v1169_v3 = vmul.f32 %v4461_v1, %v5427_v63  ;;  %v4463_v27 = vpop.eup %4462  ;;  %v7201_v63 = vld [vmem:[#allocation18_spill] sm:$0xff] }
 0x366   :  { %v7213_v1 = vld [vmem:[#allocation30_spill] sm:$0xff] }
 0x367   :  { %v5635_v61 = vadd.f32 %v1170_v50, %v1169_v3  ;;  %v7212_v50 = vld [vmem:[#allocation29_spill] sm:$0xff]  ;;  %v7215_v3 = vld [vmem:[#allocation32_spill] sm:$0xff] }
 0x369   :  { %4464 = vtanh.f32 %v5635_v61 }
 0x376   :  { %v4465_v2 = vpop.eup %4464 }
 0x377   :  { %v5638_v48 = vmul.f32 %v4465_v2, %v4463_v27  ;;  %v7216_v27 = vld [vmem:[#allocation33_spill] sm:$0xff]  ;;  %v7217_v2 = vmov 0.0  }
 0x379   :  { %7200 = vst [vmem:[#allocation35_spill] sm:$0xff] %v5638_v48  ;;  %1310 = vmatmul.mubr.f32.vlgmr.msra.gmra.mxu0 %v5638_v48  ;;  %1381 = vmatmul.mubr.f32.vlgmr.msra.gmra.mxu1 %v5638_v48  ;;  %v7218_v48 = vld [vmem:[#allocation34_spill] sm:$0xff] }
 0x37a   :  { %1487 = vmatpush1.msra.mxu0 %v5442_v55  ;;  %1558 = vmatpush1.msra.mxu1 %v5444_v20 }
 0x37b   :  { %1488 = vmatprep.subr.mxu0 %v5448_v29  ;;  %1559 = vmatprep.subr.mxu1 %v5450_v0 }
 0x37c   :  { %1489 = vmatpush1.msra.mxu0 %v5454_v52  ;;  %1560 = vmatpush1.msra.mxu1 %v5456_v47 }
 0x37d   :  { %1490 = vmatprep.subr.mxu0 %v5460_v57  ;;  %1561 = vmatprep.subr.mxu1 %v5462_v56 }
 0x37e   :  { %1491 = vmatpush1.msra.mxu0 %v5466_v58  ;;  %1562 = vmatpush1.msra.mxu1 %v5468_v60 }
 0x37f   :  { %1492 = vmatprep.subr.mxu0 %v5472_v5  ;;  %1563 = vmatprep.subr.mxu1 %v5474_v6 }
 0x380   :  { %1493 = vmatpush1.msra.mxu0 %v5478_v7  ;;  %1564 = vmatpush1.msra.mxu1 %v5480_v8 }
 0x381   :  { %1494 = vmatprep.subr.mxu0 %v5484_v9  ;;  %1565 = vmatprep.subr.mxu1 %v5486_v10 }
 0x382   :  { %1495 = vmatpush1.msra.mxu0 %v5490_v12  ;;  %1566 = vmatpush1.msra.mxu1 %v5492_v13 }
 0x383   :  { %1496 = vmatprep.subr.mxu0 %v5496_v14  ;;  %1567 = vmatprep.subr.mxu1 %v5498_v15 }
 0x384   :  { %1497 = vmatpush1.msra.mxu0 %v5502_v16  ;;  %1568 = vmatpush1.msra.mxu1 %v5504_v17 }
 0x385   :  { %1498 = vmatprep.subr.mxu0 %v5508_v18  ;;  %1569 = vmatprep.subr.mxu1 %v5510_v19 }
 0x386   :  { %1499 = vmatpush1.msra.mxu0 %v5514_v21  ;;  %1570 = vmatpush1.msra.mxu1 %v5516_v22 }
 0x387   :  { %1500 = vmatprep.subr.mxu0 %v5520_v23  ;;  %1571 = vmatprep.subr.mxu1 %v5522_v24 }
 0x388   :  { %1501 = vmatpush1.msra.mxu0 %v5524_v25  ;;  %1572 = vmatpush1.msra.mxu1 %v5528_v26 }
 0x389   :  { %1502 = vmatprep.subr.mxu0 %v5530_v28  ;;  %1573 = vmatprep.subr.mxu1 %v5532_v30 }
 0x38a   :  { %1503 = vmatpush1.msra.mxu0 %v5536_v31  ;;  %1574 = vmatpush1.msra.mxu1 %v5538_v32 }
 0x38b   :  { %1504 = vmatprep.subr.mxu0 %v5540_v33  ;;  %1575 = vmatprep.subr.mxu1 %v5544_v34 }
 0x38c   :  { %1505 = vmatpush1.msra.mxu0 %v5546_v35  ;;  %1576 = vmatpush1.msra.mxu1 %v5548_v36 }
 0x38d   :  { %1506 = vmatprep.subr.mxu0 %v5552_v37  ;;  %1577 = vmatprep.subr.mxu1 %v5554_v39 }
 0x38e   :  { %1507 = vmatpush1.msra.mxu0 %v5558_v40  ;;  %1578 = vmatpush1.msra.mxu1 %v5560_v41 }
 0x38f   :  { %1508 = vmatprep.subr.mxu0 %v5564_v42  ;;  %1579 = vmatprep.subr.mxu1 %v5566_v43 }
 0x390   :  { %1509 = vmatpush1.msra.mxu0 %v5570_v44  ;;  %1580 = vmatpush1.msra.mxu1 %v7201_v63 }
 0x391   :  { %1510 = vmatprep.subr.mxu0 %v7202_v51  ;;  %1581 = vmatprep.subr.mxu1 %v7203_v45 }
 0x392   :  { %1511 = vmatpush1.msra.mxu0 %v7204_v46  ;;  %1582 = vmatpush1.msra.mxu1 %v7205_v49  ;;  %v7223_v49 = vld [vmem:[#allocation45_spill] sm:$0xff] }
 0x393   :  { %1512 = vmatprep.subr.mxu0 %v7206_v59  ;;  %1583 = vmatprep.subr.mxu1 %v7207_v38 }
 0x394   :  { %1513 = vmatpush1.msra.mxu0 %v7208_v53  ;;  %1584 = vmatpush1.msra.mxu1 %v7209_v54  ;;  %v7219_v54 = vld [vmem:[#allocation16_spill] sm:$0xff] }
 0x395   :  { %1514 = vmatprep.subr.mxu0 %v7210_v62  ;;  %1585 = vmatprep.subr.mxu1 %v7211_v4  ;;  %v7220_v62 = vld [vmem:[#allocation17_spill] sm:$0xff] }
 0x396   :  { %1515 = vmatpush1.msra.mxu0 %v7212_v50  ;;  %1586 = vmatpush1.msra.mxu1 %v7213_v1  ;;  %v7221_v50 = vld [vmem:[#allocation44_spill] sm:$0xff] }
 0x397   :  { %1516 = vmatprep.subr.mxu0 %v7214_v11  ;;  %1587 = vmatprep.subr.mxu1 %v7215_v3  ;;  %v7222_v11 = vld [vmem:[#allocation46_spill] sm:$0xff] }
 0x398   :  { %1517 = vmatpush1.msra.mxu0 %v7216_v27  ;;  %1550 = vmatprep.mubr.f32.mxu0 %v7217_v2 }
 0x399   :  { %1588 = vmatpush1.msra.mxu1 %v7218_v48  ;;  %1621 = vmatprep.mubr.f32.mxu1 %v7217_v2  ;;  %v7224_v2 = vld [vmem:[#allocation47_spill] sm:$0xff] }
 0x39a   :  { %1727 = vmatprep.subr.mxu0 %v7219_v54  ;;  %1798 = vmatprep.subr.mxu1 %v7220_v62 }
 0x439   :  { %v1311_v4 = vpop.f32.mrf.mxu0  ;;  %v1382_v27 = vpop.f32.mrf.mxu1 }
 0x43a   :  { %v1387_v53 = vadd.f32 %v1311_v4, %v7221_v50  ;;  %v1389_v46 = vadd.f32 %v1382_v27, %v7223_v49  ;;  %v7231_v27 = vld [vmem:[#allocation23_spill] sm:$0xff] }
 0x43b   :  { %v1313_v1 = vpop.f32.mrf.mxu0  ;;  %v1384_v48 = vpop.f32.mrf.mxu1 }
 0x43c   :  { %v4313_v38 = vmul.f32 -1.442695, %v1387_v53  ;;  %v1388_v59 = vadd.f32 %v1313_v1, %v7222_v11  ;;  %v4315_v45 = vmul.f32 -1.442695, %v1389_v46  ;;  %v1390_v51 = vadd.f32 %v1384_v48, %v7224_v2  ;;  %v7232_v2 = vld [vmem:[#allocation24_spill] sm:$0xff] }
 0x43e   :  { %4466 = vpow2.f32 %v4313_v38  ;;  %v4314_v3 = vmul.f32 -1.442695, %v1388_v59 }
 0x440   :  { %4468 = vpow2.f32 %v4314_v3 }
 0x441   :  { %4470 = vpow2.f32 %v4315_v45 }
 0x442   :  { %4472 = vtanh.f32 %v1390_v51  ;;  %v7228_v51 = vld [vmem:[#allocation20_spill] sm:$0xff] }
 0x44b   :  { %v4467_v54 = vpop.eup %4466 }
 0x44c   :  { %v1400_v63 = vadd.f32 1.0, %v4467_v54  ;;  %v7229_v54 = vld [vmem:[#allocation21_spill] sm:$0xff] }
 0x44d   :  { %v4469_v62 = vpop.eup %4468 }
 0x44e   :  { %4474 = vrcp.f32 %v1400_v63  ;;  %v1401_v4 = vadd.f32 1.0, %v4469_v62  ;;  %v4471_v53 = vpop.eup %4470  ;;  %v7227_v63 = vld [vmem:[#allocation19_spill] sm:$0xff]  ;;  %v7230_v62 = vld [vmem:[#allocation22_spill] sm:$0xff] }
 0x44f   :  { %v4473_v50 = vpop.eup %4472  ;;  %v1402_v11 = vadd.f32 1.0, %v4471_v53  ;;  %v7234_v53 = vld [vmem:[#allocation26_spill] sm:$0xff] }
 0x450   :  { %4476 = vrcp.f32 %v1401_v4  ;;  %v7233_v4 = vld [vmem:[#allocation25_spill] sm:$0xff] }
 0x451   :  { %4478 = vrcp.f32 %v1402_v11  ;;  %v7239_v11 = vld [vmem:[#allocation31_spill] sm:$0xff] }
 0x45b   :  { %v4475_v38 = vpop.eup %4474 }
 0x45c   :  { %v1411_v59 = vmul.f32 %v4475_v38, %v4473_v50  ;;  %v7235_v50 = vld [vmem:[#allocation27_spill] sm:$0xff]  ;;  %v7236_v38 = vld [vmem:[#allocation28_spill] sm:$0xff] }
 0x45d   :  { %v4477_v1 = vpop.eup %4476 }
 0x45e   :  { %v1410_v49 = vmul.f32 %v4477_v1, %v5635_v61  ;;  %v4479_v48 = vpop.eup %4478  ;;  %v7226_v61 = vld [vmem:[#allocation18_spill] sm:$0xff] }
 0x45f   :  { %v7238_v1 = vld [vmem:[#allocation30_spill] sm:$0xff] }
 0x460   :  { %v5713_v3 = vadd.f32 %v1411_v59, %v1410_v49  ;;  %v7237_v59 = vld [vmem:[#allocation29_spill] sm:$0xff]  ;;  %v7240_v49 = vld [vmem:[#allocation32_spill] sm:$0xff] }
 0x462   :  { %4480 = vtanh.f32 %v5713_v3 }
 0x46f   :  { %v4481_v45 = vpop.eup %4480 }
 0x470   :  { %v5716_v46 = vmul.f32 %v4481_v45, %v4479_v48  ;;  %v7241_v48 = vld [vmem:[#allocation33_spill] sm:$0xff]  ;;  %v7242_v45 = vmov 0.0  }
 0x472   :  { %7225 = vst [vmem:[#allocation38_spill] sm:$0xff] %v5716_v46  ;;  %1551 = vmatmul.mubr.f32.vlgmr.msra.gmra.mxu0 %v5716_v46  ;;  %1622 = vmatmul.mubr.f32.vlgmr.msra.gmra.mxu1 %v5716_v46  ;;  %v7243_v46 = vld [vmem:[#allocation34_spill] sm:$0xff] }
 0x473   :  { %1728 = vmatpush1.msra.mxu0 %v5442_v55  ;;  %1799 = vmatpush1.msra.mxu1 %v5444_v20 }
 0x474   :  { %1729 = vmatprep.subr.mxu0 %v5448_v29  ;;  %1800 = vmatprep.subr.mxu1 %v5450_v0 }
 0x475   :  { %1730 = vmatpush1.msra.mxu0 %v5454_v52  ;;  %1801 = vmatpush1.msra.mxu1 %v5456_v47 }
 0x476   :  { %1731 = vmatprep.subr.mxu0 %v5460_v57  ;;  %1802 = vmatprep.subr.mxu1 %v5462_v56 }
 0x477   :  { %1732 = vmatpush1.msra.mxu0 %v5466_v58  ;;  %1803 = vmatpush1.msra.mxu1 %v5468_v60 }
 0x478   :  { %1733 = vmatprep.subr.mxu0 %v5472_v5  ;;  %1804 = vmatprep.subr.mxu1 %v5474_v6 }
 0x479   :  { %1734 = vmatpush1.msra.mxu0 %v5478_v7  ;;  %1805 = vmatpush1.msra.mxu1 %v5480_v8 }
 0x47a   :  { %1735 = vmatprep.subr.mxu0 %v5484_v9  ;;  %1806 = vmatprep.subr.mxu1 %v5486_v10 }
 0x47b   :  { %1736 = vmatpush1.msra.mxu0 %v5490_v12  ;;  %1807 = vmatpush1.msra.mxu1 %v5492_v13 }
 0x47c   :  { %1737 = vmatprep.subr.mxu0 %v5496_v14  ;;  %1808 = vmatprep.subr.mxu1 %v5498_v15 }
 0x47d   :  { %1738 = vmatpush1.msra.mxu0 %v5502_v16  ;;  %1809 = vmatpush1.msra.mxu1 %v5504_v17 }
 0x47e   :  { %1739 = vmatprep.subr.mxu0 %v5508_v18  ;;  %1810 = vmatprep.subr.mxu1 %v5510_v19 }
 0x47f   :  { %1740 = vmatpush1.msra.mxu0 %v5514_v21  ;;  %1811 = vmatpush1.msra.mxu1 %v5516_v22 }
 0x480   :  { %1741 = vmatprep.subr.mxu0 %v5520_v23  ;;  %1812 = vmatprep.subr.mxu1 %v5522_v24 }
 0x481   :  { %1742 = vmatpush1.msra.mxu0 %v5524_v25  ;;  %1813 = vmatpush1.msra.mxu1 %v5528_v26 }
 0x482   :  { %1743 = vmatprep.subr.mxu0 %v5530_v28  ;;  %1814 = vmatprep.subr.mxu1 %v5532_v30 }
 0x483   :  { %1744 = vmatpush1.msra.mxu0 %v5536_v31  ;;  %1815 = vmatpush1.msra.mxu1 %v5538_v32 }
 0x484   :  { %1745 = vmatprep.subr.mxu0 %v5540_v33  ;;  %1816 = vmatprep.subr.mxu1 %v5544_v34 }
 0x485   :  { %1746 = vmatpush1.msra.mxu0 %v5546_v35  ;;  %1817 = vmatpush1.msra.mxu1 %v5548_v36 }
 0x486   :  { %1747 = vmatprep.subr.mxu0 %v5552_v37  ;;  %1818 = vmatprep.subr.mxu1 %v5554_v39 }
 0x487   :  { %1748 = vmatpush1.msra.mxu0 %v5558_v40  ;;  %1819 = vmatpush1.msra.mxu1 %v5560_v41 }
 0x488   :  { %1749 = vmatprep.subr.mxu0 %v5564_v42  ;;  %1820 = vmatprep.subr.mxu1 %v5566_v43 }
 0x489   :  { %1750 = vmatpush1.msra.mxu0 %v5570_v44  ;;  %1821 = vmatpush1.msra.mxu1 %v7226_v61 }
 0x48a   :  { %1751 = vmatprep.subr.mxu0 %v7227_v63  ;;  %1822 = vmatprep.subr.mxu1 %v7228_v51 }
 0x48b   :  { %1752 = vmatpush1.msra.mxu0 %v7229_v54  ;;  %1823 = vmatpush1.msra.mxu1 %v7230_v62  ;;  %v7248_v62 = vld [vmem:[#allocation49_spill] sm:$0xff] }
 0x48c   :  { %1753 = vmatprep.subr.mxu0 %v7231_v27  ;;  %1824 = vmatprep.subr.mxu1 %v7232_v2 }
 0x48d   :  { %1754 = vmatpush1.msra.mxu0 %v7233_v4  ;;  %1825 = vmatpush1.msra.mxu1 %v7234_v53  ;;  %v7244_v53 = vld [vmem:[#allocation16_spill] sm:$0xff] }
 0x48e   :  { %1755 = vmatprep.subr.mxu0 %v7235_v50  ;;  %1826 = vmatprep.subr.mxu1 %v7236_v38  ;;  %v7245_v50 = vld [vmem:[#allocation17_spill] sm:$0xff] }
 0x48f   :  { %1756 = vmatpush1.msra.mxu0 %v7237_v59  ;;  %1827 = vmatpush1.msra.mxu1 %v7238_v1  ;;  %v7246_v59 = vld [vmem:[#allocation48_spill] sm:$0xff] }
 0x490   :  { %1757 = vmatprep.subr.mxu0 %v7239_v11  ;;  %1828 = vmatprep.subr.mxu1 %v7240_v49  ;;  %v7247_v11 = vld [vmem:[#allocation50_spill] sm:$0xff] }
 0x491   :  { %1758 = vmatpush1.msra.mxu0 %v7241_v48  ;;  %1791 = vmatprep.mubr.f32.mxu0 %v7242_v45 }
 0x492   :  { %1829 = vmatpush1.msra.mxu1 %v7243_v46  ;;  %1862 = vmatprep.mubr.f32.mxu1 %v7242_v45  ;;  %v7249_v45 = vld [vmem:[#allocation51_spill] sm:$0xff] }
 0x493   :  { %1968 = vmatprep.subr.mxu0 %v7244_v53  ;;  %2039 = vmatprep.subr.mxu1 %v7245_v50 }
 0x532   :  { %v1552_v38 = vpop.f32.mrf.mxu0  ;;  %v1623_v48 = vpop.f32.mrf.mxu1 }
 0x533   :  { %v1628_v4 = vadd.f32 %v1552_v38, %v7246_v59  ;;  %v1630_v54 = vadd.f32 %v1623_v48, %v7248_v62  ;;  %v2206_v48 = vld [vmem:[#allocation6 + $0x1e8] sm:$0xff] }
 0x534   :  { %v1554_v1 = vpop.f32.mrf.mxu0  ;;  %v1625_v46 = vpop.f32.mrf.mxu1 }
 0x535   :  { %v4316_v2 = vmul.f32 -1.442695, %v1628_v4  ;;  %v1629_v27 = vadd.f32 %v1554_v1, %v7247_v11  ;;  %v4318_v51 = vmul.f32 -1.442695, %v1630_v54  ;;  %v1631_v63 = vadd.f32 %v1625_v46, %v7249_v45  ;;  %v2208_v45 = vld [vmem:[#allocation6 + $0x1f8] sm:$0xff] }
 0x537   :  { %4482 = vpow2.f32 %v4316_v2  ;;  %v4317_v49 = vmul.f32 -1.442695, %v1629_v27 }
 0x539   :  { %4484 = vpow2.f32 %v4317_v49 }
 0x53a   :  { %4486 = vpow2.f32 %v4318_v51 }
 0x53b   :  { %4488 = vtanh.f32 %v1631_v63 }
 0x544   :  { %v4483_v53 = vpop.eup %4482 }
 0x545   :  { %v1641_v61 = vadd.f32 1.0, %v4483_v53  ;;  %v2205_v53 = vld [vmem:[#allocation6 + $0x1e0] sm:$0xff] }
 0x546   :  { %v4485_v50 = vpop.eup %4484 }
 0x547   :  { %4490 = vrcp.f32 %v1641_v61  ;;  %v1642_v38 = vadd.f32 1.0, %v4485_v50  ;;  %v4487_v4 = vpop.eup %4486  ;;  %v2207_v50 = vld [vmem:[#allocation6 + $0x1f0] sm:$0xff] }
 0x548   :  { %v4489_v59 = vpop.eup %4488  ;;  %v1643_v11 = vadd.f32 1.0, %v4487_v4  ;;  %v2204_v4 = vld [vmem:[#allocation6 + $0x1d8] sm:$0xff] }
 0x549   :  { %4492 = vrcp.f32 %v1642_v38  ;;  %v2202_v38 = vld [vmem:[#allocation6 + $0x1c8] sm:$0xff] }
 0x54a   :  { %4494 = vrcp.f32 %v1643_v11  ;;  %v2197_v11 = vld [vmem:[#allocation6 + $0x1a0] sm:$0xff] }
 0x554   :  { %v4491_v2 = vpop.eup %4490 }
 0x555   :  { %v1652_v27 = vmul.f32 %v4491_v2, %v4489_v59  ;;  %v2201_v59 = vld [vmem:[#allocation6 + $0x1c0] sm:$0xff]  ;;  %v2203_v2 = vld [vmem:[#allocation6 + $0x1d0] sm:$0xff] }
 0x556   :  { %v4493_v1 = vpop.eup %4492 }
 0x557   :  { %v1651_v62 = vmul.f32 %v4493_v1, %v5713_v3  ;;  %v4495_v46 = vpop.eup %4494  ;;  %v2200_v1 = vld [vmem:[#allocation6 + $0x1b8] sm:$0xff] }
 0x559   :  { %v5791_v49 = vadd.f32 %v1652_v27, %v1651_v62  ;;  %v2198_v27 = vld [vmem:[#allocation6 + $0x1a8] sm:$0xff]  ;;  %v2199_v62 = vld [vmem:[#allocation6 + $0x1b0] sm:$0xff] }
 0x55b   :  { %4496 = vtanh.f32 %v5791_v49 }
 0x568   :  { %v4497_v51 = vpop.eup %4496 }
 0x569   :  { %v5794_v54 = vmul.f32 %v4497_v51, %v4495_v46  ;;  %v2196_v46 = vld [vmem:[#allocation6 + $0x198] sm:$0xff]  ;;  %v2193_v51 = vld [vmem:[#allocation6 + $0x180] sm:$0xff] }
 0x56b   :  { %1792 = vmatmul.mubr.f32.vlgmr.msra.gmra.mxu0 %v5794_v54  ;;  %1863 = vmatmul.mubr.f32.vlgmr.msra.gmra.mxu1 %v5794_v54 }
 0x56c   :  { %1969 = vmatpush1.msra.mxu0 %v5442_v55  ;;  %2040 = vmatpush1.msra.mxu1 %v5444_v20  ;;  %v7250_v55 = vld [vmem:[#allocation18_spill] sm:$0xff]  ;;  %v7251_v20 = vld [vmem:[#allocation19_spill] sm:$0xff] }
 0x56d   :  { %1970 = vmatprep.subr.mxu0 %v5448_v29  ;;  %2041 = vmatprep.subr.mxu1 %v5450_v0  ;;  %v7252_v29 = vld [vmem:[#allocation20_spill] sm:$0xff]  ;;  %v7253_v0 = vld [vmem:[#allocation21_spill] sm:$0xff] }
 0x56e   :  { %1971 = vmatpush1.msra.mxu0 %v5454_v52  ;;  %2042 = vmatpush1.msra.mxu1 %v5456_v47  ;;  %v7254_v52 = vld [vmem:[#allocation22_spill] sm:$0xff]  ;;  %v7255_v47 = vld [vmem:[#allocation23_spill] sm:$0xff] }
 0x56f   :  { %1972 = vmatprep.subr.mxu0 %v5460_v57  ;;  %2043 = vmatprep.subr.mxu1 %v5462_v56  ;;  %v7256_v57 = vld [vmem:[#allocation24_spill] sm:$0xff]  ;;  %v7257_v56 = vld [vmem:[#allocation25_spill] sm:$0xff] }
 0x570   :  { %1973 = vmatpush1.msra.mxu0 %v5466_v58  ;;  %2044 = vmatpush1.msra.mxu1 %v5468_v60  ;;  %v7258_v58 = vld [vmem:[#allocation26_spill] sm:$0xff]  ;;  %v7259_v60 = vld [vmem:[#allocation27_spill] sm:$0xff] }
 0x571   :  { %1974 = vmatprep.subr.mxu0 %v5472_v5  ;;  %2045 = vmatprep.subr.mxu1 %v5474_v6  ;;  %v7260_v5 = vld [vmem:[#allocation28_spill] sm:$0xff]  ;;  %v7261_v6 = vld [vmem:[#allocation29_spill] sm:$0xff] }
 0x572   :  { %1975 = vmatpush1.msra.mxu0 %v5478_v7  ;;  %2046 = vmatpush1.msra.mxu1 %v5480_v8  ;;  %v7262_v7 = vld [vmem:[#allocation30_spill] sm:$0xff]  ;;  %v7263_v8 = vld [vmem:[#allocation31_spill] sm:$0xff] }
 0x573   :  { %1976 = vmatprep.subr.mxu0 %v5484_v9  ;;  %2047 = vmatprep.subr.mxu1 %v5486_v10  ;;  %v7264_v9 = vld [vmem:[#allocation32_spill] sm:$0xff]  ;;  %v7265_v10 = vld [vmem:[#allocation33_spill] sm:$0xff] }
 0x574   :  { %1977 = vmatpush1.msra.mxu0 %v5490_v12  ;;  %2048 = vmatpush1.msra.mxu1 %v5492_v13  ;;  %v7266_v12 = vmov 0.0   ;;  %v7267_v13 = vld [vmem:[#allocation34_spill] sm:$0xff] }
 0x575   :  { %1978 = vmatprep.subr.mxu0 %v5496_v14  ;;  %2049 = vmatprep.subr.mxu1 %v5498_v15  ;;  %v7268_v15 = vld [vmem:[#allocation52_spill] sm:$0xff] }
 0x576   :  { %1979 = vmatpush1.msra.mxu0 %v5502_v16  ;;  %2050 = vmatpush1.msra.mxu1 %v5504_v17 }
 0x577   :  { %1980 = vmatprep.subr.mxu0 %v5508_v18  ;;  %2051 = vmatprep.subr.mxu1 %v5510_v19  ;;  %v7269_v19 = vld [vmem:[#allocation54_spill] sm:$0xff] }
 0x578   :  { %1981 = vmatpush1.msra.mxu0 %v5514_v21  ;;  %2052 = vmatpush1.msra.mxu1 %v5516_v22 }
 0x579   :  { %1982 = vmatprep.subr.mxu0 %v5520_v23  ;;  %2053 = vmatprep.subr.mxu1 %v5522_v24  ;;  %v7270_v24 = vld [vmem:[#allocation53_spill] sm:$0xff] }
 0x57a   :  { %1983 = vmatpush1.msra.mxu0 %v5524_v25  ;;  %2054 = vmatpush1.msra.mxu1 %v5528_v26 }
 0x57b   :  { %1984 = vmatprep.subr.mxu0 %v5530_v28  ;;  %2055 = vmatprep.subr.mxu1 %v5532_v30  ;;  %v7271_v30 = vld [vmem:[#allocation55_spill] sm:$0xff] }
 0x57c   :  { %1985 = vmatpush1.msra.mxu0 %v5536_v31  ;;  %2056 = vmatpush1.msra.mxu1 %v5538_v32 }
 0x57d   :  { %1986 = vmatprep.subr.mxu0 %v5540_v33  ;;  %2057 = vmatprep.subr.mxu1 %v5544_v34 }
 0x57e   :  { %1987 = vmatpush1.msra.mxu0 %v5546_v35  ;;  %2058 = vmatpush1.msra.mxu1 %v5548_v36 }
 0x57f   :  { %1988 = vmatprep.subr.mxu0 %v5552_v37  ;;  %2059 = vmatprep.subr.mxu1 %v5554_v39 }
 0x580   :  { %1989 = vmatpush1.msra.mxu0 %v5558_v40  ;;  %2060 = vmatpush1.msra.mxu1 %v5560_v41 }
 0x581   :  { %1990 = vmatprep.subr.mxu0 %v5564_v42  ;;  %2061 = vmatprep.subr.mxu1 %v5566_v43 }
 0x582   :  { %1991 = vmatpush1.msra.mxu0 %v5570_v44  ;;  %2062 = vmatpush1.msra.mxu1 %v7250_v55  ;;  %v2195_v55 = vld [vmem:[#allocation6 + $0x190] sm:$0xff] }
 0x583   :  { %1992 = vmatprep.subr.mxu0 %v7251_v20  ;;  %2063 = vmatprep.subr.mxu1 %v7252_v29  ;;  %v2190_v20 = vld [vmem:[#allocation6 + $0x168] sm:$0xff]  ;;  %v2192_v29 = vld [vmem:[#allocation6 + $0x178] sm:$0xff] }
 0x584   :  { %1993 = vmatpush1.msra.mxu0 %v7253_v0  ;;  %2064 = vmatpush1.msra.mxu1 %v7254_v52  ;;  %v2189_v0 = vld [vmem:[#allocation6 + $0x160] sm:$0xff]  ;;  %v2191_v52 = vld [vmem:[#allocation6 + $0x170] sm:$0xff] }
 0x585   :  { %1994 = vmatprep.subr.mxu0 %v7255_v47  ;;  %2065 = vmatprep.subr.mxu1 %v7256_v57  ;;  %v2186_v47 = vld [vmem:[#allocation6 + $0x148] sm:$0xff]  ;;  %v2188_v57 = vld [vmem:[#allocation6 + $0x158] sm:$0xff] }
 0x586   :  { %1995 = vmatpush1.msra.mxu0 %v7257_v56  ;;  %2066 = vmatpush1.msra.mxu1 %v7258_v58  ;;  %v2185_v56 = vld [vmem:[#allocation6 + $0x140] sm:$0xff]  ;;  %v2187_v58 = vld [vmem:[#allocation6 + $0x150] sm:$0xff] }
 0x587   :  { %1996 = vmatprep.subr.mxu0 %v7259_v60  ;;  %2067 = vmatprep.subr.mxu1 %v7260_v5  ;;  %v2182_v60 = vld [vmem:[#allocation6 + $0x128] sm:$0xff]  ;;  %v2184_v5 = vld [vmem:[#allocation6 + $0x138] sm:$0xff] }
 0x588   :  { %1997 = vmatpush1.msra.mxu0 %v7261_v6  ;;  %2068 = vmatpush1.msra.mxu1 %v7262_v7  ;;  %v2181_v6 = vld [vmem:[#allocation6 + $0x120] sm:$0xff]  ;;  %v2183_v7 = vld [vmem:[#allocation6 + $0x130] sm:$0xff] }
 0x589   :  { %1998 = vmatprep.subr.mxu0 %v7263_v8  ;;  %2069 = vmatprep.subr.mxu1 %v7264_v9  ;;  %v2178_v8 = vld [vmem:[#allocation6 + $0x108] sm:$0xff]  ;;  %v2180_v9 = vld [vmem:[#allocation6 + $0x118] sm:$0xff] }
 0x58a   :  { %1999 = vmatpush1.msra.mxu0 %v7265_v10  ;;  %2032 = vmatprep.mubr.f32.mxu0 %v7266_v12  ;;  %v2177_v10 = vld [vmem:[#allocation6 + $0x100] sm:$0xff] }
 0x58b   :  { %2070 = vmatpush1.msra.mxu1 %v7267_v13  ;;  %2103 = vmatprep.mubr.f32.mxu1 %v7266_v12  ;;  %v2179_v13 = vld [vmem:[#allocation6 + $0x110] sm:$0xff] }
 0x58c   :  { %2209 = vmatprep.subr.mxu0 %v2206_v48  ;;  %2280 = vmatprep.subr.mxu1 %v2208_v45  ;;  %v2146_v48 = vld [vmem:[#allocation6 + $0x8] sm:$0xff]  ;;  %v2148_v45 = vld [vmem:[#allocation6 + $0x18] sm:$0xff] }
 0x62b   :  { %v1793_v14 = vpop.f32.mrf.mxu0  ;;  %v1864_v23 = vpop.f32.mrf.mxu1 }
 0x62c   :  { %v1869_v16 = vadd.f32 %v1793_v14, %v7268_v15  ;;  %v1871_v25 = vadd.f32 %v1864_v23, %v7270_v24  ;;  %v2174_v14 = vld [vmem:[#allocation6 + $0xe8] sm:$0xff]  ;;  %v2176_v15 = vld [vmem:[#allocation6 + $0xf8] sm:$0xff] }
 0x62d   :  { %v1795_v17 = vpop.f32.mrf.mxu0  ;;  %v1866_v26 = vpop.f32.mrf.mxu1  ;;  %v2166_v23 = vld [vmem:[#allocation6 + $0xa8] sm:$0xff]  ;;  %v2168_v24 = vld [vmem:[#allocation6 + $0xb8] sm:$0xff] }
 0x62e   :  { %v4319_v18 = vmul.f32 -1.442695, %v1869_v16  ;;  %v1870_v21 = vadd.f32 %v1795_v17, %v7269_v19  ;;  %v4321_v28 = vmul.f32 -1.442695, %v1871_v25  ;;  %v1872_v31 = vadd.f32 %v1866_v26, %v7271_v30  ;;  %v2173_v16 = vld [vmem:[#allocation6 + $0xe0] sm:$0xff]  ;;  %v2175_v17 = vld [vmem:[#allocation6 + $0xf0] sm:$0xff] }
 0x62f   :  { %v2172_v19 = vld [vmem:[#allocation6 + $0xd8] sm:$0xff]  ;;  %v2165_v25 = vld [vmem:[#allocation6 + $0xa0] sm:$0xff]  ;;  %v2167_v26 = vld [vmem:[#allocation6 + $0xb0] sm:$0xff] }
 0x630   :  { %4498 = vpow2.f32 %v4319_v18  ;;  %v4320_v22 = vmul.f32 -1.442695, %v1870_v21  ;;  %v2170_v18 = vld [vmem:[#allocation6 + $0xc8] sm:$0xff]  ;;  %v2169_v21 = vld [vmem:[#allocation6 + $0xc0] sm:$0xff]  ;;  %v2164_v30 = vld [vmem:[#allocation6 + $0x98] sm:$0xff] }
 0x632   :  { %4500 = vpow2.f32 %v4320_v22  ;;  %v2171_v22 = vld [vmem:[#allocation6 + $0xd0] sm:$0xff] }
 0x633   :  { %4502 = vpow2.f32 %v4321_v28  ;;  %v2162_v28 = vld [vmem:[#allocation6 + $0x88] sm:$0xff] }
 0x634   :  { %4504 = vtanh.f32 %v1872_v31  ;;  %v2161_v31 = vld [vmem:[#allocation6 + $0x80] sm:$0xff] }
 0x63d   :  { %v4499_v32 = vpop.eup %4498 }
 0x63e   :  { %v1882_v33 = vadd.f32 1.0, %v4499_v32  ;;  %v2163_v32 = vld [vmem:[#allocation6 + $0x90] sm:$0xff] }
 0x63f   :  { %v4501_v34 = vpop.eup %4500 }
 0x640   :  { %4506 = vrcp.f32 %v1882_v33  ;;  %v1883_v35 = vadd.f32 1.0, %v4501_v34  ;;  %v4503_v36 = vpop.eup %4502  ;;  %v2158_v33 = vld [vmem:[#allocation6 + $0x68] sm:$0xff]  ;;  %v2160_v34 = vld [vmem:[#allocation6 + $0x78] sm:$0xff] }
 0x641   :  { %v4505_v37 = vpop.eup %4504  ;;  %v1884_v42 = vadd.f32 1.0, %v4503_v36  ;;  %v2159_v36 = vld [vmem:[#allocation6 + $0x70] sm:$0xff] }
 0x642   :  { %4508 = vrcp.f32 %v1883_v35  ;;  %v2157_v35 = vld [vmem:[#allocation6 + $0x60] sm:$0xff] }
 0x643   :  { %4510 = vrcp.f32 %v1884_v42  ;;  %v2150_v42 = vld [vmem:[#allocation6 + $0x28] sm:$0xff] }
 0x64d   :  { %v4507_v39 = vpop.eup %4506 }
 0x64e   :  { %v1893_v40 = vmul.f32 %v4507_v39, %v4505_v37  ;;  %v2154_v37 = vld [vmem:[#allocation6 + $0x48] sm:$0xff]  ;;  %v2156_v39 = vld [vmem:[#allocation6 + $0x58] sm:$0xff] }
 0x64f   :  { %v4509_v41 = vpop.eup %4508 }
 0x650   :  { %v1892_v43 = vmul.f32 %v4509_v41, %v5791_v49  ;;  %v4511_v3 = vpop.eup %4510  ;;  %v2194_v49 = vld [vmem:[#allocation6 + $0x188] sm:$0xff]  ;;  %v2155_v41 = vld [vmem:[#allocation6 + $0x50] sm:$0xff] }
 0x652   :  { %v5867_v44 = vadd.f32 %v1893_v40, %v1892_v43  ;;  %v2153_v40 = vld [vmem:[#allocation6 + $0x40] sm:$0xff]  ;;  %v2152_v43 = vld [vmem:[#allocation6 + $0x38] sm:$0xff] }
 0x654   :  { %4512 = vtanh.f32 %v5867_v44 }
 0x661   :  { %v4513_v61 = vpop.eup %4512 }
 0x662   :  { %v5870_v63 = vmul.f32 %v4513_v61, %v4511_v3  ;;  %v2149_v3 = vld [vmem:[#allocation6 + $0x20] sm:$0xff]  ;;  %v2151_v61 = vld [vmem:[#allocation6 + $0x30] sm:$0xff] }
 0x664   :  { %2033 = vmatmul.mubr.f32.vlgmr.msra.gmra.mxu0 %v5870_v63  ;;  %2104 = vmatmul.mubr.f32.vlgmr.msra.gmra.mxu1 %v5870_v63 }
 0x665   :  { %2273 = vmatprep.mubr.f32.mxu0 %v7266_v12  ;;  %2344 = vmatprep.mubr.f32.mxu1 %v7266_v12 }
 0x666   :  { %2210 = vmatpush1.msra.mxu0 %v2205_v53  ;;  %2281 = vmatpush1.msra.mxu1 %v2207_v50  ;;  %v2145_v53 = vld [vmem:[#allocation6] sm:$0xff]  ;;  %v2147_v50 = vld [vmem:[#allocation6 + $0x10] sm:$0xff] }
 0x667   :  { %2211 = vmatprep.subr.mxu0 %v2202_v38  ;;  %2282 = vmatprep.subr.mxu1 %v2204_v4  ;;  %v2452_v38 = vld [vmem:[#allocation8 + $0x1e8] sm:$0xff]  ;;  %v2454_v4 = vld [vmem:[#allocation8 + $0x1f8] sm:$0xff] }
 0x668   :  { %2212 = vmatpush1.msra.mxu0 %v2201_v59  ;;  %2283 = vmatpush1.msra.mxu1 %v2203_v2  ;;  %v7272_v2 = vld [vmem:[#allocation56_spill] sm:$0xff] }
 0x669   :  { %2213 = vmatprep.subr.mxu0 %v2198_v27  ;;  %2284 = vmatprep.subr.mxu1 %v2200_v1 }
 0x66a   :  { %2214 = vmatpush1.msra.mxu0 %v2197_v11  ;;  %2285 = vmatpush1.msra.mxu1 %v2199_v62  ;;  %v7273_v62 = vld [vmem:[#allocation58_spill] sm:$0xff] }
 0x66b   :  { %2215 = vmatprep.subr.mxu0 %v2194_v49  ;;  %2286 = vmatprep.subr.mxu1 %v2196_v46 }
 0x66c   :  { %2216 = vmatpush1.msra.mxu0 %v2193_v51  ;;  %2287 = vmatpush1.msra.mxu1 %v2195_v55  ;;  %v7274_v55 = vld [vmem:[#allocation57_spill] sm:$0xff] }
 0x66d   :  { %2217 = vmatprep.subr.mxu0 %v2190_v20  ;;  %2288 = vmatprep.subr.mxu1 %v2192_v29 }
 0x66e   :  { %2218 = vmatpush1.msra.mxu0 %v2189_v0  ;;  %2289 = vmatpush1.msra.mxu1 %v2191_v52  ;;  %v7275_v52 = vld [vmem:[#allocation59_spill] sm:$0xff] }
 0x66f   :  { %2219 = vmatprep.subr.mxu0 %v2186_v47  ;;  %2290 = vmatprep.subr.mxu1 %v2188_v57 }
 0x670   :  { %2220 = vmatpush1.msra.mxu0 %v2185_v56  ;;  %2291 = vmatpush1.msra.mxu1 %v2187_v58 }
 0x671   :  { %2221 = vmatprep.subr.mxu0 %v2182_v60  ;;  %2292 = vmatprep.subr.mxu1 %v2184_v5 }
 0x672   :  { %2222 = vmatpush1.msra.mxu0 %v2181_v6  ;;  %2293 = vmatpush1.msra.mxu1 %v2183_v7 }
 0x673   :  { %2223 = vmatprep.subr.mxu0 %v2178_v8  ;;  %2294 = vmatprep.subr.mxu1 %v2180_v9 }
 0x674   :  { %2224 = vmatpush1.msra.mxu0 %v2177_v10  ;;  %2295 = vmatpush1.msra.mxu1 %v2179_v13 }
 0x675   :  { %2225 = vmatprep.subr.mxu0 %v2174_v14  ;;  %2296 = vmatprep.subr.mxu1 %v2176_v15 }
 0x676   :  { %2226 = vmatpush1.msra.mxu0 %v2173_v16  ;;  %2297 = vmatpush1.msra.mxu1 %v2175_v17 }
 0x677   :  { %2227 = vmatprep.subr.mxu0 %v2170_v18  ;;  %2298 = vmatprep.subr.mxu1 %v2172_v19  ;;  %v2451_v18 = vld [vmem:[#allocation8 + $0x1e0] sm:$0xff]  ;;  %v2453_v19 = vld [vmem:[#allocation8 + $0x1f0] sm:$0xff] }
 0x678   :  { %2228 = vmatpush1.msra.mxu0 %v2169_v21  ;;  %2299 = vmatpush1.msra.mxu1 %v2171_v22  ;;  %v2448_v21 = vld [vmem:[#allocation8 + $0x1c8] sm:$0xff]  ;;  %v2450_v22 = vld [vmem:[#allocation8 + $0x1d8] sm:$0xff] }
 0x679   :  { %2229 = vmatprep.subr.mxu0 %v2166_v23  ;;  %2300 = vmatprep.subr.mxu1 %v2168_v24  ;;  %v2447_v23 = vld [vmem:[#allocation8 + $0x1c0] sm:$0xff]  ;;  %v2449_v24 = vld [vmem:[#allocation8 + $0x1d0] sm:$0xff] }
 0x67a   :  { %2230 = vmatpush1.msra.mxu0 %v2165_v25  ;;  %2301 = vmatpush1.msra.mxu1 %v2167_v26  ;;  %v2446_v25 = vld [vmem:[#allocation8 + $0x1b8] sm:$0xff]  ;;  %v2443_v26 = vld [vmem:[#allocation8 + $0x1a0] sm:$0xff] }
 0x67b   :  { %2231 = vmatprep.subr.mxu0 %v2162_v28  ;;  %2302 = vmatprep.subr.mxu1 %v2164_v30  ;;  %v2445_v28 = vld [vmem:[#allocation8 + $0x1b0] sm:$0xff]  ;;  %v2440_v30 = vld [vmem:[#allocation8 + $0x188] sm:$0xff] }
 0x67c   :  { %2232 = vmatpush1.msra.mxu0 %v2161_v31  ;;  %2303 = vmatpush1.msra.mxu1 %v2163_v32  ;;  %v2442_v31 = vld [vmem:[#allocation8 + $0x198] sm:$0xff]  ;;  %v2439_v32 = vld [vmem:[#allocation8 + $0x180] sm:$0xff] }
 0x67d   :  { %2233 = vmatprep.subr.mxu0 %v2158_v33  ;;  %2304 = vmatprep.subr.mxu1 %v2160_v34  ;;  %v2441_v33 = vld [vmem:[#allocation8 + $0x190] sm:$0xff]  ;;  %v2436_v34 = vld [vmem:[#allocation8 + $0x168] sm:$0xff] }
 0x67e   :  { %2234 = vmatpush1.msra.mxu0 %v2157_v35  ;;  %2305 = vmatpush1.msra.mxu1 %v2159_v36  ;;  %v2438_v35 = vld [vmem:[#allocation8 + $0x178] sm:$0xff]  ;;  %v2435_v36 = vld [vmem:[#allocation8 + $0x160] sm:$0xff] }
 0x67f   :  { %2235 = vmatprep.subr.mxu0 %v2154_v37  ;;  %2306 = vmatprep.subr.mxu1 %v2156_v39  ;;  %v2437_v37 = vld [vmem:[#allocation8 + $0x170] sm:$0xff]  ;;  %v2432_v39 = vld [vmem:[#allocation8 + $0x148] sm:$0xff] }
 0x680   :  { %2236 = vmatpush1.msra.mxu0 %v2153_v40  ;;  %2307 = vmatpush1.msra.mxu1 %v2155_v41  ;;  %v2434_v40 = vld [vmem:[#allocation8 + $0x158] sm:$0xff]  ;;  %v2431_v41 = vld [vmem:[#allocation8 + $0x140] sm:$0xff] }
 0x681   :  { %2237 = vmatprep.subr.mxu0 %v2150_v42  ;;  %2308 = vmatprep.subr.mxu1 %v2152_v43  ;;  %v2433_v42 = vld [vmem:[#allocation8 + $0x150] sm:$0xff]  ;;  %v2428_v43 = vld [vmem:[#allocation8 + $0x128] sm:$0xff] }
 0x682   :  { %2238 = vmatpush1.msra.mxu0 %v2149_v3  ;;  %2309 = vmatpush1.msra.mxu1 %v2151_v61  ;;  %v2430_v3 = vld [vmem:[#allocation8 + $0x138] sm:$0xff]  ;;  %v2427_v61 = vld [vmem:[#allocation8 + $0x120] sm:$0xff] }
 0x683   :  { %2239 = vmatprep.subr.mxu0 %v2146_v48  ;;  %2310 = vmatprep.subr.mxu1 %v2148_v45  ;;  %v2429_v48 = vld [vmem:[#allocation8 + $0x130] sm:$0xff]  ;;  %v2424_v45 = vld [vmem:[#allocation8 + $0x108] sm:$0xff] }
 0x684   :  { %2240 = vmatpush1.msra.mxu0 %v2145_v53  ;;  %2311 = vmatpush1.msra.mxu1 %v2147_v50  ;;  %v2426_v53 = vld [vmem:[#allocation8 + $0x118] sm:$0xff]  ;;  %v2423_v50 = vld [vmem:[#allocation8 + $0x100] sm:$0xff] }
 0x685   :  { %2477 = vmatprep.subr.mxu0 %v2452_v38  ;;  %2590 = vmatprep.subr.mxu1 %v2454_v4  ;;  %v2425_v38 = vld [vmem:[#allocation8 + $0x110] sm:$0xff]  ;;  %v2420_v4 = vld [vmem:[#allocation8 + $0xe8] sm:$0xff] }
 0x724   :  { %v2034_v59 = vpop.f32.mrf.mxu0  ;;  %v2105_v51 = vpop.f32.mrf.mxu1 }
 0x725   :  { %v2110_v27 = vadd.f32 %v2034_v59, %v7272_v2  ;;  %v2112_v20 = vadd.f32 %v2105_v51, %v7274_v55  ;;  %v2422_v59 = vld [vmem:[#allocation8 + $0xf8] sm:$0xff]  ;;  %v2419_v2 = vld [vmem:[#allocation8 + $0xe0] sm:$0xff] }
 0x726   :  { %v2036_v1 = vpop.f32.mrf.mxu0  ;;  %v2107_v29 = vpop.f32.mrf.mxu1  ;;  %v2414_v51 = vld [vmem:[#allocation8 + $0xb8] sm:$0xff]  ;;  %v2411_v55 = vld [vmem:[#allocation8 + $0xa0] sm:$0xff] }
 0x727   :  { %v4322_v11 = vmul.f32 -1.442695, %v2110_v27  ;;  %v2111_v49 = vadd.f32 %v2036_v1, %v7273_v62  ;;  %v4324_v0 = vmul.f32 -1.442695, %v2112_v20  ;;  %v2113_v47 = vadd.f32 %v2107_v29, %v7275_v52  ;;  %v2421_v27 = vld [vmem:[#allocation8 + $0xf0] sm:$0xff]  ;;  %v2416_v1 = vld [vmem:[#allocation8 + $0xc8] sm:$0xff] }
 0x728   :  { %v2415_v62 = vld [vmem:[#allocation8 + $0xc0] sm:$0xff]  ;;  %v2413_v20 = vld [vmem:[#allocation8 + $0xb0] sm:$0xff]  ;;  %v2408_v29 = vld [vmem:[#allocation8 + $0x88] sm:$0xff] }
 0x729   :  { %4514 = vpow2.f32 %v4322_v11  ;;  %v4323_v46 = vmul.f32 -1.442695, %v2111_v49  ;;  %v2418_v11 = vld [vmem:[#allocation8 + $0xd8] sm:$0xff]  ;;  %v2417_v49 = vld [vmem:[#allocation8 + $0xd0] sm:$0xff]  ;;  %v2407_v52 = vld [vmem:[#allocation8 + $0x80] sm:$0xff] }
 0x72b   :  { %4516 = vpow2.f32 %v4323_v46  ;;  %v2412_v46 = vld [vmem:[#allocation8 + $0xa8] sm:$0xff] }
 0x72c   :  { %4518 = vpow2.f32 %v4324_v0  ;;  %v2410_v0 = vld [vmem:[#allocation8 + $0x98] sm:$0xff] }
 0x72d   :  { %4520 = vtanh.f32 %v2113_v47  ;;  %v2409_v47 = vld [vmem:[#allocation8 + $0x90] sm:$0xff] }
 0x736   :  { %v4515_v57 = vpop.eup %4514 }
 0x737   :  { %v2123_v56 = vadd.f32 1.0, %v4515_v57  ;;  %v2404_v57 = vld [vmem:[#allocation8 + $0x68] sm:$0xff] }
 0x738   :  { %v4517_v58 = vpop.eup %4516 }
 0x739   :  { %4522 = vrcp.f32 %v2123_v56  ;;  %v2124_v60 = vadd.f32 1.0, %v4517_v58  ;;  %v4519_v5 = vpop.eup %4518  ;;  %v2406_v56 = vld [vmem:[#allocation8 + $0x78] sm:$0xff]  ;;  %v2403_v58 = vld [vmem:[#allocation8 + $0x60] sm:$0xff] }
 0x73a   :  { %v4521_v6 = vpop.eup %4520  ;;  %v2125_v10 = vadd.f32 1.0, %v4519_v5  ;;  %v2400_v5 = vld [vmem:[#allocation8 + $0x48] sm:$0xff] }
 0x73b   :  { %4524 = vrcp.f32 %v2124_v60  ;;  %v2405_v60 = vld [vmem:[#allocation8 + $0x70] sm:$0xff] }
 0x73c   :  { %4526 = vrcp.f32 %v2125_v10  ;;  %v2398_v10 = vld [vmem:[#allocation8 + $0x38] sm:$0xff] }
 0x746   :  { %v4523_v7 = vpop.eup %4522 }
 0x747   :  { %v2134_v8 = vmul.f32 %v4523_v7, %v4521_v6  ;;  %v2402_v6 = vld [vmem:[#allocation8 + $0x58] sm:$0xff]  ;;  %v2399_v7 = vld [vmem:[#allocation8 + $0x40] sm:$0xff] }
 0x748   :  { %v4525_v9 = vpop.eup %4524 }
 0x749   :  { %v2133_v13 = vmul.f32 %v4525_v9, %v5867_v44  ;;  %v4527_v15 = vpop.eup %4526  ;;  %v2444_v44 = vld [vmem:[#allocation8 + $0x1a8] sm:$0xff] }
 0x74a   :  { %v2396_v9 = vld [vmem:[#allocation8 + $0x28] sm:$0xff] }
 0x74b   :  { %v5881_v14 = vadd.f32 %v2134_v8, %v2133_v13  ;;  %v2401_v8 = vld [vmem:[#allocation8 + $0x50] sm:$0xff]  ;;  %v2395_v13 = vld [vmem:[#allocation8 + $0x20] sm:$0xff] }
 0x74d   :  { %4528 = vtanh.f32 %v5881_v14 }
 0x75a   :  { %v4529_v16 = vpop.eup %4528 }
 0x75b   :  { %v5884_v17 = vmul.f32 %v4529_v16, %v4527_v15  ;;  %v2397_v15 = vld [vmem:[#allocation8 + $0x30] sm:$0xff]  ;;  %v2392_v16 = vld [vmem:[#allocation8 + $0x8] sm:$0xff] }
 0x75d   :  { %2274 = vmatmul.mubr.f32.vlgmr.msra.gmra.mxu0 %v5884_v17  ;;  %2345 = vmatmul.mubr.f32.vlgmr.msra.gmra.mxu1 %v5884_v17 }
 0x75e   :  { %2478 = vmatpush1.msra.mxu0 %v2451_v18  ;;  %2591 = vmatpush1.msra.mxu1 %v2453_v19  ;;  %v2394_v18 = vld [vmem:[#allocation8 + $0x18] sm:$0xff]  ;;  %v2391_v19 = vld [vmem:[#allocation8] sm:$0xff] }
 0x75f   :  { %2479 = vmatprep.subr.mxu0 %v2448_v21  ;;  %2592 = vmatprep.subr.mxu1 %v2450_v22  ;;  %v2393_v21 = vld [vmem:[#allocation8 + $0x10] sm:$0xff]  ;;  %v7276_v22 = vld [vmem:[#allocation64_spill] sm:$0xff] }
 0x760   :  { %2480 = vmatpush1.msra.mxu0 %v2447_v23  ;;  %2593 = vmatpush1.msra.mxu1 %v2449_v24  ;;  %v7277_v23 = vld [vmem:[#allocation15_spill] sm:$0xff] }
 0x761   :  { %2481 = vmatprep.subr.mxu0 %v2444_v44  ;;  %2594 = vmatprep.subr.mxu1 %v2446_v25  ;;  %v7278_v24 = vld [vmem:[#allocation35_spill] sm:$0xff]  ;;  %v7279_v44 = vld [vmem:[#allocation38_spill] sm:$0xff] }
 0x762   :  { %2482 = vmatpush1.msra.mxu0 %v2443_v26  ;;  %2595 = vmatpush1.msra.mxu1 %v2445_v28  ;;  %v5920_v25 = vld [vmem:[#allocation9 + $0x1f8] sm:$0xff]  ;;  %v5926_v26 = vld [vmem:[#allocation9 + $0x1f0] sm:$0xff] }
 0x763   :  { %2483 = vmatprep.subr.mxu0 %v2440_v30  ;;  %2596 = vmatprep.subr.mxu1 %v2442_v31  ;;  %7281 = vst [vmem:[#allocation39_spill] sm:$0xff] %v5920_v25  ;;  %v5932_v28 = vld [vmem:[#allocation9 + $0x1d8] sm:$0xff]  ;;  %v5936_v30 = vld [vmem:[#allocation9 + $0x1c0] sm:$0xff]  ;;  %v5938_v31 = vld [vmem:[#allocation9 + $0x1d0] sm:$0xff] }
 0x764   :  { %2484 = vmatpush1.msra.mxu0 %v2439_v32  ;;  %2597 = vmatpush1.msra.mxu1 %v2441_v33  ;;  %v5942_v32 = vld [vmem:[#allocation9 + $0x1a8] sm:$0xff]  ;;  %v5944_v33 = vld [vmem:[#allocation9 + $0x1b8] sm:$0xff] }
 0x765   :  { %2485 = vmatprep.subr.mxu0 %v2436_v34  ;;  %2598 = vmatprep.subr.mxu1 %v2438_v35  ;;  %v5948_v34 = vld [vmem:[#allocation9 + $0x1a0] sm:$0xff]  ;;  %v5950_v35 = vld [vmem:[#allocation9 + $0x1b0] sm:$0xff] }
 0x766   :  { %2486 = vmatpush1.msra.mxu0 %v2435_v36  ;;  %2599 = vmatpush1.msra.mxu1 %v2437_v37  ;;  %v5954_v36 = vld [vmem:[#allocation9 + $0x188] sm:$0xff]  ;;  %v5956_v37 = vld [vmem:[#allocation9 + $0x198] sm:$0xff] }
 0x767   :  { %2487 = vmatprep.subr.mxu0 %v2432_v39  ;;  %2600 = vmatprep.subr.mxu1 %v2434_v40  ;;  %v5960_v39 = vld [vmem:[#allocation9 + $0x180] sm:$0xff]  ;;  %v5962_v40 = vld [vmem:[#allocation9 + $0x190] sm:$0xff] }
 0x768   :  { %2488 = vmatpush1.msra.mxu0 %v2431_v41  ;;  %2601 = vmatpush1.msra.mxu1 %v2433_v42  ;;  %v5966_v41 = vld [vmem:[#allocation9 + $0x168] sm:$0xff]  ;;  %v5968_v42 = vld [vmem:[#allocation9 + $0x178] sm:$0xff] }
 0x769   :  { %2489 = vmatprep.subr.mxu0 %v2428_v43  ;;  %2602 = vmatprep.subr.mxu1 %v2430_v3  ;;  %v5972_v43 = vld [vmem:[#allocation9 + $0x160] sm:$0xff]  ;;  %v5974_v3 = vld [vmem:[#allocation9 + $0x170] sm:$0xff] }
 0x76a   :  { %2490 = vmatpush1.msra.mxu0 %v2427_v61  ;;  %2603 = vmatpush1.msra.mxu1 %v2429_v48  ;;  %v5978_v61 = vld [vmem:[#allocation9 + $0x148] sm:$0xff]  ;;  %v5980_v48 = vld [vmem:[#allocation9 + $0x158] sm:$0xff] }
 0x76b   :  { %2491 = vmatprep.subr.mxu0 %v2424_v45  ;;  %2604 = vmatprep.subr.mxu1 %v2426_v53  ;;  %v5984_v45 = vld [vmem:[#allocation9 + $0x140] sm:$0xff]  ;;  %v5986_v53 = vld [vmem:[#allocation9 + $0x150] sm:$0xff] }
 0x76c   :  { %2492 = vmatpush1.msra.mxu0 %v2423_v50  ;;  %2605 = vmatpush1.msra.mxu1 %v2425_v38  ;;  %v5990_v50 = vld [vmem:[#allocation9 + $0x128] sm:$0xff]  ;;  %v5992_v38 = vld [vmem:[#allocation9 + $0x138] sm:$0xff] }
 0x76d   :  { %2493 = vmatprep.subr.mxu0 %v2420_v4  ;;  %2606 = vmatprep.subr.mxu1 %v2422_v59  ;;  %v5996_v4 = vld [vmem:[#allocation9 + $0x120] sm:$0xff]  ;;  %v5998_v59 = vld [vmem:[#allocation9 + $0x130] sm:$0xff] }
 0x76e   :  { %2494 = vmatpush1.msra.mxu0 %v2419_v2  ;;  %2607 = vmatpush1.msra.mxu1 %v2421_v27  ;;  %v6002_v2 = vld [vmem:[#allocation9 + $0x108] sm:$0xff]  ;;  %v6004_v27 = vld [vmem:[#allocation9 + $0x118] sm:$0xff] }
 0x76f   :  { %2495 = vmatprep.subr.mxu0 %v2416_v1  ;;  %2608 = vmatprep.subr.mxu1 %v2418_v11  ;;  %v6008_v1 = vld [vmem:[#allocation9 + $0x100] sm:$0xff]  ;;  %v6010_v11 = vld [vmem:[#allocation9 + $0x110] sm:$0xff] }
 0x770   :  { %2496 = vmatpush1.msra.mxu0 %v2415_v62  ;;  %2609 = vmatpush1.msra.mxu1 %v2417_v49  ;;  %v6014_v62 = vld [vmem:[#allocation9 + $0xe8] sm:$0xff]  ;;  %v6016_v49 = vld [vmem:[#allocation9 + $0xf8] sm:$0xff] }
 0x771   :  { %2497 = vmatprep.subr.mxu0 %v2412_v46  ;;  %2610 = vmatprep.subr.mxu1 %v2414_v51  ;;  %v6020_v46 = vld [vmem:[#allocation9 + $0xe0] sm:$0xff]  ;;  %v6022_v51 = vld [vmem:[#allocation9 + $0xf0] sm:$0xff] }
 0x772   :  { %2498 = vmatpush1.msra.mxu0 %v2411_v55  ;;  %2611 = vmatpush1.msra.mxu1 %v2413_v20  ;;  %v6026_v55 = vld [vmem:[#allocation9 + $0xc8] sm:$0xff]  ;;  %v6028_v20 = vld [vmem:[#allocation9 + $0xd8] sm:$0xff] }
 0x773   :  { %2499 = vmatprep.subr.mxu0 %v2408_v29  ;;  %2612 = vmatprep.subr.mxu1 %v2410_v0  ;;  %v6032_v29 = vld [vmem:[#allocation9 + $0xc0] sm:$0xff]  ;;  %v6034_v0 = vld [vmem:[#allocation9 + $0xd0] sm:$0xff] }
 0x774   :  { %2500 = vmatpush1.msra.mxu0 %v2407_v52  ;;  %2613 = vmatpush1.msra.mxu1 %v2409_v47  ;;  %v6038_v52 = vld [vmem:[#allocation9 + $0xa8] sm:$0xff]  ;;  %v6040_v47 = vld [vmem:[#allocation9 + $0xb8] sm:$0xff] }
 0x775   :  { %2501 = vmatprep.subr.mxu0 %v2404_v57  ;;  %2614 = vmatprep.subr.mxu1 %v2406_v56  ;;  %v6044_v57 = vld [vmem:[#allocation9 + $0xa0] sm:$0xff]  ;;  %v6046_v56 = vld [vmem:[#allocation9 + $0xb0] sm:$0xff] }
 0x776   :  { %2502 = vmatpush1.msra.mxu0 %v2403_v58  ;;  %2615 = vmatpush1.msra.mxu1 %v2405_v60  ;;  %7282 = vst [vmem:[#allocation40_spill] sm:$0xff] %v6046_v56  ;;  %v6050_v58 = vld [vmem:[#allocation9 + $0x88] sm:$0xff]  ;;  %v6052_v60 = vld [vmem:[#allocation9 + $0x98] sm:$0xff] }
 0x777   :  { %2503 = vmatprep.subr.mxu0 %v2400_v5  ;;  %2616 = vmatprep.subr.mxu1 %v2402_v6  ;;  %7283 = vst [vmem:[#allocation42_spill] sm:$0xff] %v6050_v58  ;;  %7284 = vst [vmem:[#allocation41_spill] sm:$0xff] %v6052_v60  ;;  %v6056_v5 = vld [vmem:[#allocation9 + $0x80] sm:$0xff]  ;;  %v6058_v6 = vld [vmem:[#allocation9 + $0x90] sm:$0xff] }
 0x778   :  { %2504 = vmatpush1.msra.mxu0 %v2399_v7  ;;  %2617 = vmatpush1.msra.mxu1 %v2401_v8  ;;  %7285 = vst [vmem:[#allocation43_spill] sm:$0xff] %v6056_v5  ;;  %7286 = vst [vmem:[#allocation44_spill] sm:$0xff] %v6058_v6  ;;  %v6062_v7 = vld [vmem:[#allocation9 + $0x68] sm:$0xff]  ;;  %v6064_v8 = vld [vmem:[#allocation9 + $0x78] sm:$0xff] }
 0x779   :  { %2505 = vmatprep.subr.mxu0 %v2396_v9  ;;  %2618 = vmatprep.subr.mxu1 %v2398_v10  ;;  %7287 = vst [vmem:[#allocation46_spill] sm:$0xff] %v6062_v7  ;;  %7288 = vst [vmem:[#allocation45_spill] sm:$0xff] %v6064_v8  ;;  %v6068_v9 = vld [vmem:[#allocation9 + $0x60] sm:$0xff]  ;;  %v6070_v10 = vld [vmem:[#allocation9 + $0x70] sm:$0xff] }
 0x77a   :  { %2506 = vmatpush1.msra.mxu0 %v2395_v13  ;;  %2619 = vmatpush1.msra.mxu1 %v2397_v15  ;;  %7289 = vst [vmem:[#allocation47_spill] sm:$0xff] %v6068_v9  ;;  %7290 = vst [vmem:[#allocation16_spill] sm:$0xff] %v6070_v10  ;;  %v6074_v13 = vld [vmem:[#allocation9 + $0x48] sm:$0xff]  ;;  %v6076_v15 = vld [vmem:[#allocation9 + $0x58] sm:$0xff] }
 0x77b   :  { %2507 = vmatprep.subr.mxu0 %v2392_v16  ;;  %2620 = vmatprep.subr.mxu1 %v2394_v18  ;;  %7291 = vst [vmem:[#allocation17_spill] sm:$0xff] %v6074_v13  ;;  %7292 = vst [vmem:[#allocation48_spill] sm:$0xff] %v6076_v15  ;;  %v6080_v16 = vld [vmem:[#allocation9 + $0x40] sm:$0xff]  ;;  %v6082_v18 = vld [vmem:[#allocation9 + $0x50] sm:$0xff] }
 0x77c   :  { %2508 = vmatpush1.msra.mxu0 %v2391_v19  ;;  %2541 = vmatprep.mubr.f32.mxu0 %v7266_v12  ;;  %7293 = vst [vmem:[#allocation50_spill] sm:$0xff] %v6080_v16  ;;  %7294 = vst [vmem:[#allocation49_spill] sm:$0xff] %v6082_v18  ;;  %v6086_v19 = vld [vmem:[#allocation9 + $0x28] sm:$0xff] }
 0x77d   :  { %2621 = vmatpush1.msra.mxu1 %v2393_v21  ;;  %2654 = vmatprep.mubr.f32.mxu1 %v7266_v12  ;;  %7295 = vst [vmem:[#allocation51_spill] sm:$0xff] %v6086_v19  ;;  %v6088_v21 = vld [vmem:[#allocation9 + $0x38] sm:$0xff] }
 0x77e   :  { %2542 = vmatmul.mubr.f32.vlgmr.msra.gmra.mxu0 %v7276_v22  ;;  %2655 = vmatmul.mubr.f32.vlgmr.msra.gmra.mxu1 %v7276_v22  ;;  %7296 = vst [vmem:[#allocation18_spill] sm:$0xff] %v6088_v21  ;;  %v6092_v22 = vld [vmem:[#allocation9 + $0x20] sm:$0xff] }
 0x77f   :  { %2547 = vmatprep.mubr.f32.mxu0 %v7266_v12  ;;  %2660 = vmatprep.mubr.f32.mxu1 %v7266_v12  ;;  %7297 = vst [vmem:[#allocation19_spill] sm:$0xff] %v6092_v22 }
 0x780   :  { %2874 = vmatprep.subr.mxu1 %v5920_v25 }
 0x781   :  { %2875 = vmatpush1.msra.mxu1 %v5926_v26 }
 0x782   :  { %2548 = vmatmul.mubr.f32.gmra.mxu0 %v7277_v23  ;;  %2661 = vmatmul.mubr.f32.gmra.mxu1 %v7277_v23  ;;  %v6094_v23 = vld [vmem:[#allocation9 + $0x30] sm:$0xff] }
 0x783   :  { %2553 = vmatprep.mubr.f32.mxu0 %v7266_v12  ;;  %2666 = vmatprep.mubr.f32.mxu1 %v7266_v12  ;;  %7298 = vst [vmem:[#allocation20_spill] sm:$0xff] %v6094_v23 }
 0x784   :  { %2876 = vmatprep.subr.mxu1 %v5932_v28 }
 0x785   :  { %2877 = vmatpush1.msra.mxu1 %v5938_v31 }
 0x786   :  { %2554 = vmatmul.mubr.f32.gmra.mxu0 %v7278_v24  ;;  %2667 = vmatmul.mubr.f32.gmra.mxu1 %v7278_v24  ;;  %v6096_v24 = vld [vmem:[#allocation9 + $0x8] sm:$0xff] }
 0x787   :  { %2559 = vmatprep.mubr.f32.mxu0 %v7266_v12  ;;  %2672 = vmatprep.mubr.f32.mxu1 %v7266_v12  ;;  %7299 = vst [vmem:[#allocation21_spill] sm:$0xff] %v6096_v24 }
 0x788   :  { %2878 = vmatprep.subr.mxu1 %v5944_v33 }
 0x789   :  { %2879 = vmatpush1.msra.mxu1 %v5950_v35 }
 0x78a   :  { %2560 = vmatmul.mubr.f32.gmra.mxu0 %v7279_v44  ;;  %2673 = vmatmul.mubr.f32.gmra.mxu1 %v7279_v44  ;;  %v6100_v44 = vld [vmem:[#allocation9 + $0x18] sm:$0xff] }
 0x78b   :  { %2565 = vmatprep.mubr.f32.mxu0 %v7266_v12  ;;  %2678 = vmatprep.mubr.f32.mxu1 %v7266_v12  ;;  %7300 = vst [vmem:[#allocation22_spill] sm:$0xff] %v6100_v44 }
 0x78c   :  { %2880 = vmatprep.subr.mxu1 %v5956_v37 }
 0x78d   :  { %2881 = vmatpush1.msra.mxu1 %v5962_v40 }
 0x78e   :  { %2566 = vmatmul.mubr.f32.gmra.mxu0 %v5794_v54  ;;  %2679 = vmatmul.mubr.f32.gmra.mxu1 %v5794_v54  ;;  %v5918_v54 = vld [vmem:[#allocation9 + $0x1e8] sm:$0xff] }
 0x78f   :  { %2571 = vmatprep.mubr.f32.mxu0 %v7266_v12  ;;  %2684 = vmatprep.mubr.f32.mxu1 %v7266_v12  ;;  %7280 = vst [vmem:[#allocation37_spill] sm:$0xff] %v5918_v54 }
 0x790   :  { %2803 = vmatprep.subr.mxu0 %v5918_v54  ;;  %2882 = vmatprep.subr.mxu1 %v5968_v42 }
 0x791   :  { %2883 = vmatpush1.msra.mxu1 %v5974_v3 }
 0x792   :  { %2572 = vmatmul.mubr.f32.gmra.mxu0 %v5870_v63  ;;  %2685 = vmatmul.mubr.f32.gmra.mxu1 %v5870_v63  ;;  %v5924_v63 = vld [vmem:[#allocation9 + $0x1e0] sm:$0xff] }
 0x793   :  { %2577 = vmatprep.mubr.f32.mxu0 %v7266_v12  ;;  %2690 = vmatprep.mubr.f32.mxu1 %v7266_v12 }
 0x794   :  { %2804 = vmatpush1.msra.mxu0 %v5924_v63  ;;  %2884 = vmatprep.subr.mxu1 %v5980_v48 }
 0x795   :  { %2885 = vmatpush1.msra.mxu1 %v5986_v53 }
 0x796   :  { %2578 = vmatmul.mubr.f32.gmra.mxu0 %v5884_v17  ;;  %2691 = vmatmul.mubr.f32.gmra.mxu1 %v5884_v17  ;;  %v5930_v17 = vld [vmem:[#allocation9 + $0x1c8] sm:$0xff] }
 0x797   :  { %2583 = vmatprep.mubr.f32.mxu0 %v7266_v12  ;;  %2696 = vmatprep.mubr.f32.mxu1 %v7266_v12 }
 0x798   :  { %2805 = vmatprep.subr.mxu0 %v5930_v17  ;;  %2886 = vmatprep.subr.mxu1 %v5992_v38 }
 0x799   :  { %2806 = vmatpush1.msra.mxu0 %v5936_v30  ;;  %2887 = vmatpush1.msra.mxu1 %v5998_v59 }
 0x79a   :  { %2807 = vmatprep.subr.mxu0 %v5942_v32  ;;  %2888 = vmatprep.subr.mxu1 %v6004_v27 }
 0x79b   :  { %2808 = vmatpush1.msra.mxu0 %v5948_v34  ;;  %2889 = vmatpush1.msra.mxu1 %v6010_v11 }
 0x79c   :  { %2809 = vmatprep.subr.mxu0 %v5954_v36  ;;  %2890 = vmatprep.subr.mxu1 %v6016_v49 }
 0x79d   :  { %2810 = vmatpush1.msra.mxu0 %v5960_v39  ;;  %2891 = vmatpush1.msra.mxu1 %v6022_v51 }
 0x79e   :  { %2811 = vmatprep.subr.mxu0 %v5966_v41  ;;  %2892 = vmatprep.subr.mxu1 %v6028_v20 }
 0x79f   :  { %2812 = vmatpush1.msra.mxu0 %v5972_v43  ;;  %2893 = vmatpush1.msra.mxu1 %v6034_v0 }
 0x7a0   :  { %2813 = vmatprep.subr.mxu0 %v5978_v61  ;;  %2894 = vmatprep.subr.mxu1 %v6040_v47 }
 0x7a1   :  { %2814 = vmatpush1.msra.mxu0 %v5984_v45  ;;  %2895 = vmatpush1.msra.mxu1 %v6046_v56 }
 0x7a2   :  { %2815 = vmatprep.subr.mxu0 %v5990_v50  ;;  %2896 = vmatprep.subr.mxu1 %v6052_v60 }
 0x7a3   :  { %2816 = vmatpush1.msra.mxu0 %v5996_v4  ;;  %2897 = vmatpush1.msra.mxu1 %v6058_v6 }
 0x7a4   :  { %2817 = vmatprep.subr.mxu0 %v6002_v2  ;;  %2898 = vmatprep.subr.mxu1 %v6064_v8 }
 0x7a5   :  { %2818 = vmatpush1.msra.mxu0 %v6008_v1  ;;  %2899 = vmatpush1.msra.mxu1 %v6070_v10 }
 0x7a6   :  { %2819 = vmatprep.subr.mxu0 %v6014_v62  ;;  %2900 = vmatprep.subr.mxu1 %v6076_v15 }
 0x7a7   :  { %2820 = vmatpush1.msra.mxu0 %v6020_v46  ;;  %2901 = vmatpush1.msra.mxu1 %v6082_v18  ;;  %v6102_v18 = vld [vmem:[#allocation9] sm:$0xff] }
 0x7a8   :  { %2821 = vmatprep.subr.mxu0 %v6026_v55  ;;  %2902 = vmatprep.subr.mxu1 %v6088_v21  ;;  %7301 = vst [vmem:[#allocation23_spill] sm:$0xff] %v6102_v18 }
 0x7a9   :  { %2822 = vmatpush1.msra.mxu0 %v6032_v29  ;;  %2903 = vmatpush1.msra.mxu1 %v6094_v23  ;;  %v7303_v23 = vld [vmem:[#allocation60_spill] sm:$0xff] }
 0x7aa   :  { %2823 = vmatprep.subr.mxu0 %v6038_v52  ;;  %2904 = vmatprep.subr.mxu1 %v6100_v44  ;;  %v7305_v44 = vld [vmem:[#allocation61_spill] sm:$0xff] }
 0x7ab   :  { %2824 = vmatpush1.msra.mxu0 %v6044_v57 }
 0x7ac   :  { %2825 = vmatprep.subr.mxu0 %v6050_v58 }
 0x7ad   :  { %2826 = vmatpush1.msra.mxu0 %v6056_v5 }
 0x7ae   :  { %2827 = vmatprep.subr.mxu0 %v6062_v7 }
 0x7af   :  { %2828 = vmatpush1.msra.mxu0 %v6068_v9 }
 0x7b0   :  { %2829 = vmatprep.subr.mxu0 %v6074_v13  ;;  %v7304_v13 = vld [vmem:[#allocation62_spill] sm:$0xff] }
 0x7b1   :  { %2830 = vmatpush1.msra.mxu0 %v6080_v16  ;;  %v6104_v16 = vld [vmem:[#allocation9 + $0x10] sm:$0xff] }
 0x7b2   :  { %2831 = vmatprep.subr.mxu0 %v6086_v19  ;;  %7302 = vst [vmem:[#allocation24_spill] sm:$0xff] %v6104_v16  ;;  %2905 = vmatpush1.msra.mxu1 %v6104_v16  ;;  %v7306_v16 = vld [vmem:[#allocation63_spill] sm:$0xff] }
 0x7b3   :  { %2832 = vmatpush1.msra.mxu0 %v6092_v22  ;;  %3048 = vmatprep.subr.mxu1 %v5920_v25 }
 0x7b4   :  { %2833 = vmatprep.subr.mxu0 %v6096_v24 }
 0x7b5   :  { %2834 = vmatpush1.msra.mxu0 %v6102_v18 }
 0x7b6   :  { %2977 = vmatprep.subr.mxu0 %v5918_v54 }
 0x81d   :  { %v2275_v22 = vpop.f32.mrf.mxu0  ;;  %v2346_v24 = vpop.f32.mrf.mxu1 }
 0x81e   :  { %v2351_v21 = vadd.f32 %v2275_v22, %v7303_v23  ;;  %v2353_v8 = vadd.f32 %v2346_v24, %v7305_v44  ;;  %v7313_v44 = vld [vmem:[#allocation17_spill] sm:$0xff] }
 0x81f   :  { %v2277_v19 = vpop.f32.mrf.mxu0  ;;  %v2348_v18 = vpop.f32.mrf.mxu1 }
 0x820   :  { %v4325_v15 = vmul.f32 -1.442695, %v2351_v21  ;;  %v2352_v10 = vadd.f32 %v2277_v19, %v7304_v13  ;;  %v4327_v7 = vmul.f32 -1.442695, %v2353_v8  ;;  %v2354_v6 = vadd.f32 %v2348_v18, %v7306_v16  ;;  %v7310_v8 = vld [vmem:[#allocation45_spill] sm:$0xff]  ;;  %v7311_v16 = vld [vmem:[#allocation47_spill] sm:$0xff] }
 0x821   :  { %v7312_v18 = vld [vmem:[#allocation16_spill] sm:$0xff] }
 0x822   :  { %4530 = vpow2.f32 %v4325_v15  ;;  %v4326_v9 = vmul.f32 -1.442695, %v2352_v10 }
 0x824   :  { %4532 = vpow2.f32 %v4326_v9 }
 0x825   :  { %4534 = vpow2.f32 %v4327_v7  ;;  %v7309_v7 = vld [vmem:[#allocation46_spill] sm:$0xff] }
 0x826   :  { %4536 = vtanh.f32 %v2354_v6 }
 0x82f   :  { %v4531_v54 = vpop.eup %4530 }
 0x830   :  { %v2364_v5 = vadd.f32 1.0, %v4531_v54 }
 0x831   :  { %v4533_v25 = vpop.eup %4532 }
 0x832   :  { %4538 = vrcp.f32 %v2364_v5  ;;  %v2365_v22 = vadd.f32 1.0, %v4533_v25  ;;  %v4535_v21 = vpop.eup %4534  ;;  %v7308_v25 = vld [vmem:[#allocation44_spill] sm:$0xff] }
 0x833   :  { %v4537_v13 = vpop.eup %4536  ;;  %v2366_v19 = vadd.f32 1.0, %v4535_v21  ;;  %v7315_v21 = vld [vmem:[#allocation50_spill] sm:$0xff] }
 0x834   :  { %4540 = vrcp.f32 %v2365_v22  ;;  %v7314_v22 = vld [vmem:[#allocation48_spill] sm:$0xff] }
 0x835   :  { %4542 = vrcp.f32 %v2366_v19  ;;  %v7320_v19 = vld [vmem:[#allocation20_spill] sm:$0xff] }
 0x83f   :  { %v4539_v15 = vpop.eup %4538 }
 0x840   :  { %v2375_v10 = vmul.f32 %v4539_v15, %v4537_v13  ;;  %v7316_v13 = vld [vmem:[#allocation49_spill] sm:$0xff]  ;;  %v7317_v15 = vld [vmem:[#allocation51_spill] sm:$0xff] }
 0x841   :  { %v4541_v9 = vpop.eup %4540 }
 0x842   :  { %v2374_v23 = vmul.f32 %v4541_v9, %v5881_v14  ;;  %v4543_v54 = vpop.eup %4542  ;;  %v7307_v14 = vld [vmem:[#allocation43_spill] sm:$0xff] }
 0x843   :  { %v7319_v9 = vld [vmem:[#allocation19_spill] sm:$0xff] }
 0x844   :  { %v2376_v24 = vadd.f32 %v2375_v10, %v2374_v23  ;;  %v7318_v10 = vld [vmem:[#allocation18_spill] sm:$0xff]  ;;  %v7321_v23 = vld [vmem:[#allocation21_spill] sm:$0xff] }
 0x846   :  { %2382 = vst [vmem:[%s6918_s11] sm:$0xff] %v2376_v24  ;;  %4544 = vtanh.f32 %v2376_v24  ;;  %v7322_v24 = vld [vmem:[#allocation22_spill] sm:$0xff] }
 0x853   :  { %v4545_v6 = vpop.eup %4544 }
 0x854   :  { %v2378_v5 = vmul.f32 %v4545_v6, %v4543_v54  ;;  %v7323_v54 = vld [vmem:[#allocation23_spill] sm:$0xff]  ;;  %v7324_v6 = vld [vmem:[#allocation24_spill] sm:$0xff] }
 0x856   :  { %2381 = vst [vmem:[%s6917_s10] sm:$0xff] %v2378_v5  ;;  %2584 = vmatmul.mubr.f32.gmra.mxu0 %v2378_v5  ;;  %2697 = vmatmul.mubr.f32.gmra.mxu1 %v2378_v5  ;;  %v7325_v5 = vld [vmem:[#allocation37_spill] sm:$0xff] }
 0x857   :  { %2867 = vmatprep.mubr.f32.mxu0 %v7266_v12  ;;  %2938 = vmatprep.mubr.f32.mxu1 %v7266_v12 }
 0x85a   :  { %2868 = vmatmul.mubr.f32.vlgmr.msra.gmra.mxu0 %v7266_v12  ;;  %2939 = vmatmul.mubr.f32.vlgmr.msra.gmra.mxu1 %v7266_v12 }
 0x85b   :  { %2978 = vmatpush1.msra.mxu0 %v5924_v63  ;;  %3049 = vmatpush1.msra.mxu1 %v5926_v26 }
 0x85c   :  { %2979 = vmatprep.subr.mxu0 %v5930_v17  ;;  %3050 = vmatprep.subr.mxu1 %v5932_v28 }
 0x85d   :  { %2980 = vmatpush1.msra.mxu0 %v5936_v30  ;;  %3051 = vmatpush1.msra.mxu1 %v5938_v31 }
 0x85e   :  { %2981 = vmatprep.subr.mxu0 %v5942_v32  ;;  %3052 = vmatprep.subr.mxu1 %v5944_v33 }
 0x85f   :  { %2982 = vmatpush1.msra.mxu0 %v5948_v34  ;;  %3053 = vmatpush1.msra.mxu1 %v5950_v35 }
 0x860   :  { %2983 = vmatprep.subr.mxu0 %v5954_v36  ;;  %3054 = vmatprep.subr.mxu1 %v5956_v37 }
 0x861   :  { %2984 = vmatpush1.msra.mxu0 %v5960_v39  ;;  %3055 = vmatpush1.msra.mxu1 %v5962_v40 }
 0x862   :  { %2985 = vmatprep.subr.mxu0 %v5966_v41  ;;  %3056 = vmatprep.subr.mxu1 %v5968_v42 }
 0x863   :  { %2986 = vmatpush1.msra.mxu0 %v5972_v43  ;;  %3057 = vmatpush1.msra.mxu1 %v5974_v3 }
 0x864   :  { %2987 = vmatprep.subr.mxu0 %v5978_v61  ;;  %3058 = vmatprep.subr.mxu1 %v5980_v48 }
 0x865   :  { %2988 = vmatpush1.msra.mxu0 %v5984_v45  ;;  %3059 = vmatpush1.msra.mxu1 %v5986_v53 }
 0x866   :  { %2989 = vmatprep.subr.mxu0 %v5990_v50  ;;  %3060 = vmatprep.subr.mxu1 %v5992_v38 }
 0x867   :  { %2990 = vmatpush1.msra.mxu0 %v5996_v4  ;;  %3061 = vmatpush1.msra.mxu1 %v5998_v59 }
 0x868   :  { %2991 = vmatprep.subr.mxu0 %v6002_v2  ;;  %3062 = vmatprep.subr.mxu1 %v6004_v27 }
 0x869   :  { %2992 = vmatpush1.msra.mxu0 %v6008_v1  ;;  %3063 = vmatpush1.msra.mxu1 %v6010_v11 }
 0x86a   :  { %2993 = vmatprep.subr.mxu0 %v6014_v62  ;;  %3064 = vmatprep.subr.mxu1 %v6016_v49 }
 0x86b   :  { %2994 = vmatpush1.msra.mxu0 %v6020_v46  ;;  %3065 = vmatpush1.msra.mxu1 %v6022_v51 }
 0x86c   :  { %2995 = vmatprep.subr.mxu0 %v6026_v55  ;;  %3066 = vmatprep.subr.mxu1 %v6028_v20 }
 0x86d   :  { %2996 = vmatpush1.msra.mxu0 %v6032_v29  ;;  %3067 = vmatpush1.msra.mxu1 %v6034_v0 }
 0x86e   :  { %2997 = vmatprep.subr.mxu0 %v6038_v52  ;;  %3068 = vmatprep.subr.mxu1 %v6040_v47 }
 0x86f   :  { %2998 = vmatpush1.msra.mxu0 %v6044_v57  ;;  %3069 = vmatpush1.msra.mxu1 %v6046_v56 }
 0x870   :  { %2999 = vmatprep.subr.mxu0 %v6050_v58  ;;  %3070 = vmatprep.subr.mxu1 %v6052_v60 }
 0x871   :  { %3000 = vmatpush1.msra.mxu0 %v7307_v14  ;;  %3071 = vmatpush1.msra.mxu1 %v7308_v25 }
 0x872   :  { %3001 = vmatprep.subr.mxu0 %v7309_v7  ;;  %3072 = vmatprep.subr.mxu1 %v7310_v8 }
 0x873   :  { %3002 = vmatpush1.msra.mxu0 %v7311_v16  ;;  %3073 = vmatpush1.msra.mxu1 %v7312_v18 }
 0x874   :  { %3003 = vmatprep.subr.mxu0 %v7313_v44  ;;  %3074 = vmatprep.subr.mxu1 %v7314_v22 }
 0x875   :  { %3004 = vmatpush1.msra.mxu0 %v7315_v21  ;;  %3075 = vmatpush1.msra.mxu1 %v7316_v13  ;;  %v2656_v13 = vpop.f32.mrf.mxu1 }
 0x876   :  { %3005 = vmatprep.subr.mxu0 %v7317_v15  ;;  %3076 = vmatprep.subr.mxu1 %v7318_v10  ;;  %v7326_v15 = vld [vmem:[#allocation39_spill] sm:$0xff]  ;;  %v2543_v10 = vpop.f32.mrf.mxu0 }
 0x877   :  { %3006 = vmatpush1.msra.mxu0 %v7319_v9  ;;  %3077 = vmatpush1.msra.mxu1 %v7320_v19 }
 0x878   :  { %3007 = vmatprep.subr.mxu0 %v7321_v23  ;;  %3078 = vmatprep.subr.mxu1 %v7322_v24  ;;  %v2545_v9 = vpop.f32.mrf.mxu0  ;;  %v2658_v23 = vpop.f32.mrf.mxu1 }
 0x879   :  { %3008 = vmatpush1.msra.mxu0 %v7323_v54  ;;  %3041 = vmatprep.mubr.f32.mxu0 %v7266_v12 }
 0x87a   :  { %3079 = vmatpush1.msra.mxu1 %v7324_v6  ;;  %3112 = vmatprep.mubr.f32.mxu1 %v7266_v12  ;;  %v6193_v19 = vpop.f32.mrf.mxu0  ;;  %v6197_v24 = vpop.f32.mrf.mxu1 }
 0x87b   :  { %3151 = vmatprep.subr.mxu0 %v7325_v5  ;;  %3222 = vmatprep.subr.mxu1 %v7326_v15  ;;  %7327 = vst [vmem:[#allocation25_spill] sm:$0xff] %v6193_v19  ;;  %7329 = vst [vmem:[#allocation27_spill] sm:$0xff] %v6197_v24 }
 0x87c   :  { %v6195_v21 = vpop.f32.mrf.mxu0  ;;  %v6201_v22 = vpop.f32.mrf.mxu1 }
 0x87d   :  { %7328 = vst [vmem:[#allocation26_spill] sm:$0xff] %v6195_v21  ;;  %7331 = vst [vmem:[#allocation29_spill] sm:$0xff] %v6201_v22 }
 0x87e   :  { %v6199_v54 = vpop.f32.mrf.mxu0  ;;  %v6205_v12 = vpop.f32.mrf.mxu1 }
 0x87f   :  { %7330 = vst [vmem:[#allocation28_spill] sm:$0xff] %v6199_v54  ;;  %7333 = vst [vmem:[#allocation31_spill] sm:$0xff] %v6205_v12 }
 0x880   :  { %v6203_v6 = vpop.f32.mrf.mxu0  ;;  %v6209_v15 = vpop.f32.mrf.mxu1 }
 0x881   :  { %7332 = vst [vmem:[#allocation30_spill] sm:$0xff] %v6203_v6  ;;  %7335 = vst [vmem:[#allocation33_spill] sm:$0xff] %v6209_v15 }
 0x882   :  { %v6207_v5 = vpop.f32.mrf.mxu0  ;;  %v6213_v19 = vpop.f32.mrf.mxu1 }
 0x883   :  { %7334 = vst [vmem:[#allocation32_spill] sm:$0xff] %v6207_v5  ;;  %7337 = vst [vmem:[#allocation52_spill] sm:$0xff] %v6213_v19 }
 0x884   :  { %v6211_v44 = vpop.f32.mrf.mxu0  ;;  %v6217_v21 = vpop.f32.mrf.mxu1 }
 0x885   :  { %7336 = vst [vmem:[#allocation34_spill] sm:$0xff] %v6211_v44  ;;  %7339 = vst [vmem:[#allocation53_spill] sm:$0xff] %v6217_v21 }
 0x886   :  { %v6215_v18 = vpop.f32.mrf.mxu0  ;;  %v6221_v54 = vpop.f32.mrf.mxu1 }
 0x887   :  { %7338 = vst [vmem:[#allocation54_spill] sm:$0xff] %v6215_v18  ;;  %7341 = vst [vmem:[#allocation56_spill] sm:$0xff] %v6221_v54  ;;  %v2455_v18 = vld [vmem:[%s6913_s6] sm:$0xf] }
 0x888   :  { %v6219_v24 = vpop.f32.mrf.mxu0  ;;  %v6225_v6 = vpop.f32.mrf.mxu1 }
 0x889   :  { %7340 = vst [vmem:[#allocation55_spill] sm:$0xff] %v6219_v24  ;;  %7343 = vst [vmem:[#allocation57_spill] sm:$0xff] %v6225_v6  ;;  %v7349_v24 = vld [vmem:[#allocation36_spill] sm:$0xff] }
 0x88a   :  { %v6223_v22 = vpop.f32.mrf.mxu0  ;;  %v6229_v5 = vpop.f32.mrf.mxu1  ;;  %v7350_v54 = vsub.s32 0, %v7349_v24  ;;  %v7360_v60 = vsub.s32 2, %v7349_v24 }
 0x88b   :  { %7342 = vst [vmem:[#allocation58_spill] sm:$0xff] %v6223_v22  ;;  %7345 = vst [vmem:[#allocation64_spill] sm:$0xff] %v6229_v5  ;;  %v7354_v5 = vsub.s32 1, %v7349_v24 }
 0x88c   :  { %v6227_v12 = vpop.f32.mrf.mxu0  ;;  %v6233_v44 = vpop.f32.mrf.mxu1  ;;  %v6242_v19 = vrot.slane %v2455_v18, %v7350_v54 }
 0x88d   :  { %7344 = vst [vmem:[#allocation59_spill] sm:$0xff] %v6227_v12  ;;  %7347 = vst [vmem:[#allocation35_spill] sm:$0xff] %v6233_v44  ;;  %v6250_v12 = vrot.slane %v2455_v18, %v7354_v5 }
 0x88e   :  { %v6231_v15 = vpop.f32.mrf.mxu0  ;;  %7351 = vst [vmem:[#allocation60_spill] sm:$0xff] %v6242_v19  ;;  %v6244_v22 = vpop.f32.mrf.mxu1  ;;  %v2544_v44 = vadd.f32 %v2543_v10, %v6242_v19 }
 0x88f   :  { %7346 = vst [vmem:[#allocation15_spill] sm:$0xff] %v6231_v15  ;;  %7352 = vst [vmem:[#allocation62_spill] sm:$0xff] %v6244_v22 }
 0x890   :  { %v6238_v21 = vpop.f32.mrf.mxu0  ;;  %7355 = vst [vmem:[#allocation63_spill] sm:$0xff] %v6250_v12  ;;  %v6255_v16 = vpop.f32.mrf.mxu1 }
 0x891   :  { %7348 = vst [vmem:[#allocation38_spill] sm:$0xff] %v6238_v21  ;;  %7357 = vst [vmem:[#allocation65_spill] sm:$0xff] %v6255_v16  ;;  %v2546_v21 = vadd.f32 %v2545_v9, %v6250_v12  ;;  %v7361_v9 = vsub.s32 3, %v7349_v24 }
 0x893   :  { %v6269_v12 = vrot.slane %v2455_v18, %v7361_v9 }
 0x916   :  { %v6246_v6 = vpop.f32.mrf.mxu0  ;;  %v6258_v7 = vpop.f32.mrf.mxu1 }
 0x917   :  { %7353 = vst [vmem:[#allocation61_spill] sm:$0xff] %v6246_v6  ;;  %7358 = vst [vmem:[#allocation66_spill] sm:$0xff] %v6258_v7 }
 0x918   :  { %v6252_v15 = vpop.f32.mrf.mxu0  ;;  %v6260_v6 = vpop.f32.mrf.mxu1 }
 0x919   :  { %7356 = vst [vmem:[#allocation36_spill] sm:$0xff] %v6252_v15  ;;  %7359 = vst [vmem:[#allocation67_spill] sm:$0xff] %v6260_v6  ;;  %v6264_v15 = vrot.slane %v2455_v18, %v7360_v60 }
 0x91a   :  { %v2869_v8 = vpop.f32.mrf.mxu0  ;;  %v2940_v10 = vpop.f32.mrf.mxu1 }
 0x91b   :  { %v2945_v54 = vadd.f32 %v2869_v8, %v2544_v44  ;;  %v2657_v16 = vadd.f32 %v2656_v13, %v6264_v15 }
 0x91c   :  { %v2871_v25 = vpop.f32.mrf.mxu0  ;;  %v2942_v44 = vpop.f32.mrf.mxu1 }
 0x91d   :  { %v4328_v22 = vmul.f32 -1.442695, %v2945_v54  ;;  %v2946_v14 = vadd.f32 %v2871_v25, %v2546_v21  ;;  %v2947_v8 = vadd.f32 %v2940_v10, %v2657_v16  ;;  %v2659_v25 = vadd.f32 %v2658_v23, %v6269_v12 }
 0x91f   :  { %4546 = vpow2.f32 %v4328_v22  ;;  %v4329_v5 = vmul.f32 -1.442695, %v2946_v14  ;;  %v4330_v21 = vmul.f32 -1.442695, %v2947_v8  ;;  %v2948_v22 = vadd.f32 %v2942_v44, %v2659_v25  ;;  %v7364_v25 = vld [vmem:[#allocation44_spill] sm:$0xff] }
 0x921   :  { %4548 = vpow2.f32 %v4329_v5 }
 0x922   :  { %4550 = vpow2.f32 %v4330_v21  ;;  %v7365_v21 = vld [vmem:[#allocation46_spill] sm:$0xff] }
 0x92c   :  { %v4547_v54 = vpop.eup %4546 }
 0x92d   :  { %v2958_v14 = vadd.f32 1.0, %v4547_v54  ;;  %v7366_v54 = vld [vmem:[#allocation45_spill] sm:$0xff] }
 0x92e   :  { %v4549_v6 = vpop.eup %4548 }
 0x92f   :  { %4552 = vrcp.f32 %v2958_v14  ;;  %v2959_v60 = vadd.f32 1.0, %v4549_v6  ;;  %v4551_v5 = vpop.eup %4550  ;;  %v7363_v6 = vld [vmem:[#allocation43_spill] sm:$0xff]  ;;  %v7368_v14 = vld [vmem:[#allocation16_spill] sm:$0xff] }
 0x930   :  { %4554 = vtanh.f32 %v2948_v22  ;;  %v2960_v18 = vadd.f32 1.0, %v4551_v5  ;;  %v7367_v22 = vld [vmem:[#allocation47_spill] sm:$0xff]  ;;  %v7370_v5 = vld [vmem:[#allocation48_spill] sm:$0xff] }
 0x931   :  { %4556 = vrcp.f32 %v2959_v60  ;;  %v7369_v60 = vld [vmem:[#allocation17_spill] sm:$0xff] }
 0x932   :  { %4558 = vrcp.f32 %v2960_v18  ;;  %v7373_v18 = vld [vmem:[#allocation51_spill] sm:$0xff] }
 0x93c   :  { %v4553_v13 = vpop.eup %4552 }
 0x93d   :  { %v4555_v7 = vpop.eup %4554 }
 0x93e   :  { %v4557_v24 = vpop.eup %4556  ;;  %v2969_v16 = vmul.f32 %v4555_v7, %v4553_v13  ;;  %v7362_v7 = vld [vmem:[#allocation41_spill] sm:$0xff]  ;;  %v7371_v13 = vld [vmem:[#allocation50_spill] sm:$0xff] }
 0x93f   :  { %v2968_v9 = vmul.f32 0.0, %v4557_v24  ;;  %v4559_v23 = vpop.eup %4558  ;;  %v7372_v24 = vld [vmem:[#allocation49_spill] sm:$0xff] }
 0x941   :  { %v6272_v10 = vadd.f32 %v2969_v16, %v2968_v9  ;;  %v7374_v9 = vld [vmem:[#allocation18_spill] sm:$0xff]  ;;  %v7375_v16 = vld [vmem:[#allocation19_spill] sm:$0xff] }
 0x943   :  { %4560 = vtanh.f32 %v6272_v10 }
 0x950   :  { %v4561_v8 = vpop.eup %4560 }
 0x951   :  { %v2972_v44 = vmul.f32 %v4561_v8, %v4559_v23  ;;  %v7376_v23 = vld [vmem:[#allocation20_spill] sm:$0xff]  ;;  %v7377_v8 = vld [vmem:[#allocation21_spill] sm:$0xff] }
 0x953   :  { %3042 = vmatmul.mubr.f32.vlgmr.msra.gmra.mxu0 %v2972_v44  ;;  %3113 = vmatmul.mubr.f32.vlgmr.msra.gmra.mxu1 %v2972_v44  ;;  %v7378_v44 = vld [vmem:[#allocation22_spill] sm:$0xff] }
 0x954   :  { %3152 = vmatpush1.msra.mxu0 %v5924_v63  ;;  %3223 = vmatpush1.msra.mxu1 %v5926_v26 }
 0x955   :  { %3153 = vmatprep.subr.mxu0 %v5930_v17  ;;  %3224 = vmatprep.subr.mxu1 %v5932_v28 }
 0x956   :  { %3154 = vmatpush1.msra.mxu0 %v5936_v30  ;;  %3225 = vmatpush1.msra.mxu1 %v5938_v31 }
 0x957   :  { %3155 = vmatprep.subr.mxu0 %v5942_v32  ;;  %3226 = vmatprep.subr.mxu1 %v5944_v33 }
 0x958   :  { %3156 = vmatpush1.msra.mxu0 %v5948_v34  ;;  %3227 = vmatpush1.msra.mxu1 %v5950_v35 }
 0x959   :  { %3157 = vmatprep.subr.mxu0 %v5954_v36  ;;  %3228 = vmatprep.subr.mxu1 %v5956_v37 }
 0x95a   :  { %3158 = vmatpush1.msra.mxu0 %v5960_v39  ;;  %3229 = vmatpush1.msra.mxu1 %v5962_v40 }
 0x95b   :  { %3159 = vmatprep.subr.mxu0 %v5966_v41  ;;  %3230 = vmatprep.subr.mxu1 %v5968_v42 }
 0x95c   :  { %3160 = vmatpush1.msra.mxu0 %v5972_v43  ;;  %3231 = vmatpush1.msra.mxu1 %v5974_v3 }
 0x95d   :  { %3161 = vmatprep.subr.mxu0 %v5978_v61  ;;  %3232 = vmatprep.subr.mxu1 %v5980_v48 }
 0x95e   :  { %3162 = vmatpush1.msra.mxu0 %v5984_v45  ;;  %3233 = vmatpush1.msra.mxu1 %v5986_v53 }
 0x95f   :  { %3163 = vmatprep.subr.mxu0 %v5990_v50  ;;  %3234 = vmatprep.subr.mxu1 %v5992_v38 }
 0x960   :  { %3164 = vmatpush1.msra.mxu0 %v5996_v4  ;;  %3235 = vmatpush1.msra.mxu1 %v5998_v59 }
 0x961   :  { %3165 = vmatprep.subr.mxu0 %v6002_v2  ;;  %3236 = vmatprep.subr.mxu1 %v6004_v27 }
 0x962   :  { %3166 = vmatpush1.msra.mxu0 %v6008_v1  ;;  %3237 = vmatpush1.msra.mxu1 %v6010_v11 }
 0x963   :  { %3167 = vmatprep.subr.mxu0 %v6014_v62  ;;  %3238 = vmatprep.subr.mxu1 %v6016_v49 }
 0x964   :  { %3168 = vmatpush1.msra.mxu0 %v6020_v46  ;;  %3239 = vmatpush1.msra.mxu1 %v6022_v51 }
 0x965   :  { %3169 = vmatprep.subr.mxu0 %v6026_v55  ;;  %3240 = vmatprep.subr.mxu1 %v6028_v20 }
 0x966   :  { %3170 = vmatpush1.msra.mxu0 %v6032_v29  ;;  %3241 = vmatpush1.msra.mxu1 %v6034_v0 }
 0x967   :  { %3171 = vmatprep.subr.mxu0 %v6038_v52  ;;  %3242 = vmatprep.subr.mxu1 %v6040_v47 }
 0x968   :  { %3172 = vmatpush1.msra.mxu0 %v6044_v57  ;;  %3243 = vmatpush1.msra.mxu1 %v6046_v56 }
 0x969   :  { %3173 = vmatprep.subr.mxu0 %v6050_v58  ;;  %3244 = vmatprep.subr.mxu1 %v7362_v7  ;;  %v7388_v7 = vld [vmem:[#allocation29_spill] sm:$0xff] }
 0x96a   :  { %3174 = vmatpush1.msra.mxu0 %v7363_v6  ;;  %3245 = vmatpush1.msra.mxu1 %v7364_v25 }
 0x96b   :  { %3175 = vmatprep.subr.mxu0 %v7365_v21  ;;  %3246 = vmatprep.subr.mxu1 %v7366_v54 }
 0x96c   :  { %3176 = vmatpush1.msra.mxu0 %v7367_v22  ;;  %3247 = vmatpush1.msra.mxu1 %v7368_v14  ;;  %v7379_v14 = vld [vmem:[#allocation23_spill] sm:$0xff] }
 0x96d   :  { %3177 = vmatprep.subr.mxu0 %v7369_v60  ;;  %3248 = vmatprep.subr.mxu1 %v7370_v5  ;;  %v7380_v60 = vmov 0.0   ;;  %v7381_v5 = vld [vmem:[#allocation24_spill] sm:$0xff] }
 0x96e   :  { %3178 = vmatpush1.msra.mxu0 %v7371_v13  ;;  %3249 = vmatpush1.msra.mxu1 %v7372_v24  ;;  %v7382_v24 = vld [vmem:[#allocation37_spill] sm:$0xff]  ;;  %v7385_v13 = vld [vmem:[#allocation63_spill] sm:$0xff] }
 0x96f   :  { %3179 = vmatprep.subr.mxu0 %v7373_v18  ;;  %3250 = vmatprep.subr.mxu1 %v7374_v9  ;;  %v7383_v18 = vld [vmem:[#allocation39_spill] sm:$0xff] }
 0x970   :  { %3180 = vmatpush1.msra.mxu0 %v7375_v16  ;;  %3251 = vmatpush1.msra.mxu1 %v7376_v23  ;;  %v7384_v16 = vld [vmem:[#allocation25_spill] sm:$0xff] }
 0x971   :  { %3181 = vmatprep.subr.mxu0 %v7377_v8  ;;  %3252 = vmatprep.subr.mxu1 %v7378_v44  ;;  %v2550_v9 = vadd.f32 %v7384_v16, %v6242_v19  ;;  %v7386_v8 = vld [vmem:[#allocation26_spill] sm:$0xff]  ;;  %v2665_v16 = vadd.f32 %v7388_v7, %v6269_v12 }
 0x972   :  { %3182 = vmatpush1.msra.mxu0 %v7379_v14  ;;  %3215 = vmatprep.mubr.f32.mxu0 %v7380_v60  ;;  %v2552_v22 = vadd.f32 %v7386_v8, %v7385_v13 }
 0x973   :  { %3253 = vmatpush1.msra.mxu1 %v7381_v5  ;;  %3286 = vmatprep.mubr.f32.mxu1 %v7380_v60  ;;  %v7387_v60 = vld [vmem:[#allocation27_spill] sm:$0xff] }
 0x974   :  { %3325 = vmatprep.subr.mxu0 %v7382_v24  ;;  %3396 = vmatprep.subr.mxu1 %v7383_v18  ;;  %v2663_v24 = vadd.f32 %v7387_v60, %v6264_v15 }
 0xa13   :  { %v3043_v23 = vpop.f32.mrf.mxu0  ;;  %v3114_v5 = vpop.f32.mrf.mxu1 }
 0xa14   :  { %v3119_v44 = vadd.f32 %v3043_v23, %v2550_v9  ;;  %v3121_v6 = vadd.f32 %v3114_v5, %v2663_v24 }
 0xa15   :  { %v3045_v54 = vpop.f32.mrf.mxu0  ;;  %v3116_v18 = vpop.f32.mrf.mxu1 }
 0xa16   :  { %v4331_v14 = vmul.f32 -1.442695, %v3119_v44  ;;  %v3120_v21 = vadd.f32 %v3045_v54, %v2552_v22  ;;  %v4333_v19 = vmul.f32 -1.442695, %v3121_v6  ;;  %v3122_v58 = vadd.f32 %v3116_v18, %v2665_v16  ;;  %v7403_v6 = vld [vmem:[#allocation18_spill] sm:$0xff]  ;;  %v7404_v18 = vld [vmem:[#allocation19_spill] sm:$0xff] }
 0xa17   :  { %v7405_v44 = vld [vmem:[#allocation20_spill] sm:$0xff]  ;;  %v7406_v16 = vld [vmem:[#allocation21_spill] sm:$0xff] }
 0xa18   :  { %4562 = vpow2.f32 %v4331_v14  ;;  %v4332_v25 = vmul.f32 -1.442695, %v3120_v21 }
 0xa1a   :  { %4564 = vpow2.f32 %v4332_v25 }
 0xa1b   :  { %4566 = vpow2.f32 %v4333_v19 }
 0xa1c   :  { %4568 = vtanh.f32 %v3122_v58  ;;  %v7401_v58 = vld [vmem:[#allocation49_spill] sm:$0xff] }
 0xa25   :  { %v4563_v56 = vpop.eup %4562 }
 0xa26   :  { %v3132_v8 = vadd.f32 1.0, %v4563_v56 }
 0xa27   :  { %v4565_v9 = vpop.eup %4564 }
 0xa28   :  { %4570 = vrcp.f32 %v3132_v8  ;;  %v3133_v54 = vadd.f32 1.0, %v4565_v9  ;;  %v4567_v25 = vpop.eup %4566  ;;  %v7407_v8 = vld [vmem:[#allocation22_spill] sm:$0xff]  ;;  %v7408_v9 = vld [vmem:[#allocation23_spill] sm:$0xff] }
 0xa29   :  { %v4569_v21 = vpop.eup %4568  ;;  %v3134_v5 = vadd.f32 1.0, %v4567_v25  ;;  %v7410_v25 = vld [vmem:[#allocation24_spill] sm:$0xff] }
 0xa2a   :  { %4572 = vrcp.f32 %v3133_v54  ;;  %v7409_v54 = vmov 0.0  }
 0xa2b   :  { %4574 = vrcp.f32 %v3134_v5 }
 0xa35   :  { %v4571_v22 = vpop.eup %4570 }
 0xa36   :  { %v3143_v14 = vmul.f32 %v4571_v22, %v4569_v21  ;;  %v7411_v21 = vld [vmem:[#allocation37_spill] sm:$0xff]  ;;  %v7412_v22 = vld [vmem:[#allocation39_spill] sm:$0xff] }
 0xa37   :  { %v4573_v60 = vpop.eup %4572 }
 0xa38   :  { %v3142_v24 = vmul.f32 %v4573_v60, %v6272_v10  ;;  %v4575_v56 = vpop.eup %4574  ;;  %v7402_v10 = vld [vmem:[#allocation51_spill] sm:$0xff]  ;;  %v7414_v60 = vld [vmem:[#allocation28_spill] sm:$0xff] }
 0xa3a   :  { %v6350_v23 = vadd.f32 %v3143_v14, %v3142_v24  ;;  %v7413_v14 = vld [vmem:[#allocation60_spill] sm:$0xff] }
 0xa3b   :  { %v2556_v5 = vadd.f32 %v7414_v60, %v7413_v14 }
 0xa3c   :  { %4576 = vtanh.f32 %v6350_v23 }
 0xa49   :  { %v4577_v19 = vpop.eup %4576 }
 0xa4a   :  { %v3146_v7 = vmul.f32 %v4577_v19, %v4575_v56  ;;  %v7415_v56 = vld [vmem:[#allocation30_spill] sm:$0xff] }
 0xa4b   :  { %v2558_v19 = vadd.f32 %v7415_v56, %v7385_v13 }
 0xa4c   :  { %3216 = vmatmul.mubr.f32.vlgmr.msra.gmra.mxu0 %v3146_v7  ;;  %3287 = vmatmul.mubr.f32.vlgmr.msra.gmra.mxu1 %v3146_v7 }
 0xa4d   :  { %3326 = vmatpush1.msra.mxu0 %v5924_v63  ;;  %3397 = vmatpush1.msra.mxu1 %v5926_v26  ;;  %v7389_v63 = vld [vmem:[#allocation40_spill] sm:$0xff]  ;;  %v7390_v26 = vld [vmem:[#allocation42_spill] sm:$0xff] }
 0xa4e   :  { %3327 = vmatprep.subr.mxu0 %v5930_v17  ;;  %3398 = vmatprep.subr.mxu1 %v5932_v28  ;;  %v7391_v17 = vld [vmem:[#allocation41_spill] sm:$0xff]  ;;  %v7392_v28 = vld [vmem:[#allocation43_spill] sm:$0xff] }
 0xa4f   :  { %3328 = vmatpush1.msra.mxu0 %v5936_v30  ;;  %3399 = vmatpush1.msra.mxu1 %v5938_v31  ;;  %v7393_v30 = vld [vmem:[#allocation44_spill] sm:$0xff]  ;;  %v7394_v31 = vld [vmem:[#allocation46_spill] sm:$0xff] }
 0xa50   :  { %3329 = vmatprep.subr.mxu0 %v5942_v32  ;;  %3400 = vmatprep.subr.mxu1 %v5944_v33  ;;  %v7395_v32 = vld [vmem:[#allocation45_spill] sm:$0xff]  ;;  %v7396_v33 = vld [vmem:[#allocation47_spill] sm:$0xff] }
 0xa51   :  { %3330 = vmatpush1.msra.mxu0 %v5948_v34  ;;  %3401 = vmatpush1.msra.mxu1 %v5950_v35  ;;  %v7397_v34 = vld [vmem:[#allocation16_spill] sm:$0xff]  ;;  %v7398_v35 = vld [vmem:[#allocation17_spill] sm:$0xff] }
 0xa52   :  { %3331 = vmatprep.subr.mxu0 %v5954_v36  ;;  %3402 = vmatprep.subr.mxu1 %v5956_v37  ;;  %v7399_v36 = vld [vmem:[#allocation48_spill] sm:$0xff]  ;;  %v7400_v37 = vld [vmem:[#allocation50_spill] sm:$0xff] }
 0xa53   :  { %3332 = vmatpush1.msra.mxu0 %v5960_v39  ;;  %3403 = vmatpush1.msra.mxu1 %v5962_v40 }
 0xa54   :  { %3333 = vmatprep.subr.mxu0 %v5966_v41  ;;  %3404 = vmatprep.subr.mxu1 %v5968_v42 }
 0xa55   :  { %3334 = vmatpush1.msra.mxu0 %v5972_v43  ;;  %3405 = vmatpush1.msra.mxu1 %v5974_v3 }
 0xa56   :  { %3335 = vmatprep.subr.mxu0 %v5978_v61  ;;  %3406 = vmatprep.subr.mxu1 %v5980_v48 }
 0xa57   :  { %3336 = vmatpush1.msra.mxu0 %v5984_v45  ;;  %3407 = vmatpush1.msra.mxu1 %v5986_v53 }
 0xa58   :  { %3337 = vmatprep.subr.mxu0 %v5990_v50  ;;  %3408 = vmatprep.subr.mxu1 %v5992_v38 }
 0xa59   :  { %3338 = vmatpush1.msra.mxu0 %v5996_v4  ;;  %3409 = vmatpush1.msra.mxu1 %v5998_v59 }
 0xa5a   :  { %3339 = vmatprep.subr.mxu0 %v6002_v2  ;;  %3410 = vmatprep.subr.mxu1 %v6004_v27 }
 0xa5b   :  { %3340 = vmatpush1.msra.mxu0 %v6008_v1  ;;  %3411 = vmatpush1.msra.mxu1 %v6010_v11 }
 0xa5c   :  { %3341 = vmatprep.subr.mxu0 %v6014_v62  ;;  %3412 = vmatprep.subr.mxu1 %v6016_v49 }
 0xa5d   :  { %3342 = vmatpush1.msra.mxu0 %v6020_v46  ;;  %3413 = vmatpush1.msra.mxu1 %v6022_v51 }
 0xa5e   :  { %3343 = vmatprep.subr.mxu0 %v6026_v55  ;;  %3414 = vmatprep.subr.mxu1 %v6028_v20 }
 0xa5f   :  { %3344 = vmatpush1.msra.mxu0 %v6032_v29  ;;  %3415 = vmatpush1.msra.mxu1 %v6034_v0 }
 0xa60   :  { %3345 = vmatprep.subr.mxu0 %v6038_v52  ;;  %3416 = vmatprep.subr.mxu1 %v6040_v47 }
 0xa61   :  { %3346 = vmatpush1.msra.mxu0 %v6044_v57  ;;  %3417 = vmatpush1.msra.mxu1 %v7389_v63 }
 0xa62   :  { %3347 = vmatprep.subr.mxu0 %v7390_v26  ;;  %3418 = vmatprep.subr.mxu1 %v7391_v17 }
 0xa63   :  { %3348 = vmatpush1.msra.mxu0 %v7392_v28  ;;  %3419 = vmatpush1.msra.mxu1 %v7393_v30 }
 0xa64   :  { %3349 = vmatprep.subr.mxu0 %v7394_v31  ;;  %3420 = vmatprep.subr.mxu1 %v7395_v32 }
 0xa65   :  { %3350 = vmatpush1.msra.mxu0 %v7396_v33  ;;  %3421 = vmatpush1.msra.mxu1 %v7397_v34 }
 0xa66   :  { %3351 = vmatprep.subr.mxu0 %v7398_v35  ;;  %3422 = vmatprep.subr.mxu1 %v7399_v36 }
 0xa67   :  { %3352 = vmatpush1.msra.mxu0 %v7400_v37  ;;  %3423 = vmatpush1.msra.mxu1 %v7401_v58 }
 0xa68   :  { %3353 = vmatprep.subr.mxu0 %v7402_v10  ;;  %3424 = vmatprep.subr.mxu1 %v7403_v6  ;;  %v7417_v6 = vld [vmem:[#allocation33_spill] sm:$0xff] }
 0xa69   :  { %3354 = vmatpush1.msra.mxu0 %v7404_v18  ;;  %3425 = vmatpush1.msra.mxu1 %v7405_v44  ;;  %v2671_v60 = vadd.f32 %v7417_v6, %v6269_v12 }
 0xa6a   :  { %3355 = vmatprep.subr.mxu0 %v7406_v16  ;;  %3426 = vmatprep.subr.mxu1 %v7407_v8 }
 0xa6b   :  { %3356 = vmatpush1.msra.mxu0 %v7408_v9  ;;  %3389 = vmatprep.mubr.f32.mxu0 %v7409_v54 }
 0xa6c   :  { %3427 = vmatpush1.msra.mxu1 %v7410_v25  ;;  %3460 = vmatprep.mubr.f32.mxu1 %v7409_v54  ;;  %v7416_v54 = vld [vmem:[#allocation31_spill] sm:$0xff] }
 0xa6d   :  { %3499 = vmatprep.subr.mxu0 %v7411_v21  ;;  %3570 = vmatprep.subr.mxu1 %v7412_v22  ;;  %v2669_v21 = vadd.f32 %v7416_v54, %v6264_v15 }
 0xb0c   :  { %v3217_v24 = vpop.f32.mrf.mxu0  ;;  %v3288_v25 = vpop.f32.mrf.mxu1 }
 0xb0d   :  { %v3293_v7 = vadd.f32 %v3217_v24, %v2556_v5  ;;  %v3295_v18 = vadd.f32 %v3288_v25, %v2669_v21  ;;  %v6437_v21 = vld [vmem:[#allocation9 + $0x1c8] sm:$0xff] }
 0xb0e   :  { %v3219_v8 = vpop.f32.mrf.mxu0  ;;  %v3290_v22 = vpop.f32.mrf.mxu1 }
 0xb0f   :  { %v4334_v9 = vmul.f32 -1.442695, %v3293_v7  ;;  %v3294_v16 = vadd.f32 %v3219_v8, %v2558_v19  ;;  %v4336_v14 = vmul.f32 -1.442695, %v3295_v18  ;;  %v3296_v10 = vadd.f32 %v3290_v22, %v2671_v60  ;;  %v6443_v22 = vld [vmem:[#allocation9 + $0x1c0] sm:$0xff]  ;;  %v6446_v60 = vld [vmem:[#allocation9 + $0x1d0] sm:$0xff] }
 0xb11   :  { %4578 = vpow2.f32 %v4334_v9  ;;  %v4335_v44 = vmul.f32 -1.442695, %v3294_v16 }
 0xb13   :  { %4580 = vpow2.f32 %v4335_v44 }
 0xb14   :  { %4582 = vpow2.f32 %v4336_v14  ;;  %v6434_v14 = vld [vmem:[#allocation9 + $0x1f0] sm:$0xff] }
 0xb15   :  { %4584 = vtanh.f32 %v3296_v10  ;;  %v6431_v10 = vld [vmem:[#allocation9 + $0x1e0] sm:$0xff] }
 0xb1e   :  { %v4579_v58 = vpop.eup %4578 }
 0xb1f   :  { %v3306_v56 = vadd.f32 1.0, %v4579_v58 }
 0xb20   :  { %v4581_v5 = vpop.eup %4580 }
 0xb21   :  { %4586 = vrcp.f32 %v3306_v56  ;;  %v3307_v8 = vadd.f32 1.0, %v4581_v5  ;;  %v4583_v44 = vpop.eup %4582  ;;  %v6449_v56 = vld [vmem:[#allocation9 + $0x1a8] sm:$0xff]  ;;  %v6452_v5 = vld [vmem:[#allocation9 + $0x1b8] sm:$0xff] }
 0xb22   :  { %v4585_v16 = vpop.eup %4584  ;;  %v3308_v25 = vadd.f32 1.0, %v4583_v44  ;;  %v6458_v44 = vld [vmem:[#allocation9 + $0x1b0] sm:$0xff] }
 0xb23   :  { %4588 = vrcp.f32 %v3307_v8  ;;  %v6455_v8 = vld [vmem:[#allocation9 + $0x1a0] sm:$0xff] }
 0xb24   :  { %4590 = vrcp.f32 %v3308_v25 }
 0xb2e   :  { %v4587_v9 = vpop.eup %4586 }
 0xb2f   :  { %v3317_v24 = vmul.f32 %v4587_v9, %v4585_v16  ;;  %v6461_v16 = vld [vmem:[#allocation9 + $0x188] sm:$0xff]  ;;  %v6464_v9 = vld [vmem:[#allocation9 + $0x198] sm:$0xff] }
 0xb30   :  { %v4589_v54 = vpop.eup %4588 }
 0xb31   :  { %v3316_v19 = vmul.f32 %v4589_v54, %v6350_v23  ;;  %v4591_v58 = vpop.eup %4590  ;;  %v6440_v23 = vld [vmem:[#allocation9 + $0x1d8] sm:$0xff] }
 0xb33   :  { %v6428_v7 = vadd.f32 %v3317_v24, %v3316_v19 }
 0xb35   :  { %4592 = vtanh.f32 %v6428_v7 }
 0xb42   :  { %v4593_v6 = vpop.eup %4592 }
 0xb43   :  { %v3320_v18 = vmul.f32 %v4593_v6, %v4591_v58 }
 0xb45   :  { %3390 = vmatmul.mubr.f32.vlgmr.msra.gmra.mxu0 %v3320_v18  ;;  %3461 = vmatmul.mubr.f32.vlgmr.msra.gmra.mxu1 %v3320_v18  ;;  %v6552_v18 = vld [vmem:[#allocation9 + $0x190] sm:$0xff] }
 0xb46   :  { %3500 = vmatpush1.msra.mxu0 %v6431_v10  ;;  %3571 = vmatpush1.msra.mxu1 %v6434_v14 }
 0xb47   :  { %3501 = vmatprep.subr.mxu0 %v6437_v21  ;;  %3572 = vmatprep.subr.mxu1 %v6440_v23 }
 0xb48   :  { %3502 = vmatpush1.msra.mxu0 %v6443_v22  ;;  %3573 = vmatpush1.msra.mxu1 %v6446_v60 }
 0xb49   :  { %3503 = vmatprep.subr.mxu0 %v6449_v56  ;;  %3574 = vmatprep.subr.mxu1 %v6452_v5 }
 0xb4a   :  { %3504 = vmatpush1.msra.mxu0 %v6455_v8  ;;  %3575 = vmatpush1.msra.mxu1 %v6458_v44 }
 0xb4b   :  { %3505 = vmatprep.subr.mxu0 %v6461_v16  ;;  %3576 = vmatprep.subr.mxu1 %v6464_v9 }
 0xb4c   :  { %3506 = vmatpush1.msra.mxu0 %v5960_v39  ;;  %3577 = vmatpush1.msra.mxu1 %v5962_v40  ;;  %v7418_v39 = vld [vmem:[#allocation49_spill] sm:$0xff]  ;;  %v7419_v40 = vld [vmem:[#allocation51_spill] sm:$0xff] }
 0xb4d   :  { %3507 = vmatprep.subr.mxu0 %v5966_v41  ;;  %3578 = vmatprep.subr.mxu1 %v5968_v42  ;;  %v7420_v41 = vld [vmem:[#allocation18_spill] sm:$0xff]  ;;  %v7421_v42 = vld [vmem:[#allocation19_spill] sm:$0xff] }
 0xb4e   :  { %3508 = vmatpush1.msra.mxu0 %v5972_v43  ;;  %3579 = vmatpush1.msra.mxu1 %v5974_v3  ;;  %v7422_v43 = vld [vmem:[#allocation20_spill] sm:$0xff]  ;;  %v7423_v3 = vld [vmem:[#allocation21_spill] sm:$0xff] }
 0xb4f   :  { %3509 = vmatprep.subr.mxu0 %v5978_v61  ;;  %3580 = vmatprep.subr.mxu1 %v5980_v48  ;;  %v7424_v61 = vld [vmem:[#allocation22_spill] sm:$0xff]  ;;  %v7425_v48 = vld [vmem:[#allocation23_spill] sm:$0xff] }
 0xb50   :  { %3510 = vmatpush1.msra.mxu0 %v5984_v45  ;;  %3581 = vmatpush1.msra.mxu1 %v5986_v53  ;;  %v7426_v45 = vmov 0.0   ;;  %v7427_v53 = vld [vmem:[#allocation24_spill] sm:$0xff] }
 0xb51   :  { %3511 = vmatprep.subr.mxu0 %v5990_v50  ;;  %3582 = vmatprep.subr.mxu1 %v5992_v38  ;;  %v6519_v50 = vld [vmem:[#allocation9 + $0x1e8] sm:$0xff]  ;;  %v6522_v38 = vld [vmem:[#allocation9 + $0x1f8] sm:$0xff] }
 0xb52   :  { %3512 = vmatpush1.msra.mxu0 %v5996_v4  ;;  %3583 = vmatpush1.msra.mxu1 %v5998_v59  ;;  %7428 = vst [vmem:[#allocation25_spill] sm:$0xff] %v6519_v50  ;;  %7429 = vst [vmem:[#allocation63_spill] sm:$0xff] %v6522_v38  ;;  %v7430_v4 = vld [vmem:[#allocation60_spill] sm:$0xff] }
 0xb53   :  { %3513 = vmatprep.subr.mxu0 %v6002_v2  ;;  %3584 = vmatprep.subr.mxu1 %v6004_v27  ;;  %v7431_v59 = vld [vmem:[#allocation32_spill] sm:$0xff] }
 0xb54   :  { %3514 = vmatpush1.msra.mxu0 %v6008_v1  ;;  %3585 = vmatpush1.msra.mxu1 %v6010_v11  ;;  %v2562_v2 = vadd.f32 %v7431_v59, %v7430_v4  ;;  %v7432_v1 = vld [vmem:[#allocation34_spill] sm:$0xff] }
 0xb55   :  { %3515 = vmatprep.subr.mxu0 %v6014_v62  ;;  %3586 = vmatprep.subr.mxu1 %v6016_v49  ;;  %v2564_v11 = vadd.f32 %v7432_v1, %v7385_v13  ;;  %v6582_v59 = vld [vmem:[#allocation9 + $0x138] sm:$0xff]  ;;  %v6591_v1 = vld [vmem:[#allocation9 + $0x108] sm:$0xff] }
 0xb56   :  { %3516 = vmatpush1.msra.mxu0 %v6020_v46  ;;  %3587 = vmatpush1.msra.mxu1 %v6022_v51 }
 0xb57   :  { %3517 = vmatprep.subr.mxu0 %v6026_v55  ;;  %3588 = vmatprep.subr.mxu1 %v6028_v20 }
 0xb58   :  { %3518 = vmatpush1.msra.mxu0 %v6032_v29  ;;  %3589 = vmatpush1.msra.mxu1 %v6034_v0  ;;  %v7433_v29 = vld [vmem:[#allocation52_spill] sm:$0xff] }
 0xb59   :  { %3519 = vmatprep.subr.mxu0 %v6038_v52  ;;  %3590 = vmatprep.subr.mxu1 %v6040_v47  ;;  %v2675_v0 = vadd.f32 %v7433_v29, %v6264_v15  ;;  %v6615_v29 = vld [vmem:[#allocation9 + $0xc8] sm:$0xff] }
 0xb5a   :  { %3520 = vmatpush1.msra.mxu0 %v6044_v57  ;;  %3591 = vmatpush1.msra.mxu1 %v7389_v63  ;;  %v7434_v57 = vld [vmem:[#allocation53_spill] sm:$0xff] }
 0xb5b   :  { %3521 = vmatprep.subr.mxu0 %v7390_v26  ;;  %3592 = vmatprep.subr.mxu1 %v7391_v17  ;;  %v2677_v63 = vadd.f32 %v7434_v57, %v6269_v12  ;;  %v6627_v57 = vld [vmem:[#allocation9 + $0xa8] sm:$0xff] }
 0xb5c   :  { %3522 = vmatpush1.msra.mxu0 %v7392_v28  ;;  %3593 = vmatpush1.msra.mxu1 %v7393_v30 }
 0xb5d   :  { %3523 = vmatprep.subr.mxu0 %v7394_v31  ;;  %3594 = vmatprep.subr.mxu1 %v7395_v32 }
 0xb5e   :  { %3524 = vmatpush1.msra.mxu0 %v7396_v33  ;;  %3595 = vmatpush1.msra.mxu1 %v7397_v34 }
 0xb5f   :  { %3525 = vmatprep.subr.mxu0 %v7398_v35  ;;  %3596 = vmatprep.subr.mxu1 %v7399_v36 }
 0xb60   :  { %3526 = vmatpush1.msra.mxu0 %v7400_v37  ;;  %3597 = vmatpush1.msra.mxu1 %v7418_v39  ;;  %v6555_v39 = vld [vmem:[#allocation9 + $0x168] sm:$0xff] }
 0xb61   :  { %3527 = vmatprep.subr.mxu0 %v7419_v40  ;;  %3598 = vmatprep.subr.mxu1 %v7420_v41  ;;  %v6558_v40 = vld [vmem:[#allocation9 + $0x178] sm:$0xff]  ;;  %v6561_v41 = vld [vmem:[#allocation9 + $0x160] sm:$0xff] }
 0xb62   :  { %3528 = vmatpush1.msra.mxu0 %v7421_v42  ;;  %3599 = vmatpush1.msra.mxu1 %v7422_v43  ;;  %v6564_v42 = vld [vmem:[#allocation9 + $0x170] sm:$0xff]  ;;  %v6567_v43 = vld [vmem:[#allocation9 + $0x148] sm:$0xff] }
 0xb63   :  { %3529 = vmatprep.subr.mxu0 %v7423_v3  ;;  %3600 = vmatprep.subr.mxu1 %v7424_v61  ;;  %v6570_v3 = vld [vmem:[#allocation9 + $0x158] sm:$0xff]  ;;  %v6573_v61 = vld [vmem:[#allocation9 + $0x140] sm:$0xff] }
 0xb64   :  { %3530 = vmatpush1.msra.mxu0 %v7425_v48  ;;  %3563 = vmatprep.mubr.f32.mxu0 %v7426_v45  ;;  %v6576_v48 = vld [vmem:[#allocation9 + $0x150] sm:$0xff] }
 0xb65   :  { %3601 = vmatpush1.msra.mxu1 %v7427_v53  ;;  %3634 = vmatprep.mubr.f32.mxu1 %v7426_v45  ;;  %v6579_v53 = vld [vmem:[#allocation9 + $0x128] sm:$0xff] }
 0xb66   :  { %3673 = vmatprep.subr.mxu0 %v6519_v50  ;;  %3744 = vmatprep.subr.mxu1 %v6522_v38 }
 0xc05   :  { %v3391_v27 = vpop.f32.mrf.mxu0  ;;  %v3462_v20 = vpop.f32.mrf.mxu1 }
 0xc06   :  { %v3467_v62 = vadd.f32 %v3391_v27, %v2562_v2  ;;  %v3469_v52 = vadd.f32 %v3462_v20, %v2675_v0  ;;  %v6585_v2 = vld [vmem:[#allocation9 + $0x120] sm:$0xff]  ;;  %v6588_v27 = vld [vmem:[#allocation9 + $0x130] sm:$0xff]  ;;  %v6618_v0 = vld [vmem:[#allocation9 + $0xd8] sm:$0xff] }
 0xc07   :  { %v3393_v49 = vpop.f32.mrf.mxu0  ;;  %v3464_v47 = vpop.f32.mrf.mxu1  ;;  %v6612_v20 = vld [vmem:[#allocation9 + $0xf0] sm:$0xff] }
 0xc08   :  { %v4337_v46 = vmul.f32 -1.442695, %v3467_v62  ;;  %v3468_v51 = vadd.f32 %v3393_v49, %v2564_v11  ;;  %v4339_v26 = vmul.f32 -1.442695, %v3469_v52  ;;  %v3470_v17 = vadd.f32 %v3464_v47, %v2677_v63  ;;  %v6594_v11 = vld [vmem:[#allocation9 + $0x118] sm:$0xff]  ;;  %v6597_v62 = vld [vmem:[#allocation9 + $0x100] sm:$0xff] }
 0xc09   :  { %v6600_v49 = vld [vmem:[#allocation9 + $0x110] sm:$0xff]  ;;  %v6621_v52 = vld [vmem:[#allocation9 + $0xc0] sm:$0xff]  ;;  %v6630_v63 = vld [vmem:[#allocation9 + $0xb8] sm:$0xff] }
 0xc0a   :  { %4594 = vpow2.f32 %v4337_v46  ;;  %v4338_v55 = vmul.f32 -1.442695, %v3468_v51  ;;  %v6603_v46 = vld [vmem:[#allocation9 + $0xe8] sm:$0xff]  ;;  %v6606_v51 = vld [vmem:[#allocation9 + $0xf8] sm:$0xff]  ;;  %v6624_v47 = vld [vmem:[#allocation9 + $0xd0] sm:$0xff] }
 0xc0c   :  { %4596 = vpow2.f32 %v4338_v55  ;;  %v6609_v55 = vld [vmem:[#allocation9 + $0xe0] sm:$0xff] }
 0xc0d   :  { %4598 = vpow2.f32 %v4339_v26  ;;  %v6633_v26 = vld [vmem:[#allocation9 + $0xa0] sm:$0xff] }
 0xc0e   :  { %4600 = vtanh.f32 %v3470_v17  ;;  %v6636_v17 = vld [vmem:[#allocation9 + $0xb0] sm:$0xff] }
 0xc0f   :  { %7435 = vst [vmem:[#allocation26_spill] sm:$0xff] %v6636_v17 }
 0xc17   :  { %v4595_v28 = vpop.eup %4594 }
 0xc18   :  { %v3480_v30 = vadd.f32 1.0, %v4595_v28  ;;  %v6639_v28 = vld [vmem:[#allocation9 + $0x88] sm:$0xff] }
 0xc19   :  { %v4597_v31 = vpop.eup %4596  ;;  %7436 = vst [vmem:[#allocation27_spill] sm:$0xff] %v6639_v28 }
 0xc1a   :  { %4602 = vrcp.f32 %v3480_v30  ;;  %v3481_v32 = vadd.f32 1.0, %v4597_v31  ;;  %v4599_v33 = vpop.eup %4598  ;;  %v6642_v30 = vld [vmem:[#allocation9 + $0x98] sm:$0xff]  ;;  %v6645_v31 = vld [vmem:[#allocation9 + $0x80] sm:$0xff] }
 0xc1b   :  { %v4601_v34 = vpop.eup %4600  ;;  %v3482_v24 = vadd.f32 1.0, %v4599_v33  ;;  %7437 = vst [vmem:[#allocation29_spill] sm:$0xff] %v6642_v30  ;;  %7438 = vst [vmem:[#allocation40_spill] sm:$0xff] %v6645_v31  ;;  %v6651_v33 = vld [vmem:[#allocation9 + $0x68] sm:$0xff] }
 0xc1c   :  { %4604 = vrcp.f32 %v3481_v32  ;;  %v6648_v32 = vld [vmem:[#allocation9 + $0x90] sm:$0xff]  ;;  %7440 = vst [vmem:[#allocation41_spill] sm:$0xff] %v6651_v33 }
 0xc1d   :  { %4606 = vrcp.f32 %v3482_v24  ;;  %7439 = vst [vmem:[#allocation42_spill] sm:$0xff] %v6648_v32  ;;  %v6666_v24 = vld [vmem:[#allocation9 + $0x58] sm:$0xff] }
 0xc1e   :  { %7445 = vst [vmem:[#allocation47_spill] sm:$0xff] %v6666_v24 }
 0xc27   :  { %v4603_v35 = vpop.eup %4602 }
 0xc28   :  { %v3491_v36 = vmul.f32 %v4603_v35, %v4601_v34  ;;  %v6654_v34 = vld [vmem:[#allocation9 + $0x78] sm:$0xff]  ;;  %v6657_v35 = vld [vmem:[#allocation9 + $0x60] sm:$0xff] }
 0xc29   :  { %v4605_v37 = vpop.eup %4604  ;;  %7441 = vst [vmem:[#allocation43_spill] sm:$0xff] %v6654_v34  ;;  %7442 = vst [vmem:[#allocation44_spill] sm:$0xff] %v6657_v35 }
 0xc2a   :  { %v3490_v54 = vmul.f32 %v4605_v37, %v6428_v7  ;;  %v4607_v19 = vpop.eup %4606  ;;  %v6549_v7 = vld [vmem:[#allocation9 + $0x180] sm:$0xff]  ;;  %v6663_v37 = vld [vmem:[#allocation9 + $0x48] sm:$0xff] }
 0xc2b   :  { %7444 = vst [vmem:[#allocation45_spill] sm:$0xff] %v6663_v37 }
 0xc2c   :  { %v6534_v25 = vadd.f32 %v3491_v36, %v3490_v54  ;;  %v6660_v36 = vld [vmem:[#allocation9 + $0x70] sm:$0xff]  ;;  %v6669_v54 = vld [vmem:[#allocation9 + $0x40] sm:$0xff] }
 0xc2d   :  { %7443 = vst [vmem:[#allocation46_spill] sm:$0xff] %v6660_v36  ;;  %7446 = vst [vmem:[#allocation16_spill] sm:$0xff] %v6669_v54 }
 0xc2e   :  { %4608 = vtanh.f32 %v6534_v25 }
 0xc3b   :  { %v4609_v58 = vpop.eup %4608 }
 0xc3c   :  { %v3494_v6 = vmul.f32 %v4609_v58, %v4607_v19  ;;  %v6672_v19 = vld [vmem:[#allocation9 + $0x50] sm:$0xff]  ;;  %v6675_v58 = vld [vmem:[#allocation9 + $0x28] sm:$0xff] }
 0xc3d   :  { %7447 = vst [vmem:[#allocation17_spill] sm:$0xff] %v6672_v19  ;;  %7448 = vst [vmem:[#allocation48_spill] sm:$0xff] %v6675_v58 }
 0xc3e   :  { %3564 = vmatmul.mubr.f32.vlgmr.msra.gmra.mxu0 %v3494_v6  ;;  %3635 = vmatmul.mubr.f32.vlgmr.msra.gmra.mxu1 %v3494_v6  ;;  %v6678_v6 = vld [vmem:[#allocation9 + $0x38] sm:$0xff] }
 0xc3f   :  { %3674 = vmatpush1.msra.mxu0 %v6431_v10  ;;  %3745 = vmatpush1.msra.mxu1 %v6434_v14  ;;  %7449 = vst [vmem:[#allocation50_spill] sm:$0xff] %v6678_v6 }
 0xc40   :  { %3675 = vmatprep.subr.mxu0 %v6437_v21  ;;  %3746 = vmatprep.subr.mxu1 %v6440_v23 }
 0xc41   :  { %3676 = vmatpush1.msra.mxu0 %v6443_v22  ;;  %3747 = vmatpush1.msra.mxu1 %v6446_v60 }
 0xc42   :  { %3677 = vmatprep.subr.mxu0 %v6449_v56  ;;  %3748 = vmatprep.subr.mxu1 %v6452_v5 }
 0xc43   :  { %3678 = vmatpush1.msra.mxu0 %v6455_v8  ;;  %3749 = vmatpush1.msra.mxu1 %v6458_v44 }
 0xc44   :  { %3679 = vmatprep.subr.mxu0 %v6461_v16  ;;  %3750 = vmatprep.subr.mxu1 %v6464_v9 }
 0xc45   :  { %3680 = vmatpush1.msra.mxu0 %v6549_v7  ;;  %3751 = vmatpush1.msra.mxu1 %v6552_v18 }
 0xc46   :  { %3681 = vmatprep.subr.mxu0 %v6555_v39  ;;  %3752 = vmatprep.subr.mxu1 %v6558_v40 }
 0xc47   :  { %3682 = vmatpush1.msra.mxu0 %v6561_v41  ;;  %3753 = vmatpush1.msra.mxu1 %v6564_v42 }
 0xc48   :  { %3683 = vmatprep.subr.mxu0 %v6567_v43  ;;  %3754 = vmatprep.subr.mxu1 %v6570_v3 }
 0xc49   :  { %3684 = vmatpush1.msra.mxu0 %v6573_v61  ;;  %3755 = vmatpush1.msra.mxu1 %v6576_v48 }
 0xc4a   :  { %3685 = vmatprep.subr.mxu0 %v6579_v53  ;;  %3756 = vmatprep.subr.mxu1 %v6582_v59 }
 0xc4b   :  { %3686 = vmatpush1.msra.mxu0 %v6585_v2  ;;  %3757 = vmatpush1.msra.mxu1 %v6588_v27 }
 0xc4c   :  { %3687 = vmatprep.subr.mxu0 %v6591_v1  ;;  %3758 = vmatprep.subr.mxu1 %v6594_v11 }
 0xc4d   :  { %3688 = vmatpush1.msra.mxu0 %v6597_v62  ;;  %3759 = vmatpush1.msra.mxu1 %v6600_v49 }
 0xc4e   :  { %3689 = vmatprep.subr.mxu0 %v6603_v46  ;;  %3760 = vmatprep.subr.mxu1 %v6606_v51 }
 0xc4f   :  { %3690 = vmatpush1.msra.mxu0 %v6609_v55  ;;  %3761 = vmatpush1.msra.mxu1 %v6612_v20 }
 0xc50   :  { %3691 = vmatprep.subr.mxu0 %v6615_v29  ;;  %3762 = vmatprep.subr.mxu1 %v6618_v0 }
 0xc51   :  { %3692 = vmatpush1.msra.mxu0 %v6621_v52  ;;  %3763 = vmatpush1.msra.mxu1 %v6624_v47 }
 0xc52   :  { %3693 = vmatprep.subr.mxu0 %v6627_v57  ;;  %3764 = vmatprep.subr.mxu1 %v6630_v63 }
 0xc53   :  { %3694 = vmatpush1.msra.mxu0 %v6633_v26  ;;  %3765 = vmatpush1.msra.mxu1 %v6636_v17 }
 0xc54   :  { %3695 = vmatprep.subr.mxu0 %v6639_v28  ;;  %3766 = vmatprep.subr.mxu1 %v6642_v30  ;;  %v7459_v30 = vld [vmem:[#allocation57_spill] sm:$0xff] }
 0xc55   :  { %3696 = vmatpush1.msra.mxu0 %v6645_v31  ;;  %3767 = vmatpush1.msra.mxu1 %v6648_v32 }
 0xc56   :  { %3697 = vmatprep.subr.mxu0 %v6651_v33  ;;  %3768 = vmatprep.subr.mxu1 %v6654_v34 }
 0xc57   :  { %3698 = vmatpush1.msra.mxu0 %v6657_v35  ;;  %3769 = vmatpush1.msra.mxu1 %v6660_v36 }
 0xc58   :  { %3699 = vmatprep.subr.mxu0 %v6663_v37  ;;  %3770 = vmatprep.subr.mxu1 %v6666_v24  ;;  %v6681_v37 = vld [vmem:[#allocation9 + $0x20] sm:$0xff]  ;;  %v6684_v24 = vld [vmem:[#allocation9 + $0x30] sm:$0xff] }
 0xc59   :  { %3700 = vmatpush1.msra.mxu0 %v6669_v54  ;;  %3771 = vmatpush1.msra.mxu1 %v6672_v19  ;;  %7450 = vst [vmem:[#allocation37_spill] sm:$0xff] %v6681_v37  ;;  %7451 = vst [vmem:[#allocation39_spill] sm:$0xff] %v6684_v24  ;;  %v6687_v54 = vld [vmem:[#allocation9 + $0x8] sm:$0xff]  ;;  %v6690_v19 = vld [vmem:[#allocation9 + $0x18] sm:$0xff] }
 0xc5a   :  { %3701 = vmatprep.subr.mxu0 %v6675_v58  ;;  %3772 = vmatprep.subr.mxu1 %v6678_v6  ;;  %7452 = vst [vmem:[#allocation28_spill] sm:$0xff] %v6687_v54  ;;  %7453 = vst [vmem:[#allocation30_spill] sm:$0xff] %v6690_v19  ;;  %v6693_v58 = vld [vmem:[#allocation9] sm:$0xff]  ;;  %v6697_v6 = vld [vmem:[#allocation9 + $0x10] sm:$0xff] }
 0xc5b   :  { %3702 = vmatpush1.msra.mxu0 %v6681_v37  ;;  %3773 = vmatpush1.msra.mxu1 %v6684_v24  ;;  %7454 = vst [vmem:[#allocation31_spill] sm:$0xff] %v6693_v58  ;;  %7455 = vst [vmem:[#allocation33_spill] sm:$0xff] %v6697_v6  ;;  %v7457_v37 = vld [vmem:[#allocation55_spill] sm:$0xff] }
 0xc5c   :  { %3703 = vmatprep.subr.mxu0 %v6687_v54  ;;  %3774 = vmatprep.subr.mxu1 %v6690_v19  ;;  %v7456_v54 = vld [vmem:[#allocation54_spill] sm:$0xff]  ;;  %v2570_v36 = vadd.f32 %v7457_v37, %v7385_v13 }
 0xc5d   :  { %3704 = vmatpush1.msra.mxu0 %v6693_v58  ;;  %3737 = vmatprep.mubr.f32.mxu0 %v7426_v45  ;;  %v2568_v24 = vadd.f32 %v7456_v54, %v7430_v4  ;;  %v2683_v54 = vadd.f32 %v7459_v30, %v6269_v12  ;;  %v7462_v30 = vld [vmem:[#allocation29_spill] sm:$0xff] }
 0xc5e   :  { %3775 = vmatpush1.msra.mxu1 %v6697_v6  ;;  %3808 = vmatprep.mubr.f32.mxu1 %v7426_v45  ;;  %v7458_v45 = vld [vmem:[#allocation56_spill] sm:$0xff] }
 0xc5f   :  { %3847 = vmatprep.subr.mxu0 %v6519_v50  ;;  %3918 = vmatprep.subr.mxu1 %v6522_v38  ;;  %v2681_v50 = vadd.f32 %v7458_v45, %v6264_v15 }
 0xcfe   :  { %v3565_v19 = vpop.f32.mrf.mxu0  ;;  %v3636_v6 = vpop.f32.mrf.mxu1 }
 0xcff   :  { %v3641_v58 = vadd.f32 %v3565_v19, %v2568_v24  ;;  %v3643_v31 = vadd.f32 %v3636_v6, %v2681_v50  ;;  %v7464_v6 = vld [vmem:[#allocation42_spill] sm:$0xff] }
 0xd00   :  { %v3567_v35 = vpop.f32.mrf.mxu0  ;;  %v3638_v38 = vpop.f32.mrf.mxu1 }
 0xd01   :  { %v4340_v34 = vmul.f32 -1.442695, %v3641_v58  ;;  %v3642_v33 = vadd.f32 %v3567_v35, %v2570_v36  ;;  %v4342_v4 = vmul.f32 -1.442695, %v3643_v31  ;;  %v3644_v28 = vadd.f32 %v3638_v38, %v2683_v54  ;;  %v7463_v31 = vld [vmem:[#allocation40_spill] sm:$0xff]  ;;  %v7465_v54 = vld [vmem:[#allocation41_spill] sm:$0xff] }
 0xd03   :  { %4610 = vpow2.f32 %v4340_v34  ;;  %v4341_v32 = vmul.f32 -1.442695, %v3642_v33 }
 0xd05   :  { %4612 = vpow2.f32 %v4341_v32 }
 0xd06   :  { %4614 = vpow2.f32 %v4342_v4 }
 0xd07   :  { %4616 = vtanh.f32 %v3644_v28  ;;  %v7461_v28 = vld [vmem:[#allocation27_spill] sm:$0xff] }
 0xd10   :  { %v4611_v17 = vpop.eup %4610 }
 0xd11   :  { %v3654_v37 = vadd.f32 1.0, %v4611_v17 }
 0xd12   :  { %v4613_v24 = vpop.eup %4612 }
 0xd13   :  { %4618 = vrcp.f32 %v3654_v37  ;;  %v3655_v34 = vadd.f32 1.0, %v4613_v24  ;;  %v4615_v32 = vpop.eup %4614  ;;  %v7466_v37 = vld [vmem:[#allocation43_spill] sm:$0xff]  ;;  %v7467_v24 = vld [vmem:[#allocation44_spill] sm:$0xff] }
 0xd14   :  { %v4617_v33 = vpop.eup %4616  ;;  %v3656_v50 = vadd.f32 1.0, %v4615_v32  ;;  %v7469_v32 = vld [vmem:[#allocation45_spill] sm:$0xff] }
 0xd15   :  { %4620 = vrcp.f32 %v3655_v34  ;;  %v7468_v34 = vld [vmem:[#allocation46_spill] sm:$0xff] }
 0xd16   :  { %4622 = vrcp.f32 %v3656_v50  ;;  %v7474_v50 = vld [vmem:[#allocation50_spill] sm:$0xff] }
 0xd20   :  { %v4619_v35 = vpop.eup %4618 }
 0xd21   :  { %v3665_v36 = vmul.f32 %v4619_v35, %v4617_v33  ;;  %v7470_v33 = vld [vmem:[#allocation47_spill] sm:$0xff]  ;;  %v7471_v35 = vld [vmem:[#allocation16_spill] sm:$0xff] }
 0xd22   :  { %v4621_v45 = vpop.eup %4620 }
 0xd23   :  { %v3664_v19 = vmul.f32 %v4621_v45, %v6534_v25  ;;  %v4623_v38 = vpop.eup %4622  ;;  %v7460_v25 = vld [vmem:[#allocation26_spill] sm:$0xff]  ;;  %v7473_v45 = vld [vmem:[#allocation48_spill] sm:$0xff] }
 0xd25   :  { %v6712_v58 = vadd.f32 %v3665_v36, %v3664_v19  ;;  %v7472_v36 = vld [vmem:[#allocation17_spill] sm:$0xff] }
 0xd26   :  { %v7475_v19 = vld [vmem:[#allocation37_spill] sm:$0xff] }
 0xd27   :  { %4624 = vtanh.f32 %v6712_v58 }
 0xd34   :  { %v4625_v4 = vpop.eup %4624 }
 0xd35   :  { %v3668_v17 = vmul.f32 %v4625_v4, %v4623_v38  ;;  %v7476_v38 = vld [vmem:[#allocation39_spill] sm:$0xff]  ;;  %v7477_v4 = vld [vmem:[#allocation28_spill] sm:$0xff] }
 0xd37   :  { %3738 = vmatmul.mubr.f32.vlgmr.msra.gmra.mxu0 %v3668_v17  ;;  %3809 = vmatmul.mubr.f32.vlgmr.msra.gmra.mxu1 %v3668_v17  ;;  %v7478_v17 = vld [vmem:[#allocation30_spill] sm:$0xff] }
 0xd38   :  { %3848 = vmatpush1.msra.mxu0 %v6431_v10  ;;  %3919 = vmatpush1.msra.mxu1 %v6434_v14 }
 0xd39   :  { %3849 = vmatprep.subr.mxu0 %v6437_v21  ;;  %3920 = vmatprep.subr.mxu1 %v6440_v23 }
 0xd3a   :  { %3850 = vmatpush1.msra.mxu0 %v6443_v22  ;;  %3921 = vmatpush1.msra.mxu1 %v6446_v60 }
 0xd3b   :  { %3851 = vmatprep.subr.mxu0 %v6449_v56  ;;  %3922 = vmatprep.subr.mxu1 %v6452_v5 }
 0xd3c   :  { %3852 = vmatpush1.msra.mxu0 %v6455_v8  ;;  %3923 = vmatpush1.msra.mxu1 %v6458_v44 }
 0xd3d   :  { %3853 = vmatprep.subr.mxu0 %v6461_v16  ;;  %3924 = vmatprep.subr.mxu1 %v6464_v9 }
 0xd3e   :  { %3854 = vmatpush1.msra.mxu0 %v6549_v7  ;;  %3925 = vmatpush1.msra.mxu1 %v6552_v18 }
 0xd3f   :  { %3855 = vmatprep.subr.mxu0 %v6555_v39  ;;  %3926 = vmatprep.subr.mxu1 %v6558_v40 }
 0xd40   :  { %3856 = vmatpush1.msra.mxu0 %v6561_v41  ;;  %3927 = vmatpush1.msra.mxu1 %v6564_v42 }
 0xd41   :  { %3857 = vmatprep.subr.mxu0 %v6567_v43  ;;  %3928 = vmatprep.subr.mxu1 %v6570_v3 }
 0xd42   :  { %3858 = vmatpush1.msra.mxu0 %v6573_v61  ;;  %3929 = vmatpush1.msra.mxu1 %v6576_v48 }
 0xd43   :  { %3859 = vmatprep.subr.mxu0 %v6579_v53  ;;  %3930 = vmatprep.subr.mxu1 %v6582_v59 }
 0xd44   :  { %3860 = vmatpush1.msra.mxu0 %v6585_v2  ;;  %3931 = vmatpush1.msra.mxu1 %v6588_v27 }
 0xd45   :  { %3861 = vmatprep.subr.mxu0 %v6591_v1  ;;  %3932 = vmatprep.subr.mxu1 %v6594_v11 }
 0xd46   :  { %3862 = vmatpush1.msra.mxu0 %v6597_v62  ;;  %3933 = vmatpush1.msra.mxu1 %v6600_v49 }
 0xd47   :  { %3863 = vmatprep.subr.mxu0 %v6603_v46  ;;  %3934 = vmatprep.subr.mxu1 %v6606_v51 }
 0xd48   :  { %3864 = vmatpush1.msra.mxu0 %v6609_v55  ;;  %3935 = vmatpush1.msra.mxu1 %v6612_v20 }
 0xd49   :  { %3865 = vmatprep.subr.mxu0 %v6615_v29  ;;  %3936 = vmatprep.subr.mxu1 %v6618_v0 }
 0xd4a   :  { %3866 = vmatpush1.msra.mxu0 %v6621_v52  ;;  %3937 = vmatpush1.msra.mxu1 %v6624_v47 }
 0xd4b   :  { %3867 = vmatprep.subr.mxu0 %v6627_v57  ;;  %3938 = vmatprep.subr.mxu1 %v6630_v63 }
 0xd4c   :  { %3868 = vmatpush1.msra.mxu0 %v6633_v26  ;;  %3939 = vmatpush1.msra.mxu1 %v7460_v25 }
 0xd4d   :  { %3869 = vmatprep.subr.mxu0 %v7461_v28  ;;  %3940 = vmatprep.subr.mxu1 %v7462_v30  ;;  %v7488_v30 = vld [vmem:[#allocation35_spill] sm:$0xff] }
 0xd4e   :  { %3870 = vmatpush1.msra.mxu0 %v7463_v31  ;;  %3941 = vmatpush1.msra.mxu1 %v7464_v6 }
 0xd4f   :  { %3871 = vmatprep.subr.mxu0 %v7465_v54  ;;  %3942 = vmatprep.subr.mxu1 %v7466_v37 }
 0xd50   :  { %3872 = vmatpush1.msra.mxu0 %v7467_v24  ;;  %3943 = vmatpush1.msra.mxu1 %v7468_v34  ;;  %v7479_v34 = vld [vmem:[#allocation31_spill] sm:$0xff] }
 0xd51   :  { %3873 = vmatprep.subr.mxu0 %v7469_v32  ;;  %3944 = vmatprep.subr.mxu1 %v7470_v33  ;;  %v7480_v32 = vmov 0.0   ;;  %v7481_v33 = vld [vmem:[#allocation33_spill] sm:$0xff] }
 0xd52   :  { %3874 = vmatpush1.msra.mxu0 %v7471_v35  ;;  %3945 = vmatpush1.msra.mxu1 %v7472_v36  ;;  %v7482_v36 = vld [vmem:[#allocation25_spill] sm:$0xff] }
 0xd53   :  { %3875 = vmatprep.subr.mxu0 %v7473_v45  ;;  %3946 = vmatprep.subr.mxu1 %v7474_v50  ;;  %v7483_v45 = vld [vmem:[#allocation63_spill] sm:$0xff]  ;;  %v7484_v50 = vld [vmem:[#allocation60_spill] sm:$0xff] }
 0xd54   :  { %3876 = vmatpush1.msra.mxu0 %v7475_v19  ;;  %3947 = vmatpush1.msra.mxu1 %v7476_v38  ;;  %v7485_v19 = vld [vmem:[#allocation58_spill] sm:$0xff] }
 0xd55   :  { %3877 = vmatprep.subr.mxu0 %v7477_v4  ;;  %3948 = vmatprep.subr.mxu1 %v7478_v17  ;;  %v2574_v35 = vadd.f32 %v7485_v19, %v7484_v50  ;;  %v7486_v4 = vld [vmem:[#allocation59_spill] sm:$0xff]  ;;  %v2689_v19 = vadd.f32 %v7488_v30, %v6269_v12 }
 0xd56   :  { %3878 = vmatpush1.msra.mxu0 %v7479_v34  ;;  %3911 = vmatprep.mubr.f32.mxu0 %v7480_v32  ;;  %v2576_v24 = vadd.f32 %v7486_v4, %v7385_v13 }
 0xd57   :  { %3949 = vmatpush1.msra.mxu1 %v7481_v33  ;;  %3982 = vmatprep.mubr.f32.mxu1 %v7480_v32  ;;  %v7487_v32 = vld [vmem:[#allocation64_spill] sm:$0xff] }
 0xd58   :  { %4021 = vmatprep.subr.mxu0 %v7482_v36  ;;  %4092 = vmatprep.subr.mxu1 %v7483_v45  ;;  %v2687_v36 = vadd.f32 %v7487_v32, %v6264_v15 }
 0xdf7   :  { %v3739_v38 = vpop.f32.mrf.mxu0  ;;  %v3810_v33 = vpop.f32.mrf.mxu1 }
 0xdf8   :  { %v3815_v17 = vadd.f32 %v3739_v38, %v2574_v35  ;;  %v3817_v31 = vadd.f32 %v3810_v33, %v2687_v36 }
 0xdf9   :  { %v3741_v37 = vpop.f32.mrf.mxu0  ;;  %v3812_v45 = vpop.f32.mrf.mxu1 }
 0xdfa   :  { %v4343_v34 = vmul.f32 -1.442695, %v3815_v17  ;;  %v3816_v54 = vadd.f32 %v3741_v37, %v2576_v24  ;;  %v4345_v50 = vmul.f32 -1.442695, %v3817_v31  ;;  %v3818_v28 = vadd.f32 %v3812_v45, %v2689_v19 }
 0xdfc   :  { %4626 = vpow2.f32 %v4343_v34  ;;  %v4344_v6 = vmul.f32 -1.442695, %v3816_v54 }
 0xdfe   :  { %4628 = vpow2.f32 %v4344_v6 }
 0xdff   :  { %4630 = vpow2.f32 %v4345_v50 }
 0xe00   :  { %4632 = vtanh.f32 %v3818_v28 }
 0xe09   :  { %v4627_v25 = vpop.eup %4626 }
 0xe0a   :  { %v3828_v4 = vadd.f32 1.0, %v4627_v25 }
 0xe0b   :  { %v4629_v35 = vpop.eup %4628 }
 0xe0c   :  { %4634 = vrcp.f32 %v3828_v4  ;;  %v3829_v37 = vadd.f32 1.0, %v4629_v35  ;;  %v4631_v6 = vpop.eup %4630 }
 0xe0d   :  { %v4633_v54 = vpop.eup %4632  ;;  %v3830_v33 = vadd.f32 1.0, %v4631_v6 }
 0xe0e   :  { %4636 = vrcp.f32 %v3829_v37 }
 0xe0f   :  { %4638 = vrcp.f32 %v3830_v33 }
 0xe19   :  { %v4635_v24 = vpop.eup %4634 }
 0xe1a   :  { %v3839_v34 = vmul.f32 %v4635_v24, %v4633_v54 }
 0xe1b   :  { %v4637_v32 = vpop.eup %4636 }
 0xe1c   :  { %v3838_v38 = vmul.f32 %v4637_v32, %v6712_v58  ;;  %v4639_v25 = vpop.eup %4638 }
 0xe1e   :  { %v6790_v17 = vadd.f32 %v3839_v34, %v3838_v38 }
 0xe20   :  { %4640 = vtanh.f32 %v6790_v17 }
 0xe2d   :  { %v4641_v30 = vpop.eup %4640 }
 0xe2e   :  { %v3842_v31 = vmul.f32 %v4641_v30, %v4639_v25  ;;  %v4210_v25 = vld [vmem:[#allocation11 + $0x78] sm:$0xff]  ;;  %v4209_v30 = vld [vmem:[#allocation11 + $0x70] sm:$0xff] }
 0xe30   :  { %3912 = vmatmul.mubr.f32.vlgmr.msra.gmra.mxu0 %v3842_v31  ;;  %3983 = vmatmul.mubr.f32.vlgmr.msra.gmra.mxu1 %v3842_v31  ;;  %v4207_v31 = vld [vmem:[#allocation11 + $0x60] sm:$0xff] }
 0xe31   :  { %4022 = vmatpush1.msra.mxu0 %v6431_v10  ;;  %4093 = vmatpush1.msra.mxu1 %v6434_v14  ;;  %v7489_v10 = vld [vmem:[#allocation26_spill] sm:$0xff]  ;;  %v7490_v14 = vld [vmem:[#allocation27_spill] sm:$0xff] }
 0xe32   :  { %4023 = vmatprep.subr.mxu0 %v6437_v21  ;;  %4094 = vmatprep.subr.mxu1 %v6440_v23  ;;  %v7491_v21 = vld [vmem:[#allocation29_spill] sm:$0xff]  ;;  %v7492_v23 = vld [vmem:[#allocation40_spill] sm:$0xff] }
 0xe33   :  { %4024 = vmatpush1.msra.mxu0 %v6443_v22  ;;  %4095 = vmatpush1.msra.mxu1 %v6446_v60  ;;  %v7493_v22 = vld [vmem:[#allocation42_spill] sm:$0xff]  ;;  %v7494_v60 = vld [vmem:[#allocation41_spill] sm:$0xff] }
 0xe34   :  { %4025 = vmatprep.subr.mxu0 %v6449_v56  ;;  %4096 = vmatprep.subr.mxu1 %v6452_v5  ;;  %v7495_v56 = vld [vmem:[#allocation43_spill] sm:$0xff]  ;;  %v7496_v5 = vld [vmem:[#allocation44_spill] sm:$0xff] }
 0xe35   :  { %4026 = vmatpush1.msra.mxu0 %v6455_v8  ;;  %4097 = vmatpush1.msra.mxu1 %v6458_v44  ;;  %v7497_v8 = vld [vmem:[#allocation46_spill] sm:$0xff]  ;;  %v7498_v44 = vld [vmem:[#allocation45_spill] sm:$0xff] }
 0xe36   :  { %4027 = vmatprep.subr.mxu0 %v6461_v16  ;;  %4098 = vmatprep.subr.mxu1 %v6464_v9  ;;  %v7499_v16 = vld [vmem:[#allocation47_spill] sm:$0xff]  ;;  %v7500_v9 = vld [vmem:[#allocation16_spill] sm:$0xff] }
 0xe37   :  { %4028 = vmatpush1.msra.mxu0 %v6549_v7  ;;  %4099 = vmatpush1.msra.mxu1 %v6552_v18  ;;  %v7501_v7 = vld [vmem:[#allocation17_spill] sm:$0xff]  ;;  %v7502_v18 = vld [vmem:[#allocation48_spill] sm:$0xff] }
 0xe38   :  { %4029 = vmatprep.subr.mxu0 %v6555_v39  ;;  %4100 = vmatprep.subr.mxu1 %v6558_v40  ;;  %v7503_v39 = vld [vmem:[#allocation50_spill] sm:$0xff]  ;;  %v7504_v40 = vld [vmem:[#allocation37_spill] sm:$0xff] }
 0xe39   :  { %4030 = vmatpush1.msra.mxu0 %v6561_v41  ;;  %4101 = vmatpush1.msra.mxu1 %v6564_v42  ;;  %v7505_v41 = vld [vmem:[#allocation39_spill] sm:$0xff]  ;;  %v7506_v42 = vld [vmem:[#allocation28_spill] sm:$0xff] }
 0xe3a   :  { %4031 = vmatprep.subr.mxu0 %v6567_v43  ;;  %4102 = vmatprep.subr.mxu1 %v6570_v3  ;;  %v7507_v43 = vld [vmem:[#allocation30_spill] sm:$0xff]  ;;  %v7508_v3 = vld [vmem:[#allocation31_spill] sm:$0xff] }
 0xe3b   :  { %4032 = vmatpush1.msra.mxu0 %v6573_v61  ;;  %4103 = vmatpush1.msra.mxu1 %v6576_v48  ;;  %v7509_v61 = vmov 0.0   ;;  %v7510_v48 = vld [vmem:[#allocation33_spill] sm:$0xff] }
 0xe3c   :  { %4033 = vmatprep.subr.mxu0 %v6579_v53  ;;  %4104 = vmatprep.subr.mxu1 %v6582_v59  ;;  %v7511_v53 = vld [vmem:[#allocation60_spill] sm:$0xff]  ;;  %v7512_v59 = vld [vmem:[#allocation15_spill] sm:$0xff] }
 0xe3d   :  { %4034 = vmatpush1.msra.mxu0 %v6585_v2  ;;  %4105 = vmatpush1.msra.mxu1 %v6588_v27  ;;  %v2580_v2 = vadd.f32 %v7512_v59, %v7511_v53 }
 0xe3e   :  { %4035 = vmatprep.subr.mxu0 %v6591_v1  ;;  %4106 = vmatprep.subr.mxu1 %v6594_v11  ;;  %v7513_v1 = vld [vmem:[#allocation38_spill] sm:$0xff] }
 0xe3f   :  { %4036 = vmatpush1.msra.mxu0 %v6597_v62  ;;  %4107 = vmatpush1.msra.mxu1 %v6600_v49  ;;  %v2582_v11 = vadd.f32 %v7513_v1, %v7385_v13 }
 0xe40   :  { %4037 = vmatprep.subr.mxu0 %v6603_v46  ;;  %4108 = vmatprep.subr.mxu1 %v6606_v51 }
 0xe41   :  { %4038 = vmatpush1.msra.mxu0 %v6609_v55  ;;  %4109 = vmatpush1.msra.mxu1 %v6612_v20 }
 0xe42   :  { %4039 = vmatprep.subr.mxu0 %v6615_v29  ;;  %4110 = vmatprep.subr.mxu1 %v6618_v0  ;;  %v7514_v29 = vld [vmem:[#allocation62_spill] sm:$0xff] }
 0xe43   :  { %4040 = vmatpush1.msra.mxu0 %v6621_v52  ;;  %4111 = vmatpush1.msra.mxu1 %v6624_v47  ;;  %v2693_v0 = vadd.f32 %v7514_v29, %v6264_v15 }
 0xe44   :  { %4041 = vmatprep.subr.mxu0 %v6627_v57  ;;  %4112 = vmatprep.subr.mxu1 %v6630_v63  ;;  %v7515_v57 = vld [vmem:[#allocation65_spill] sm:$0xff] }
 0xe45   :  { %4042 = vmatpush1.msra.mxu0 %v6633_v26  ;;  %4113 = vmatpush1.msra.mxu1 %v7489_v10  ;;  %v2695_v63 = vadd.f32 %v7515_v57, %v6269_v12  ;;  %v4206_v10 = vld [vmem:[#allocation11 + $0x58] sm:$0xff] }
 0xe46   :  { %4043 = vmatprep.subr.mxu0 %v7490_v14  ;;  %4114 = vmatprep.subr.mxu1 %v7491_v21  ;;  %v4205_v14 = vld [vmem:[#allocation11 + $0x50] sm:$0xff]  ;;  %v4204_v21 = vld [vmem:[#allocation11 + $0x48] sm:$0xff] }
 0xe47   :  { %4044 = vmatpush1.msra.mxu0 %v7492_v23  ;;  %4115 = vmatpush1.msra.mxu1 %v7493_v22  ;;  %v4203_v23 = vld [vmem:[#allocation11 + $0x40] sm:$0xff]  ;;  %v4202_v22 = vld [vmem:[#allocation11 + $0x38] sm:$0xff] }
 0xe48   :  { %4045 = vmatprep.subr.mxu0 %v7494_v60  ;;  %4116 = vmatprep.subr.mxu1 %v7495_v56  ;;  %v4201_v60 = vld [vmem:[#allocation11 + $0x30] sm:$0xff]  ;;  %v4200_v56 = vld [vmem:[#allocation11 + $0x28] sm:$0xff] }
 0xe49   :  { %4046 = vmatpush1.msra.mxu0 %v7496_v5  ;;  %4117 = vmatpush1.msra.mxu1 %v7497_v8  ;;  %v4199_v5 = vld [vmem:[#allocation11 + $0x20] sm:$0xff]  ;;  %v4198_v8 = vld [vmem:[#allocation11 + $0x18] sm:$0xff] }
 0xe4a   :  { %4047 = vmatprep.subr.mxu0 %v7498_v44  ;;  %4118 = vmatprep.subr.mxu1 %v7499_v16  ;;  %v4197_v44 = vld [vmem:[#allocation11 + $0x10] sm:$0xff]  ;;  %v4196_v16 = vld [vmem:[#allocation11 + $0x8] sm:$0xff] }
 0xe4b   :  { %4048 = vmatpush1.msra.mxu0 %v7500_v9  ;;  %4119 = vmatpush1.msra.mxu1 %v7501_v7  ;;  %v4195_v9 = vld [vmem:[#allocation11] sm:$0xff]  ;;  %v7516_v7 = vld [vmem:[#allocation61_spill] sm:$0xff] }
 0xe4c   :  { %4049 = vmatprep.subr.mxu0 %v7502_v18  ;;  %4120 = vmatprep.subr.mxu1 %v7503_v39  ;;  %v2586_v18 = vadd.f32 %v7516_v7, %v7511_v53 }
 0xe4d   :  { %4050 = vmatpush1.msra.mxu0 %v7504_v40  ;;  %4121 = vmatpush1.msra.mxu1 %v7505_v41  ;;  %v7517_v40 = vld [vmem:[#allocation36_spill] sm:$0xff] }
 0xe4e   :  { %4051 = vmatprep.subr.mxu0 %v7506_v42  ;;  %4122 = vmatprep.subr.mxu1 %v7507_v43  ;;  %v2588_v41 = vadd.f32 %v7517_v40, %v7385_v13 }
 0xe4f   :  { %4052 = vmatpush1.msra.mxu0 %v7508_v3  ;;  %4085 = vmatprep.mubr.f32.mxu0 %v7509_v61 }
 0xe50   :  { %4123 = vmatpush1.msra.mxu1 %v7510_v48  ;;  %4156 = vmatprep.mubr.f32.mxu1 %v7509_v61 }
 0xe51   :  { %4372 = vmatprep.subr.mxu0 %v7509_v61 }
 0xef0   :  { %v3913_v27 = vpop.f32.mrf.mxu0  ;;  %v3984_v20 = vpop.f32.mrf.mxu1 }
 0xef1   :  { %v3989_v62 = vadd.f32 %v3913_v27, %v2580_v2  ;;  %v3991_v52 = vadd.f32 %v3984_v20, %v2693_v0  ;;  %v7518_v27 = vld [vmem:[#allocation66_spill] sm:$0xff] }
 0xef2   :  { %v3915_v49 = vpop.f32.mrf.mxu0  ;;  %v3986_v47 = vpop.f32.mrf.mxu1  ;;  %v2699_v1 = vadd.f32 %v7518_v27, %v6264_v15 }
 0xef3   :  { %v4346_v46 = vmul.f32 -1.442695, %v3989_v62  ;;  %v3990_v51 = vadd.f32 %v3915_v49, %v2582_v11  ;;  %v4348_v26 = vmul.f32 -1.442695, %v3991_v52  ;;  %v3992_v28 = vadd.f32 %v3986_v47, %v2695_v63  ;;  %v7519_v62 = vld [vmem:[#allocation67_spill] sm:$0xff] }
 0xef4   :  { %v2701_v53 = vadd.f32 %v7519_v62, %v6269_v12 }
 0xef5   :  { %4642 = vpow2.f32 %v4346_v46  ;;  %v4347_v55 = vmul.f32 -1.442695, %v3990_v51 }
 0xef7   :  { %4644 = vpow2.f32 %v4347_v55 }
 0xef8   :  { %4646 = vpow2.f32 %v4348_v26 }
 0xf02   :  { %v4643_v58 = vpop.eup %4642 }
 0xf03   :  { %v4002_v50 = vadd.f32 1.0, %v4643_v58 }
 0xf04   :  { %v4645_v36 = vpop.eup %4644 }
 0xf05   :  { %4648 = vrcp.f32 %v4002_v50  ;;  %v4003_v45 = vadd.f32 1.0, %v4645_v36  ;;  %v4647_v19 = vpop.eup %4646  ;;  %v4354_v50 = vld [vmem:[%s6915_s8] ss:$0 sm:$0xff] }
 0xf06   :  { %4650 = vtanh.f32 %v3992_v28  ;;  %v4004_v6 = vadd.f32 1.0, %v4647_v19 }
 0xf07   :  { %4652 = vrcp.f32 %v4003_v45 }
 0xf08   :  { %4654 = vrcp.f32 %v4004_v6 }
 0xf12   :  { %v4649_v4 = vpop.eup %4648 }
 0xf13   :  { %v4651_v35 = vpop.eup %4650 }
 0xf14   :  { %v4653_v37 = vpop.eup %4652  ;;  %v4013_v24 = vmul.f32 %v4651_v35, %v4649_v4 }
 0xf15   :  { %v4012_v54 = vmul.f32 %v4653_v37, %v6790_v17  ;;  %v4655_v32 = vpop.eup %4654  ;;  %v4208_v17 = vld [vmem:[#allocation11 + $0x68] sm:$0xff] }
 0xf17   :  { %v6867_v34 = vadd.f32 %v4013_v24, %v4012_v54 }
 0xf19   :  { %4656 = vtanh.f32 %v6867_v34 }
 0xf26   :  { %v4657_v33 = vpop.eup %4656 }
 0xf27   :  { %v4016_v38 = vmul.f32 %v4657_v33, %v4655_v32 }
 0xf29   :  { %4086 = vmatmul.mubr.f32.vlgmr.msra.gmra.mxu0 %v4016_v38  ;;  %4157 = vmatmul.mubr.f32.vlgmr.msra.gmra.mxu1 %v4016_v38 }
 0xf2a   :  { %4373 = vmatpush3.msra.mxu0 %v4210_v25  ;;  %4404 = vmatprep.mubr.msk.f32.mxu0 %vm4854_vm0, %v7509_v61 }
 0xf2b   :  { %4374 = vmatprep.subr.mxu0 %v7509_v61 }
 0xf2c   :  { %4375 = vmatpush3.msra.mxu0 %v4209_v30 }
 0xf2d   :  { %4376 = vmatprep.subr.mxu0 %v7509_v61 }
 0xf2e   :  { %4377 = vmatpush3.msra.mxu0 %v4208_v17 }
 0xf2f   :  { %4378 = vmatprep.subr.mxu0 %v7509_v61 }
 0xf30   :  { %4379 = vmatpush3.msra.mxu0 %v4207_v31 }
 0xf31   :  { %4380 = vmatprep.subr.mxu0 %v7509_v61 }
 0xf32   :  { %4381 = vmatpush3.msra.mxu0 %v4206_v10 }
 0xf33   :  { %4382 = vmatprep.subr.mxu0 %v7509_v61 }
 0xf34   :  { %4383 = vmatpush3.msra.mxu0 %v4205_v14 }
 0xf35   :  { %4384 = vmatprep.subr.mxu0 %v7509_v61 }
 0xf36   :  { %4385 = vmatpush3.msra.mxu0 %v4204_v21 }
 0xf37   :  { %4386 = vmatprep.subr.mxu0 %v7509_v61 }
 0xf38   :  { %4387 = vmatpush3.msra.mxu0 %v4203_v23 }
 0xf39   :  { %4388 = vmatprep.subr.mxu0 %v7509_v61 }
 0xf3a   :  { %4389 = vmatpush3.msra.mxu0 %v4202_v22 }
 0xf3b   :  { %4390 = vmatprep.subr.mxu0 %v7509_v61 }
 0xf3c   :  { %4391 = vmatpush3.msra.mxu0 %v4201_v60 }
 0xf3d   :  { %4392 = vmatprep.subr.mxu0 %v7509_v61 }
 0xf3e   :  { %4393 = vmatpush3.msra.mxu0 %v4200_v56 }
 0xf3f   :  { %4394 = vmatprep.subr.mxu0 %v7509_v61 }
 0xf40   :  { %4395 = vmatpush3.msra.mxu0 %v4199_v5 }
 0xf41   :  { %4396 = vmatprep.subr.mxu0 %v7509_v61 }
 0xf42   :  { %4397 = vmatpush3.msra.mxu0 %v4198_v8 }
 0xf43   :  { %4398 = vmatprep.subr.mxu0 %v7509_v61 }
 0xf44   :  { %4399 = vmatpush3.msra.mxu0 %v4197_v44 }
 0xf45   :  { %4400 = vmatprep.subr.mxu0 %v7509_v61 }
 0xf46   :  { %4401 = vmatpush3.msra.mxu0 %v4196_v16 }
 0xf47   :  { %4402 = vmatprep.subr.mxu0 %v7509_v61 }
 0xf48   :  { %4403 = vmatpush3.msra.mxu0 %v4195_v9 }
 0xfe9   :  { %v4087_v39 = vpop.f32.mrf.mxu0  ;;  %v4158_v2 = vpop.f32.mrf.mxu1 }
 0xfea   :  { %v4163_v42 = vadd.f32 %v4087_v39, %v2586_v18  ;;  %v4165_v61 = vadd.f32 %v4158_v2, %v2699_v1 }
 0xfeb   :  { %v4089_v43 = vpop.f32.mrf.mxu0  ;;  %v4160_v11 = vpop.f32.mrf.mxu1 }
 0xfec   :  { %v4349_v3 = vmul.f32 -1.442695, %v4163_v42  ;;  %v4164_v48 = vadd.f32 %v4089_v43, %v2588_v41  ;;  %v4351_v49 = vmul.f32 -1.442695, %v4165_v61  ;;  %v4166_v46 = vadd.f32 %v4160_v11, %v2701_v53 }
 0xfee   :  { %4658 = vpow2.f32 %v4349_v3  ;;  %v4350_v59 = vmul.f32 -1.442695, %v4164_v48 }
 0xff0   :  { %4660 = vpow2.f32 %v4350_v59 }
 0xff1   :  { %4662 = vpow2.f32 %v4351_v49 }
 0xff2   :  { %4664 = vtanh.f32 %v4166_v46 }
 0xffb   :  { %v4659_v51 = vpop.eup %4658 }
 0xffc   :  { %v4176_v13 = vadd.f32 1.0, %v4659_v51 }
 0xffd   :  { %v4661_v55 = vpop.eup %4660 }
 0xffe   :  { %4666 = vrcp.f32 %v4176_v13  ;;  %v4177_v20 = vadd.f32 1.0, %v4661_v55  ;;  %v4663_v29 = vpop.eup %4662 }
 0xfff   :  { %v4665_v0 = vpop.eup %4664  ;;  %v4178_v57 = vadd.f32 1.0, %v4663_v29 }
0x1000   :  { %4668 = vrcp.f32 %v4177_v20 }
0x1001   :  { %4670 = vrcp.f32 %v4178_v57 }
0x100b   :  { %v4667_v52 = vpop.eup %4666 }
0x100c   :  { %v4187_v47 = vmul.f32 %v4667_v52, %v4665_v0 }
0x100d   :  { %v4669_v15 = vpop.eup %4668 }
0x100e   :  { %v4186_v63 = vmul.f32 %v4669_v15, %v6867_v34  ;;  %v4671_v12 = vpop.eup %4670 }
0x1010   :  { %v4188_v26 = vadd.f32 %v4187_v47, %v4186_v63 }
0x1012   :  { %4672 = vtanh.f32 %v4188_v26  ;;  %4353 = vst [vmem:[%s6918_s11 + $0x8] sm:$0xff] %v4188_v26 }
0x101f   :  { %v4673_v58 = vpop.eup %4672 }
0x1020   :  { %v4190_v28 = vmul.f32 %v4673_v58, %v4671_v12 }
0x1022   :  { %4352 = vst [vmem:[%s6917_s10 + $0x8] sm:$0xff] %v4190_v28  ;;  %4405 = vmatmul.mubr.f32.vlgmr.msra.gmra.mxu0 %v4190_v28 }
0x10e2   :  { %v4284_v36 = vpop.f32.mrf.mxu0 }
0x10e3   :  { %v4285_v45 = vadd.f32 %v4354_v50, %v4284_v36 }
0x10e4   :  { %v4406_v19 = vpop.f32.mrf.mxu0 }
0x10e5   :  { %4288 = vst [vmem:[%s6916_s9] sm:$0xff] %v4285_v45 }
0x10e6   :  { %4301 = vsyncpa [#allocation5], 1 }
0x10e7   :  { %4302 = vsyncpa [#allocation7], 1 }
0x10e8   :  { %4303 = vsyncpa [#allocation10], 1 }

</bundles_post_ra>
